<compile_context>
chip_gen: v6e
topology: v6e:2x2x1
jax: 0.10.0
libtpu: 0.0.40
codegen_flags: <defaults>
</compile_context>

<pallas_src>
import functools

import jax
import jax.numpy as jnp
from jax.experimental import pallas as pl
from jax.experimental.pallas import tpu as pltpu


_SUBLANE = 8


def _round_up(n, m):
    return ((n + m - 1) // m) * m


def _softplus(v):
    # F.softplus (beta=1, threshold=20); clamp exp input so the untaken branch is finite.
    return jnp.where(v > 20.0, v, jnp.log1p(jnp.exp(jnp.minimum(v, 20.0))))


# --------------------------------------------------------------------------------------
# Fused kernel: attention gate -> stacked tanh-RNN (both twins interleaved) -> fused
# dense heads, single grid step, everything resident in VMEM.
# Weights are pre-transposed (in, out); sequences are time-major (N_pad = T*B_pad, feat).
# The backward twin reads its (position-wise gated) input in reverse time order in-kernel,
# so no flips are needed anywhere in the wrapper.
# --------------------------------------------------------------------------------------
def _rnn_twins_kernel(n_layers, T, B, B_pad, O, *refs):
    (x_ref, aw1_ref, ab1_ref, g_ref, bt_ref, aw2_ref, ab2_ref) = refs[:7]
    pos = 7
    layer_refs = [refs[pos + 3 * l: pos + 3 * l + 3] for l in range(n_layers)]
    pos += 3 * n_layers
    fcw_ref, fcb_ref, hw_ref, hb_ref, h0_ref = refs[pos:pos + 5]
    pos += 5
    out_ref = refs[pos]
    scratch = (refs[pos + 1], refs[pos + 2])          # per-direction layer-output scratch

    N_pad = T * B_pad
    H = layer_refs[0][1].shape[-1]
    x = x_ref[...]                                    # (N_pad, C), time-major, batch-padded

    # Valid-row mask (padding batch rows excluded from BatchNorm batch statistics).
    row = jax.lax.broadcasted_iota(jnp.int32, (N_pad, 1), 0)
    maskf = ((row % B_pad) < B).astype(jnp.float32)
    cnt = float(T * B)

    # ---- attention: conv1x1 -> BatchNorm1d (masked training batch stats) -> tanh
    #                 -> conv1x1 -> softmax over channels, gating the shared input ----
    gated = []
    for d in range(2):
        z1 = jnp.dot(x, aw1_ref[d], preferred_element_type=jnp.float32) + ab1_ref[d]   # (N_pad, H)
        mean = jnp.sum(z1 * maskf, axis=0, keepdims=True) / cnt
        var = jnp.sum(jnp.square(z1 - mean) * maskf, axis=0, keepdims=True) / cnt
        z1 = (z1 - mean) * jax.lax.rsqrt(var + 1e-5) * g_ref[d] + bt_ref[d]
        a = jnp.tanh(z1)
        z2 = jnp.dot(a, aw2_ref[d], preferred_element_type=jnp.float32) + ab2_ref[d]    # (N_pad, C)
        z2 = z2 - jnp.max(z2, axis=-1, keepdims=True)
        e = jnp.exp(z2)
        att = e * pl.reciprocal(jnp.sum(e, axis=-1, keepdims=True), approx=True)
        gated.append(x * att)

    # ---- stacked vanilla tanh-RNN layers (nn.RNN, h0 = 0), both twins interleaved ----
    # Input projection hoisted out of the recurrence (one batched matmul / layer / dir).
    # Forward twin: step t reads/writes natural time block t.
    # Backward twin: step t consumes natural block (T-1-t); its state is stored back at
    # the block it consumed, so the scratch stays in natural time order for every layer.
    for l in range(n_layers):
        wih_ref, whh_ref, bl_ref = layer_refs[l]
        lin = gated if l == 0 else [scratch[0][...], scratch[1][...]]
        xp = [jnp.dot(lin[d], wih_ref[d], preferred_element_type=jnp.float32) + bl_ref[d]
              for d in range(2)]                                    # (N_pad, H) each
        whh = [whh_ref[0], whh_ref[1]]                              # (H, H) each
        h = [jnp.zeros((B_pad, H), jnp.float32), jnp.zeros((B_pad, H), jnp.float32)]
        for t in range(T):                                          # fully unrolled
            blk = (t, T - 1 - t)
            for d in range(2):                                      # two independent dots
                b0 = blk[d] * B_pad
                h[d] = jnp.tanh(xp[d][b0:b0 + B_pad, :]
                                + jnp.dot(h[d], whh[d], preferred_element_type=jnp.float32))
            for d in range(2):
                b0 = blk[d] * B_pad
                scratch[d][b0:b0 + B_pad, :] = h[d]

    # ---- fused dense heads: relu(fc(.)) -> [mean | vars] in one (D, 2*O) matmul ----
    col = jax.lax.broadcasted_iota(jnp.int32, (1, 2 * O), 1)
    is_var = col >= O

    def head(rows, d):
        h1 = jnp.maximum(
            jnp.dot(rows, fcw_ref[d], preferred_element_type=jnp.float32) + fcb_ref[d], 0.0)
        hv = jnp.dot(h1, hw_ref[d], preferred_element_type=jnp.float32) + hb_ref[d]
        return jnp.where(is_var, _softplus(hv), hv)     # softplus only on the vars half

    # forward twin: out[t=0] from the two h0 draws, out[t>=1] from r_f[t-1] (blocks 0..T-2)
    h0h_f = head(h0_ref[0], 0)                           # rows [0:Bp]=mu draw, [Bp:2Bp]=vars draw
    out_ref[0, 0:B_pad, :] = jnp.where(is_var, h0h_f[B_pad:2 * B_pad, :], h0h_f[0:B_pad, :])
    out_ref[0, B_pad:N_pad, :] = head(scratch[0][0:N_pad - B_pad, :], 0)

    # backward twin (scratch already in natural time order):
    # out[t<=T-2] from scratch blocks 1..T-1 (= state over positions t+1..T-1),
    # out[t=T-1] from the two h0 draws.
    h0h_b = head(h0_ref[1], 1)
    out_ref[1, 0:N_pad - B_pad, :] = head(scratch[1][B_pad:N_pad, :], 1)
    out_ref[1, N_pad - B_pad:N_pad, :] = jnp.where(is_var, h0h_b[B_pad:2 * B_pad, :],
                                                   h0h_b[0:B_pad, :])


# --------------------------------------------------------------------------------------
# Wrapper: single shared input, single pallas_call, no per-call parameter stacking.
# --------------------------------------------------------------------------------------
def rnn_twins_forward(params, y, x_hat):
    B, T, I = y.shape
    C = 2 * I
    n_layers = len(params["rnn"])
    H = params["rnn"][0][1].shape[-1]
    O = params["head_w"].shape[-1] // 2
    B_pad = _round_up(max(B, _SUBLANE), _SUBLANE)
    N_pad = T * B_pad
    assert params["h0"].shape == (2, 2 * B_pad, H), "params built for a different batch size"

    rnn_in = jnp.concatenate([y - x_hat, x_hat], axis=-1)            # (B, T, C)
    xt = jnp.transpose(rnn_in, (1, 0, 2))                            # time-major (T, B, C)
    xt = jnp.pad(xt, ((0, 0), (0, B_pad - B), (0, 0)))               # pad batch to sublane tile
    x_flat = xt.reshape(N_pad, C).astype(jnp.float32)

    args = [x_flat,
            params["att_w1"], params["att_b1"], params["bn_gamma"], params["bn_beta"],
            params["att_w2"], params["att_b2"]]
    for l in range(n_layers):
        args.extend(params["rnn"][l])
    args.extend([params["fc_w"], params["fc_b"], params["head_w"], params["head_b"],
                 params["h0"]])

    kernel = functools.partial(_rnn_twins_kernel, n_layers, T, B, B_pad, O)
    vmem_spec = pl.BlockSpec(memory_space=pltpu.MemorySpace.VMEM)

    out = pl.pallas_call(
        kernel,
        out_shape=jax.ShapeDtypeStruct((2, N_pad, 2 * O), jnp.float32),
        in_specs=[vmem_spec] * len(args),
        out_specs=vmem_spec,
        scratch_shapes=[pltpu.VMEM((N_pad, H), jnp.float32),
                        pltpu.VMEM((N_pad, H), jnp.float32)],
    )(*args)

    out = out.reshape(2, T, B_pad, 2 * O)[:, :, :B, :]               # strip batch padding
    out = jnp.transpose(out, (0, 2, 1, 3))                           # (2, B, T, 2*O)
    mu_f, vars_f = out[0, ..., :O], out[0, ..., O:]
    mu_b, vars_b = out[1, ..., :O], out[1, ..., O:]
    return mu_f, vars_f, mu_b, vars_b


# --------------------------------------------------------------------------------------
# Deterministic parameter init (shapes from RNN_model.__init__), weights stored (in, out),
# mean/vars heads fused, both twins pre-stacked into (2, ...) arrays ONCE here.
# --------------------------------------------------------------------------------------
def _init_single(key, input_size, output_size, n_hidden, n_layers, n_hidden_dense, b_pad):
    in2 = 2 * input_size
    keys = iter(jax.random.split(key, 4 * n_layers + 16))

    def unif(k, shape, fan_in):
        bound = 1.0 / jnp.sqrt(jnp.float32(fan_in))
        return jax.random.uniform(k, shape, jnp.float32, -bound, bound)

    layers = []
    for l in range(n_layers):
        din = in2 if l == 0 else n_hidden
        w_ih = unif(next(keys), (din, n_hidden), n_hidden)            # (in, out)
        w_hh = unif(next(keys), (n_hidden, n_hidden), n_hidden)
        b_ih = unif(next(keys), (n_hidden,), n_hidden)
        b_hh = unif(next(keys), (n_hidden,), n_hidden)
        layers.append((w_ih, w_hh, (b_ih + b_hh).reshape(1, n_hidden)))

    mean_w = unif(next(keys), (n_hidden_dense, output_size), n_hidden_dense)
    vars_w = unif(next(keys), (n_hidden_dense, output_size), n_hidden_dense)
    mean_b = unif(next(keys), (output_size,), n_hidden_dense)
    vars_b = unif(next(keys), (output_size,), n_hidden_dense)

    # TODO(synk): PyTorch calls torch.randn inside init_h0 on every forward; here two fixed
    # deterministic normal samples (mu-head draw rows then vars-head draw rows) stand in.
    h0_mu = jax.random.normal(next(keys), (b_pad, n_hidden), jnp.float32)
    h0_var = jax.random.normal(next(keys), (b_pad, n_hidden), jnp.float32)

    return {
        "rnn": layers,
        "fc_w": unif(next(keys), (n_hidden, n_hidden_dense), n_hidden),
        "fc_b": unif(next(keys), (1, n_hidden_dense), n_hidden),
        "head_w": jnp.concatenate([mean_w, vars_w], axis=1),          # (Dd, 2*O) fused head
        "head_b": jnp.concatenate([mean_b, vars_b]).reshape(1, -1),   # (1, 2*O)
        "att_w1": unif(next(keys), (in2, n_hidden), in2),             # Conv1d k=1, (in, out)
        "att_b1": unif(next(keys), (1, n_hidden), in2),
        "bn_gamma": jnp.ones((1, n_hidden), jnp.float32),
        "bn_beta": jnp.zeros((1, n_hidden), jnp.float32),
        "att_w2": unif(next(keys), (n_hidden, in2), n_hidden),
        "att_b2": unif(next(keys), (1, in2), n_hidden),
        "h0": jnp.concatenate([h0_mu, h0_var], axis=0),               # (2*B_pad, H)
    }


def init_rnn_twins_params(key, input_size, output_size, n_hidden, n_layers,
                          n_hidden_dense, batch_size):
    b_pad = _round_up(max(batch_size, _SUBLANE), _SUBLANE)
    k_f, k_b = jax.random.split(key)
    p_f = _init_single(k_f, input_size, output_size, n_hidden, n_layers, n_hidden_dense, b_pad)
    p_b = _init_single(k_b, input_size, output_size, n_hidden, n_layers, n_hidden_dense, b_pad)
    # Twin parameters stacked ONCE at init: the per-call forward does no stacking at all.
    return jax.tree.map(lambda a, b: jnp.stack([a, b], axis=0), p_f, p_b)


# --------------------------------------------------------------------------------------
if __name__ == "__main__":
    B, T = 2, 8
    input_size, output_size = 4, 4
    n_hidden, n_layers, n_hidden_dense = 32, 2, 32

    key = jax.random.PRNGKey(0)
    k_p, k_y, k_x = jax.random.split(key, 3)
    params = init_rnn_twins_params(k_p, input_size, output_size, n_hidden,
                                   n_layers, n_hidden_dense, B)

    y = jax.random.normal(k_y, (B, T, input_size), jnp.float32)
    x_hat = jax.random.normal(k_x, (B, T, input_size), jnp.float32)

    mu_f, vars_f, mu_b, vars_b = jax.jit(rnn_twins_forward)(params, y, x_hat)
    jax.block_until_ready((mu_f, vars_f, mu_b, vars_b))

    assert mu_f.shape == (B, T, output_size) and vars_f.shape == (B, T, output_size)
    assert mu_b.shape == (B, T, output_size) and vars_b.shape == (B, T, output_size)
    assert bool(jnp.all(vars_f > 0)) and bool(jnp.all(vars_b > 0))
    for a in (mu_f, vars_f, mu_b, vars_b):
        assert bool(jnp.all(jnp.isfinite(a)))

    print("KERNEL_OK")
</pallas_src>

<mosaic_0001>
module attributes {stable_mosaic.version = 11 : i64} {
  func.func @_rnn_twins_kernel(%arg0: memref<64x8xf32, #tpu.memory_space<vmem>>, %arg1: memref<2x8x32xf32, #tpu.memory_space<vmem>>, %arg2: memref<2x1x32xf32, #tpu.memory_space<vmem>>, %arg3: memref<2x1x32xf32, #tpu.memory_space<vmem>>, %arg4: memref<2x1x32xf32, #tpu.memory_space<vmem>>, %arg5: memref<2x32x8xf32, #tpu.memory_space<vmem>>, %arg6: memref<2x1x8xf32, #tpu.memory_space<vmem>>, %arg7: memref<2x8x32xf32, #tpu.memory_space<vmem>>, %arg8: memref<2x32x32xf32, #tpu.memory_space<vmem>>, %arg9: memref<2x1x32xf32, #tpu.memory_space<vmem>>, %arg10: memref<2x32x32xf32, #tpu.memory_space<vmem>>, %arg11: memref<2x32x32xf32, #tpu.memory_space<vmem>>, %arg12: memref<2x1x32xf32, #tpu.memory_space<vmem>>, %arg13: memref<2x32x32xf32, #tpu.memory_space<vmem>>, %arg14: memref<2x1x32xf32, #tpu.memory_space<vmem>>, %arg15: memref<2x32x8xf32, #tpu.memory_space<vmem>>, %arg16: memref<2x1x8xf32, #tpu.memory_space<vmem>>, %arg17: memref<2x16x32xf32, #tpu.memory_space<vmem>>, %arg18: memref<2x64x8xf32, #tpu.memory_space<vmem>>, %arg19: memref<64x32xf32, #tpu.memory_space<vmem>>, %arg20: memref<64x32xf32, #tpu.memory_space<vmem>>) attributes {dimension_semantics = [], scalar_prefetch = 0 : i64, scratch_operands = 2 : i64, tpu.core_type = #tpu.core_type<tc>} {
    %c0 = arith.constant 0 : index
    %c0_0 = arith.constant 0 : index
    %0 = vector.load %arg0[%c0, %c0_0] : memref<64x8xf32, #tpu.memory_space<vmem>>, vector<64x8xf32>
    %1 = tpu.iota {dimensions = array<i32: 0>} : vector<64x1xi32>
    %c8_i32 = arith.constant 8 : i32
    %c0_i32 = arith.constant 0 : i32
    %2 = arith.cmpi eq, %c8_i32, %c0_i32 : i32
    %c1_i32 = arith.constant 1 : i32
    %3 = arith.select %2, %c1_i32, %c8_i32 : i32
    %4 = vector.broadcast %3 : i32 to vector<64x1xi32>
    %5 = arith.remsi %1, %4 : vector<64x1xi32>
    %c0_i32_1 = arith.constant 0 : i32
    %6 = vector.broadcast %c0_i32_1 : i32 to vector<64x1xi32>
    %7 = arith.cmpi ne, %5, %6 : vector<64x1xi32>
    %c0_i32_2 = arith.constant 0 : i32
    %8 = vector.broadcast %c0_i32_2 : i32 to vector<64x1xi32>
    %9 = arith.cmpi slt, %5, %8 : vector<64x1xi32>
    %c0_i32_3 = arith.constant 0 : i32
    %10 = arith.cmpi slt, %3, %c0_i32_3 : i32
    %11 = vector.broadcast %10 : i1 to vector<64x1xi1>
    %12 = vector.broadcast %11 : vector<64x1xi1> to vector<64x1xi1>
    %13 = arith.xori %9, %12 : vector<64x1xi1>
    %14 = arith.andi %13, %7 : vector<64x1xi1>
    %15 = vector.broadcast %3 : i32 to vector<64x1xi32>
    %16 = arith.addi %5, %15 : vector<64x1xi32>
    %17 = arith.select %14, %16, %5 : vector<64x1xi1>, vector<64x1xi32>
    %c2_i32 = arith.constant 2 : i32
    %18 = vector.broadcast %c2_i32 : i32 to vector<64x1xi32>
    %19 = arith.cmpi slt, %17, %18 : vector<64x1xi32>
    %20 = arith.extui %19 : vector<64x1xi1> to vector<64x1xi32>
    %21 = arith.sitofp %20 : vector<64x1xi32> to vector<64x1xf32>
    %c0_4 = arith.constant 0 : index
    %c0_5 = arith.constant 0 : index
    %c0_6 = arith.constant 0 : index
    %22 = vector.load %arg1[%c0_4, %c0_5, %c0_6] : memref<2x8x32xf32, #tpu.memory_space<vmem>>, vector<1x8x32xf32>
    %23 = vector.shape_cast %22 : vector<1x8x32xf32> to vector<8x32xf32>
    %cst = arith.constant dense<0.000000e+00> : vector<64x32xf32>
    %24 = tpu.matmul %0, %23, %cst {dimension_numbers = #tpu.dot_dimension_numbers<[1], [0], [0], [1], [0, 0, 1, 1], [], []>} : vector<64x8xf32>, vector<8x32xf32>, vector<64x32xf32> -> vector<64x32xf32>
    %c0_7 = arith.constant 0 : index
    %c0_8 = arith.constant 0 : index
    %c0_9 = arith.constant 0 : index
    %25 = vector.load %arg2[%c0_7, %c0_8, %c0_9] : memref<2x1x32xf32, #tpu.memory_space<vmem>>, vector<1x1x32xf32>
    %26 = vector.shape_cast %25 : vector<1x1x32xf32> to vector<1x32xf32>
    %27 = vector.broadcast %26 : vector<1x32xf32> to vector<64x32xf32>
    %28 = arith.addf %24, %27 : vector<64x32xf32>
    %29 = vector.broadcast %21 : vector<64x1xf32> to vector<64x32xf32>
    %30 = arith.mulf %28, %29 : vector<64x32xf32>
    %cst_10 = arith.constant dense<0.000000e+00> : vector<32xf32>
    %31 = vector.multi_reduction <add>, %30, %cst_10 [0] : vector<64x32xf32> to vector<32xf32>
    %32 = vector.shape_cast %31 : vector<32xf32> to vector<1x32xf32>
    %cst_11 = arith.constant 1.600000e+01 : f32
    %33 = vector.broadcast %cst_11 : f32 to vector<1x32xf32>
    %34 = arith.divf %32, %33 : vector<1x32xf32>
    %35 = vector.broadcast %34 : vector<1x32xf32> to vector<64x32xf32>
    %36 = arith.subf %28, %35 : vector<64x32xf32>
    %37 = arith.mulf %36, %36 : vector<64x32xf32>
    %38 = vector.broadcast %21 : vector<64x1xf32> to vector<64x32xf32>
    %39 = arith.mulf %37, %38 : vector<64x32xf32>
    %cst_12 = arith.constant dense<0.000000e+00> : vector<32xf32>
    %40 = vector.multi_reduction <add>, %39, %cst_12 [0] : vector<64x32xf32> to vector<32xf32>
    %41 = vector.shape_cast %40 : vector<32xf32> to vector<1x32xf32>
    %cst_13 = arith.constant 1.600000e+01 : f32
    %42 = vector.broadcast %cst_13 : f32 to vector<1x32xf32>
    %43 = arith.divf %41, %42 : vector<1x32xf32>
    %44 = vector.broadcast %34 : vector<1x32xf32> to vector<64x32xf32>
    %45 = arith.subf %28, %44 : vector<64x32xf32>
    %cst_14 = arith.constant 9.99999974E-6 : f32
    %46 = vector.broadcast %cst_14 : f32 to vector<1x32xf32>
    %47 = arith.addf %43, %46 : vector<1x32xf32>
    %48 = math.rsqrt %47 : vector<1x32xf32>
    %49 = vector.broadcast %48 : vector<1x32xf32> to vector<64x32xf32>
    %50 = arith.mulf %45, %49 : vector<64x32xf32>
    %c0_15 = arith.constant 0 : index
    %c0_16 = arith.constant 0 : index
    %c0_17 = arith.constant 0 : index
    %51 = vector.load %arg3[%c0_15, %c0_16, %c0_17] : memref<2x1x32xf32, #tpu.memory_space<vmem>>, vector<1x1x32xf32>
    %52 = vector.shape_cast %51 : vector<1x1x32xf32> to vector<1x32xf32>
    %53 = vector.broadcast %52 : vector<1x32xf32> to vector<64x32xf32>
    %54 = arith.mulf %50, %53 : vector<64x32xf32>
    %c0_18 = arith.constant 0 : index
    %c0_19 = arith.constant 0 : index
    %c0_20 = arith.constant 0 : index
    %55 = vector.load %arg4[%c0_18, %c0_19, %c0_20] : memref<2x1x32xf32, #tpu.memory_space<vmem>>, vector<1x1x32xf32>
    %56 = vector.shape_cast %55 : vector<1x1x32xf32> to vector<1x32xf32>
    %57 = vector.broadcast %56 : vector<1x32xf32> to vector<64x32xf32>
    %58 = arith.addf %54, %57 : vector<64x32xf32>
    %59 = math.tanh %58 : vector<64x32xf32>
    %c0_21 = arith.constant 0 : index
    %c0_22 = arith.constant 0 : index
    %c0_23 = arith.constant 0 : index
    %60 = vector.load %arg5[%c0_21, %c0_22, %c0_23] : memref<2x32x8xf32, #tpu.memory_space<vmem>>, vector<1x32x8xf32>
    %61 = vector.shape_cast %60 : vector<1x32x8xf32> to vector<32x8xf32>
    %cst_24 = arith.constant dense<0.000000e+00> : vector<64x8xf32>
    %62 = tpu.matmul %59, %61, %cst_24 {dimension_numbers = #tpu.dot_dimension_numbers<[1], [0], [0], [1], [0, 0, 1, 1], [], []>} : vector<64x32xf32>, vector<32x8xf32>, vector<64x8xf32> -> vector<64x8xf32>
    %c0_25 = arith.constant 0 : index
    %c0_26 = arith.constant 0 : index
    %c0_27 = arith.constant 0 : index
    %63 = vector.load %arg6[%c0_25, %c0_26, %c0_27] : memref<2x1x8xf32, #tpu.memory_space<vmem>>, vector<1x1x8xf32>
    %64 = vector.shape_cast %63 : vector<1x1x8xf32> to vector<1x8xf32>
    %65 = vector.broadcast %64 : vector<1x8xf32> to vector<64x8xf32>
    %66 = arith.addf %62, %65 : vector<64x8xf32>
    %cst_28 = arith.constant dense<0xFF800000> : vector<64xf32>
    %67 = vector.multi_reduction <maximumf>, %66, %cst_28 [1] : vector<64x8xf32> to vector<64xf32>
    %68 = vector.shape_cast %67 : vector<64xf32> to vector<64x1xf32>
    %69 = vector.broadcast %68 : vector<64x1xf32> to vector<64x8xf32>
    %70 = arith.subf %66, %69 : vector<64x8xf32>
    %71 = math.exp %70 : vector<64x8xf32>
    %cst_29 = arith.constant dense<0.000000e+00> : vector<64xf32>
    %72 = vector.multi_reduction <add>, %71, %cst_29 [1] : vector<64x8xf32> to vector<64xf32>
    %73 = vector.shape_cast %72 : vector<64xf32> to vector<64x1xf32>
    %74 = tpu.reciprocal %73 {approx = true} : vector<64x1xf32> -> vector<64x1xf32>
    %75 = vector.broadcast %74 : vector<64x1xf32> to vector<64x8xf32>
    %76 = arith.mulf %71, %75 : vector<64x8xf32>
    %77 = arith.mulf %0, %76 : vector<64x8xf32>
    %c1 = arith.constant 1 : index
    %c0_30 = arith.constant 0 : index
    %c0_31 = arith.constant 0 : index
    %78 = vector.load %arg1[%c1, %c0_30, %c0_31] : memref<2x8x32xf32, #tpu.memory_space<vmem>>, vector<1x8x32xf32>
    %79 = vector.shape_cast %78 : vector<1x8x32xf32> to vector<8x32xf32>
    %cst_32 = arith.constant dense<0.000000e+00> : vector<64x32xf32>
    %80 = tpu.matmul %0, %79, %cst_32 {dimension_numbers = #tpu.dot_dimension_numbers<[1], [0], [0], [1], [0, 0, 1, 1], [], []>} : vector<64x8xf32>, vector<8x32xf32>, vector<64x32xf32> -> vector<64x32xf32>
    %c1_33 = arith.constant 1 : index
    %c0_34 = arith.constant 0 : index
    %c0_35 = arith.constant 0 : index
    %81 = vector.load %arg2[%c1_33, %c0_34, %c0_35] : memref<2x1x32xf32, #tpu.memory_space<vmem>>, vector<1x1x32xf32>
    %82 = vector.shape_cast %81 : vector<1x1x32xf32> to vector<1x32xf32>
    %83 = vector.broadcast %82 : vector<1x32xf32> to vector<64x32xf32>
    %84 = arith.addf %80, %83 : vector<64x32xf32>
    %85 = vector.broadcast %21 : vector<64x1xf32> to vector<64x32xf32>
    %86 = arith.mulf %84, %85 : vector<64x32xf32>
    %cst_36 = arith.constant dense<0.000000e+00> : vector<32xf32>
    %87 = vector.multi_reduction <add>, %86, %cst_36 [0] : vector<64x32xf32> to vector<32xf32>
    %88 = vector.shape_cast %87 : vector<32xf32> to vector<1x32xf32>
    %cst_37 = arith.constant 1.600000e+01 : f32
    %89 = vector.broadcast %cst_37 : f32 to vector<1x32xf32>
    %90 = arith.divf %88, %89 : vector<1x32xf32>
    %91 = vector.broadcast %90 : vector<1x32xf32> to vector<64x32xf32>
    %92 = arith.subf %84, %91 : vector<64x32xf32>
    %93 = arith.mulf %92, %92 : vector<64x32xf32>
    %94 = vector.broadcast %21 : vector<64x1xf32> to vector<64x32xf32>
    %95 = arith.mulf %93, %94 : vector<64x32xf32>
    %cst_38 = arith.constant dense<0.000000e+00> : vector<32xf32>
    %96 = vector.multi_reduction <add>, %95, %cst_38 [0] : vector<64x32xf32> to vector<32xf32>
    %97 = vector.shape_cast %96 : vector<32xf32> to vector<1x32xf32>
    %cst_39 = arith.constant 1.600000e+01 : f32
    %98 = vector.broadcast %cst_39 : f32 to vector<1x32xf32>
    %99 = arith.divf %97, %98 : vector<1x32xf32>
    %100 = vector.broadcast %90 : vector<1x32xf32> to vector<64x32xf32>
    %101 = arith.subf %84, %100 : vector<64x32xf32>
    %cst_40 = arith.constant 9.99999974E-6 : f32
    %102 = vector.broadcast %cst_40 : f32 to vector<1x32xf32>
    %103 = arith.addf %99, %102 : vector<1x32xf32>
    %104 = math.rsqrt %103 : vector<1x32xf32>
    %105 = vector.broadcast %104 : vector<1x32xf32> to vector<64x32xf32>
    %106 = arith.mulf %101, %105 : vector<64x32xf32>
    %c1_41 = arith.constant 1 : index
    %c0_42 = arith.constant 0 : index
    %c0_43 = arith.constant 0 : index
    %107 = vector.load %arg3[%c1_41, %c0_42, %c0_43] : memref<2x1x32xf32, #tpu.memory_space<vmem>>, vector<1x1x32xf32>
    %108 = vector.shape_cast %107 : vector<1x1x32xf32> to vector<1x32xf32>
    %109 = vector.broadcast %108 : vector<1x32xf32> to vector<64x32xf32>
    %110 = arith.mulf %106, %109 : vector<64x32xf32>
    %c1_44 = arith.constant 1 : index
    %c0_45 = arith.constant 0 : index
    %c0_46 = arith.constant 0 : index
    %111 = vector.load %arg4[%c1_44, %c0_45, %c0_46] : memref<2x1x32xf32, #tpu.memory_space<vmem>>, vector<1x1x32xf32>
    %112 = vector.shape_cast %111 : vector<1x1x32xf32> to vector<1x32xf32>
    %113 = vector.broadcast %112 : vector<1x32xf32> to vector<64x32xf32>
    %114 = arith.addf %110, %113 : vector<64x32xf32>
    %115 = math.tanh %114 : vector<64x32xf32>
    %c1_47 = arith.constant 1 : index
    %c0_48 = arith.constant 0 : index
    %c0_49 = arith.constant 0 : index
    %116 = vector.load %arg5[%c1_47, %c0_48, %c0_49] : memref<2x32x8xf32, #tpu.memory_space<vmem>>, vector<1x32x8xf32>
    %117 = vector.shape_cast %116 : vector<1x32x8xf32> to vector<32x8xf32>
    %cst_50 = arith.constant dense<0.000000e+00> : vector<64x8xf32>
    %118 = tpu.matmul %115, %117, %cst_50 {dimension_numbers = #tpu.dot_dimension_numbers<[1], [0], [0], [1], [0, 0, 1, 1], [], []>} : vector<64x32xf32>, vector<32x8xf32>, vector<64x8xf32> -> vector<64x8xf32>
    %c1_51 = arith.constant 1 : index
    %c0_52 = arith.constant 0 : index
    %c0_53 = arith.constant 0 : index
    %119 = vector.load %arg6[%c1_51, %c0_52, %c0_53] : memref<2x1x8xf32, #tpu.memory_space<vmem>>, vector<1x1x8xf32>
    %120 = vector.shape_cast %119 : vector<1x1x8xf32> to vector<1x8xf32>
    %121 = vector.broadcast %120 : vector<1x8xf32> to vector<64x8xf32>
    %122 = arith.addf %118, %121 : vector<64x8xf32>
    %cst_54 = arith.constant dense<0xFF800000> : vector<64xf32>
    %123 = vector.multi_reduction <maximumf>, %122, %cst_54 [1] : vector<64x8xf32> to vector<64xf32>
    %124 = vector.shape_cast %123 : vector<64xf32> to vector<64x1xf32>
    %125 = vector.broadcast %124 : vector<64x1xf32> to vector<64x8xf32>
    %126 = arith.subf %122, %125 : vector<64x8xf32>
    %127 = math.exp %126 : vector<64x8xf32>
    %cst_55 = arith.constant dense<0.000000e+00> : vector<64xf32>
    %128 = vector.multi_reduction <add>, %127, %cst_55 [1] : vector<64x8xf32> to vector<64xf32>
    %129 = vector.shape_cast %128 : vector<64xf32> to vector<64x1xf32>
    %130 = tpu.reciprocal %129 {approx = true} : vector<64x1xf32> -> vector<64x1xf32>
    %131 = vector.broadcast %130 : vector<64x1xf32> to vector<64x8xf32>
    %132 = arith.mulf %127, %131 : vector<64x8xf32>
    %133 = arith.mulf %0, %132 : vector<64x8xf32>
    %c0_56 = arith.constant 0 : index
    %c0_57 = arith.constant 0 : index
    %c0_58 = arith.constant 0 : index
    %134 = vector.load %arg7[%c0_56, %c0_57, %c0_58] : memref<2x8x32xf32, #tpu.memory_space<vmem>>, vector<1x8x32xf32>
    %135 = vector.shape_cast %134 : vector<1x8x32xf32> to vector<8x32xf32>
    %cst_59 = arith.constant dense<0.000000e+00> : vector<64x32xf32>
    %136 = tpu.matmul %77, %135, %cst_59 {dimension_numbers = #tpu.dot_dimension_numbers<[1], [0], [0], [1], [0, 0, 1, 1], [], []>} : vector<64x8xf32>, vector<8x32xf32>, vector<64x32xf32> -> vector<64x32xf32>
    %c0_60 = arith.constant 0 : index
    %c0_61 = arith.constant 0 : index
    %c0_62 = arith.constant 0 : index
    %137 = vector.load %arg9[%c0_60, %c0_61, %c0_62] : memref<2x1x32xf32, #tpu.memory_space<vmem>>, vector<1x1x32xf32>
    %138 = vector.shape_cast %137 : vector<1x1x32xf32> to vector<1x32xf32>
    %139 = vector.broadcast %138 : vector<1x32xf32> to vector<64x32xf32>
    %140 = arith.addf %136, %139 : vector<64x32xf32>
    %c1_63 = arith.constant 1 : index
    %c0_64 = arith.constant 0 : index
    %c0_65 = arith.constant 0 : index
    %141 = vector.load %arg7[%c1_63, %c0_64, %c0_65] : memref<2x8x32xf32, #tpu.memory_space<vmem>>, vector<1x8x32xf32>
    %142 = vector.shape_cast %141 : vector<1x8x32xf32> to vector<8x32xf32>
    %cst_66 = arith.constant dense<0.000000e+00> : vector<64x32xf32>
    %143 = tpu.matmul %133, %142, %cst_66 {dimension_numbers = #tpu.dot_dimension_numbers<[1], [0], [0], [1], [0, 0, 1, 1], [], []>} : vector<64x8xf32>, vector<8x32xf32>, vector<64x32xf32> -> vector<64x32xf32>
    %c1_67 = arith.constant 1 : index
    %c0_68 = arith.constant 0 : index
    %c0_69 = arith.constant 0 : index
    %144 = vector.load %arg9[%c1_67, %c0_68, %c0_69] : memref<2x1x32xf32, #tpu.memory_space<vmem>>, vector<1x1x32xf32>
    %145 = vector.shape_cast %144 : vector<1x1x32xf32> to vector<1x32xf32>
    %146 = vector.broadcast %145 : vector<1x32xf32> to vector<64x32xf32>
    %147 = arith.addf %143, %146 : vector<64x32xf32>
    %c0_70 = arith.constant 0 : index
    %c0_71 = arith.constant 0 : index
    %c0_72 = arith.constant 0 : index
    %148 = vector.load %arg8[%c0_70, %c0_71, %c0_72] : memref<2x32x32xf32, #tpu.memory_space<vmem>>, vector<1x32x32xf32>
    %149 = vector.shape_cast %148 : vector<1x32x32xf32> to vector<32x32xf32>
    %c1_73 = arith.constant 1 : index
    %c0_74 = arith.constant 0 : index
    %c0_75 = arith.constant 0 : index
    %150 = vector.load %arg8[%c1_73, %c0_74, %c0_75] : memref<2x32x32xf32, #tpu.memory_space<vmem>>, vector<1x32x32xf32>
    %151 = vector.shape_cast %150 : vector<1x32x32xf32> to vector<32x32xf32>
    %cst_76 = arith.constant 0.000000e+00 : f32
    %152 = vector.broadcast %cst_76 : f32 to vector<8x32xf32>
    %cst_77 = arith.constant 0.000000e+00 : f32
    %153 = vector.broadcast %cst_77 : f32 to vector<8x32xf32>
    %154 = vector.extract_strided_slice %140 {offsets = [0, 0], sizes = [8, 32], strides = [1, 1]} : vector<64x32xf32> to vector<8x32xf32>
    %cst_78 = arith.constant dense<0.000000e+00> : vector<8x32xf32>
    %155 = tpu.matmul %152, %149, %cst_78 {dimension_numbers = #tpu.dot_dimension_numbers<[1], [0], [0], [1], [0, 0, 1, 1], [], []>} : vector<8x32xf32>, vector<32x32xf32>, vector<8x32xf32> -> vector<8x32xf32>
    %156 = arith.addf %154, %155 : vector<8x32xf32>
    %157 = math.tanh %156 : vector<8x32xf32>
    %158 = vector.extract_strided_slice %147 {offsets = [56, 0], sizes = [8, 32], strides = [1, 1]} : vector<64x32xf32> to vector<8x32xf32>
    %cst_79 = arith.constant dense<0.000000e+00> : vector<8x32xf32>
    %159 = tpu.matmul %153, %151, %cst_79 {dimension_numbers = #tpu.dot_dimension_numbers<[1], [0], [0], [1], [0, 0, 1, 1], [], []>} : vector<8x32xf32>, vector<32x32xf32>, vector<8x32xf32> -> vector<8x32xf32>
    %160 = arith.addf %158, %159 : vector<8x32xf32>
    %161 = math.tanh %160 : vector<8x32xf32>
    %c0_80 = arith.constant 0 : index
    %c0_81 = arith.constant 0 : index
    %162 = vector.load %arg19[%c0_80, %c0_81] : memref<64x32xf32, #tpu.memory_space<vmem>>, vector<8x32xf32>
    tpu.vector_store %arg19[%c0_80, %c0_81], %157 {strides = array<i32>} : memref<64x32xf32, #tpu.memory_space<vmem>>, vector<8x32xf32>,
    %c56 = arith.constant 56 : index
    %c0_82 = arith.constant 0 : index
    %163 = vector.load %arg20[%c56, %c0_82] : memref<64x32xf32, #tpu.memory_space<vmem>>, vector<8x32xf32>
    tpu.vector_store %arg20[%c56, %c0_82], %161 {strides = array<i32>} : memref<64x32xf32, #tpu.memory_space<vmem>>, vector<8x32xf32>,
    %164 = vector.extract_strided_slice %140 {offsets = [8, 0], sizes = [8, 32], strides = [1, 1]} : vector<64x32xf32> to vector<8x32xf32>
    %cst_83 = arith.constant dense<0.000000e+00> : vector<8x32xf32>
    %165 = tpu.matmul %157, %149, %cst_83 {dimension_numbers = #tpu.dot_dimension_numbers<[1], [0], [0], [1], [0, 0, 1, 1], [], []>} : vector<8x32xf32>, vector<32x32xf32>, vector<8x32xf32> -> vector<8x32xf32>
    %166 = arith.addf %164, %165 : vector<8x32xf32>
    %167 = math.tanh %166 : vector<8x32xf32>
    %168 = vector.extract_strided_slice %147 {offsets = [48, 0], sizes = [8, 32], strides = [1, 1]} : vector<64x32xf32> to vector<8x32xf32>
    %cst_84 = arith.constant dense<0.000000e+00> : vector<8x32xf32>
    %169 = tpu.matmul %161, %151, %cst_84 {dimension_numbers = #tpu.dot_dimension_numbers<[1], [0], [0], [1], [0, 0, 1, 1], [], []>} : vector<8x32xf32>, vector<32x32xf32>, vector<8x32xf32> -> vector<8x32xf32>
    %170 = arith.addf %168, %169 : vector<8x32xf32>
    %171 = math.tanh %170 : vector<8x32xf32>
    %c8 = arith.constant 8 : index
    %c0_85 = arith.constant 0 : index
    %172 = vector.load %arg19[%c8, %c0_85] : memref<64x32xf32, #tpu.memory_space<vmem>>, vector<8x32xf32>
    tpu.vector_store %arg19[%c8, %c0_85], %167 {strides = array<i32>} : memref<64x32xf32, #tpu.memory_space<vmem>>, vector<8x32xf32>,
    %c48 = arith.constant 48 : index
    %c0_86 = arith.constant 0 : index
    %173 = vector.load %arg20[%c48, %c0_86] : memref<64x32xf32, #tpu.memory_space<vmem>>, vector<8x32xf32>
    tpu.vector_store %arg20[%c48, %c0_86], %171 {strides = array<i32>} : memref<64x32xf32, #tpu.memory_space<vmem>>, vector<8x32xf32>,
    %174 = vector.extract_strided_slice %140 {offsets = [16, 0], sizes = [8, 32], strides = [1, 1]} : vector<64x32xf32> to vector<8x32xf32>
    %cst_87 = arith.constant dense<0.000000e+00> : vector<8x32xf32>
    %175 = tpu.matmul %167, %149, %cst_87 {dimension_numbers = #tpu.dot_dimension_numbers<[1], [0], [0], [1], [0, 0, 1, 1], [], []>} : vector<8x32xf32>, vector<32x32xf32>, vector<8x32xf32> -> vector<8x32xf32>
    %176 = arith.addf %174, %175 : vector<8x32xf32>
    %177 = math.tanh %176 : vector<8x32xf32>
    %178 = vector.extract_strided_slice %147 {offsets = [40, 0], sizes = [8, 32], strides = [1, 1]} : vector<64x32xf32> to vector<8x32xf32>
    %cst_88 = arith.constant dense<0.000000e+00> : vector<8x32xf32>
    %179 = tpu.matmul %171, %151, %cst_88 {dimension_numbers = #tpu.dot_dimension_numbers<[1], [0], [0], [1], [0, 0, 1, 1], [], []>} : vector<8x32xf32>, vector<32x32xf32>, vector<8x32xf32> -> vector<8x32xf32>
    %180 = arith.addf %178, %179 : vector<8x32xf32>
    %181 = math.tanh %180 : vector<8x32xf32>
    %c16 = arith.constant 16 : index
    %c0_89 = arith.constant 0 : index
    %182 = vector.load %arg19[%c16, %c0_89] : memref<64x32xf32, #tpu.memory_space<vmem>>, vector<8x32xf32>
    tpu.vector_store %arg19[%c16, %c0_89], %177 {strides = array<i32>} : memref<64x32xf32, #tpu.memory_space<vmem>>, vector<8x32xf32>,
    %c40 = arith.constant 40 : index
    %c0_90 = arith.constant 0 : index
    %183 = vector.load %arg20[%c40, %c0_90] : memref<64x32xf32, #tpu.memory_space<vmem>>, vector<8x32xf32>
    tpu.vector_store %arg20[%c40, %c0_90], %181 {strides = array<i32>} : memref<64x32xf32, #tpu.memory_space<vmem>>, vector<8x32xf32>,
    %184 = vector.extract_strided_slice %140 {offsets = [24, 0], sizes = [8, 32], strides = [1, 1]} : vector<64x32xf32> to vector<8x32xf32>
    %cst_91 = arith.constant dense<0.000000e+00> : vector<8x32xf32>
    %185 = tpu.matmul %177, %149, %cst_91 {dimension_numbers = #tpu.dot_dimension_numbers<[1], [0], [0], [1], [0, 0, 1, 1], [], []>} : vector<8x32xf32>, vector<32x32xf32>, vector<8x32xf32> -> vector<8x32xf32>
    %186 = arith.addf %184, %185 : vector<8x32xf32>
    %187 = math.tanh %186 : vector<8x32xf32>
    %188 = vector.extract_strided_slice %147 {offsets = [32, 0], sizes = [8, 32], strides = [1, 1]} : vector<64x32xf32> to vector<8x32xf32>
    %cst_92 = arith.constant dense<0.000000e+00> : vector<8x32xf32>
    %189 = tpu.matmul %181, %151, %cst_92 {dimension_numbers = #tpu.dot_dimension_numbers<[1], [0], [0], [1], [0, 0, 1, 1], [], []>} : vector<8x32xf32>, vector<32x32xf32>, vector<8x32xf32> -> vector<8x32xf32>
    %190 = arith.addf %188, %189 : vector<8x32xf32>
    %191 = math.tanh %190 : vector<8x32xf32>
    %c24 = arith.constant 24 : index
    %c0_93 = arith.constant 0 : index
    %192 = vector.load %arg19[%c24, %c0_93] : memref<64x32xf32, #tpu.memory_space<vmem>>, vector<8x32xf32>
    tpu.vector_store %arg19[%c24, %c0_93], %187 {strides = array<i32>} : memref<64x32xf32, #tpu.memory_space<vmem>>, vector<8x32xf32>,
    %c32 = arith.constant 32 : index
    %c0_94 = arith.constant 0 : index
    %193 = vector.load %arg20[%c32, %c0_94] : memref<64x32xf32, #tpu.memory_space<vmem>>, vector<8x32xf32>
    tpu.vector_store %arg20[%c32, %c0_94], %191 {strides = array<i32>} : memref<64x32xf32, #tpu.memory_space<vmem>>, vector<8x32xf32>,
    %194 = vector.extract_strided_slice %140 {offsets = [32, 0], sizes = [8, 32], strides = [1, 1]} : vector<64x32xf32> to vector<8x32xf32>
    %cst_95 = arith.constant dense<0.000000e+00> : vector<8x32xf32>
    %195 = tpu.matmul %187, %149, %cst_95 {dimension_numbers = #tpu.dot_dimension_numbers<[1], [0], [0], [1], [0, 0, 1, 1], [], []>} : vector<8x32xf32>, vector<32x32xf32>, vector<8x32xf32> -> vector<8x32xf32>
    %196 = arith.addf %194, %195 : vector<8x32xf32>
    %197 = math.tanh %196 : vector<8x32xf32>
    %198 = vector.extract_strided_slice %147 {offsets = [24, 0], sizes = [8, 32], strides = [1, 1]} : vector<64x32xf32> to vector<8x32xf32>
    %cst_96 = arith.constant dense<0.000000e+00> : vector<8x32xf32>
    %199 = tpu.matmul %191, %151, %cst_96 {dimension_numbers = #tpu.dot_dimension_numbers<[1], [0], [0], [1], [0, 0, 1, 1], [], []>} : vector<8x32xf32>, vector<32x32xf32>, vector<8x32xf32> -> vector<8x32xf32>
    %200 = arith.addf %198, %199 : vector<8x32xf32>
    %201 = math.tanh %200 : vector<8x32xf32>
    %c32_97 = arith.constant 32 : index
    %c0_98 = arith.constant 0 : index
    %202 = vector.load %arg19[%c32_97, %c0_98] : memref<64x32xf32, #tpu.memory_space<vmem>>, vector<8x32xf32>
    tpu.vector_store %arg19[%c32_97, %c0_98], %197 {strides = array<i32>} : memref<64x32xf32, #tpu.memory_space<vmem>>, vector<8x32xf32>,
    %c24_99 = arith.constant 24 : index
    %c0_100 = arith.constant 0 : index
    %203 = vector.load %arg20[%c24_99, %c0_100] : memref<64x32xf32, #tpu.memory_space<vmem>>, vector<8x32xf32>
    tpu.vector_store %arg20[%c24_99, %c0_100], %201 {strides = array<i32>} : memref<64x32xf32, #tpu.memory_space<vmem>>, vector<8x32xf32>,
    %204 = vector.extract_strided_slice %140 {offsets = [40, 0], sizes = [8, 32], strides = [1, 1]} : vector<64x32xf32> to vector<8x32xf32>
    %cst_101 = arith.constant dense<0.000000e+00> : vector<8x32xf32>
    %205 = tpu.matmul %197, %149, %cst_101 {dimension_numbers = #tpu.dot_dimension_numbers<[1], [0], [0], [1], [0, 0, 1, 1], [], []>} : vector<8x32xf32>, vector<32x32xf32>, vector<8x32xf32> -> vector<8x32xf32>
    %206 = arith.addf %204, %205 : vector<8x32xf32>
    %207 = math.tanh %206 : vector<8x32xf32>
    %208 = vector.extract_strided_slice %147 {offsets = [16, 0], sizes = [8, 32], strides = [1, 1]} : vector<64x32xf32> to vector<8x32xf32>
    %cst_102 = arith.constant dense<0.000000e+00> : vector<8x32xf32>
    %209 = tpu.matmul %201, %151, %cst_102 {dimension_numbers = #tpu.dot_dimension_numbers<[1], [0], [0], [1], [0, 0, 1, 1], [], []>} : vector<8x32xf32>, vector<32x32xf32>, vector<8x32xf32> -> vector<8x32xf32>
    %210 = arith.addf %208, %209 : vector<8x32xf32>
    %211 = math.tanh %210 : vector<8x32xf32>
    %c40_103 = arith.constant 40 : index
    %c0_104 = arith.constant 0 : index
    %212 = vector.load %arg19[%c40_103, %c0_104] : memref<64x32xf32, #tpu.memory_space<vmem>>, vector<8x32xf32>
    tpu.vector_store %arg19[%c40_103, %c0_104], %207 {strides = array<i32>} : memref<64x32xf32, #tpu.memory_space<vmem>>, vector<8x32xf32>,
    %c16_105 = arith.constant 16 : index
    %c0_106 = arith.constant 0 : index
    %213 = vector.load %arg20[%c16_105, %c0_106] : memref<64x32xf32, #tpu.memory_space<vmem>>, vector<8x32xf32>
    tpu.vector_store %arg20[%c16_105, %c0_106], %211 {strides = array<i32>} : memref<64x32xf32, #tpu.memory_space<vmem>>, vector<8x32xf32>,
    %214 = vector.extract_strided_slice %140 {offsets = [48, 0], sizes = [8, 32], strides = [1, 1]} : vector<64x32xf32> to vector<8x32xf32>
    %cst_107 = arith.constant dense<0.000000e+00> : vector<8x32xf32>
    %215 = tpu.matmul %207, %149, %cst_107 {dimension_numbers = #tpu.dot_dimension_numbers<[1], [0], [0], [1], [0, 0, 1, 1], [], []>} : vector<8x32xf32>, vector<32x32xf32>, vector<8x32xf32> -> vector<8x32xf32>
    %216 = arith.addf %214, %215 : vector<8x32xf32>
    %217 = math.tanh %216 : vector<8x32xf32>
    %218 = vector.extract_strided_slice %147 {offsets = [8, 0], sizes = [8, 32], strides = [1, 1]} : vector<64x32xf32> to vector<8x32xf32>
    %cst_108 = arith.constant dense<0.000000e+00> : vector<8x32xf32>
    %219 = tpu.matmul %211, %151, %cst_108 {dimension_numbers = #tpu.dot_dimension_numbers<[1], [0], [0], [1], [0, 0, 1, 1], [], []>} : vector<8x32xf32>, vector<32x32xf32>, vector<8x32xf32> -> vector<8x32xf32>
    %220 = arith.addf %218, %219 : vector<8x32xf32>
    %221 = math.tanh %220 : vector<8x32xf32>
    %c48_109 = arith.constant 48 : index
    %c0_110 = arith.constant 0 : index
    %222 = vector.load %arg19[%c48_109, %c0_110] : memref<64x32xf32, #tpu.memory_space<vmem>>, vector<8x32xf32>
    tpu.vector_store %arg19[%c48_109, %c0_110], %217 {strides = array<i32>} : memref<64x32xf32, #tpu.memory_space<vmem>>, vector<8x32xf32>,
    %c8_111 = arith.constant 8 : index
    %c0_112 = arith.constant 0 : index
    %223 = vector.load %arg20[%c8_111, %c0_112] : memref<64x32xf32, #tpu.memory_space<vmem>>, vector<8x32xf32>
    tpu.vector_store %arg20[%c8_111, %c0_112], %221 {strides = array<i32>} : memref<64x32xf32, #tpu.memory_space<vmem>>, vector<8x32xf32>,
    %224 = vector.extract_strided_slice %140 {offsets = [56, 0], sizes = [8, 32], strides = [1, 1]} : vector<64x32xf32> to vector<8x32xf32>
    %cst_113 = arith.constant dense<0.000000e+00> : vector<8x32xf32>
    %225 = tpu.matmul %217, %149, %cst_113 {dimension_numbers = #tpu.dot_dimension_numbers<[1], [0], [0], [1], [0, 0, 1, 1], [], []>} : vector<8x32xf32>, vector<32x32xf32>, vector<8x32xf32> -> vector<8x32xf32>
    %226 = arith.addf %224, %225 : vector<8x32xf32>
    %227 = math.tanh %226 : vector<8x32xf32>
    %228 = vector.extract_strided_slice %147 {offsets = [0, 0], sizes = [8, 32], strides = [1, 1]} : vector<64x32xf32> to vector<8x32xf32>
    %cst_114 = arith.constant dense<0.000000e+00> : vector<8x32xf32>
    %229 = tpu.matmul %221, %151, %cst_114 {dimension_numbers = #tpu.dot_dimension_numbers<[1], [0], [0], [1], [0, 0, 1, 1], [], []>} : vector<8x32xf32>, vector<32x32xf32>, vector<8x32xf32> -> vector<8x32xf32>
    %230 = arith.addf %228, %229 : vector<8x32xf32>
    %231 = math.tanh %230 : vector<8x32xf32>
    %c56_115 = arith.constant 56 : index
    %c0_116 = arith.constant 0 : index
    %232 = vector.load %arg19[%c56_115, %c0_116] : memref<64x32xf32, #tpu.memory_space<vmem>>, vector<8x32xf32>
    tpu.vector_store %arg19[%c56_115, %c0_116], %227 {strides = array<i32>} : memref<64x32xf32, #tpu.memory_space<vmem>>, vector<8x32xf32>,
    %c0_117 = arith.constant 0 : index
    %c0_118 = arith.constant 0 : index
    %233 = vector.load %arg20[%c0_117, %c0_118] : memref<64x32xf32, #tpu.memory_space<vmem>>, vector<8x32xf32>
    tpu.vector_store %arg20[%c0_117, %c0_118], %231 {strides = array<i32>} : memref<64x32xf32, #tpu.memory_space<vmem>>, vector<8x32xf32>,
    %c0_119 = arith.constant 0 : index
    %c0_120 = arith.constant 0 : index
    %234 = vector.load %arg19[%c0_119, %c0_120] : memref<64x32xf32, #tpu.memory_space<vmem>>, vector<64x32xf32>
    %c0_121 = arith.constant 0 : index
    %c0_122 = arith.constant 0 : index
    %235 = vector.load %arg20[%c0_121, %c0_122] : memref<64x32xf32, #tpu.memory_space<vmem>>, vector<64x32xf32>
    %c0_123 = arith.constant 0 : index
    %c0_124 = arith.constant 0 : index
    %c0_125 = arith.constant 0 : index
    %236 = vector.load %arg10[%c0_123, %c0_124, %c0_125] : memref<2x32x32xf32, #tpu.memory_space<vmem>>, vector<1x32x32xf32>
    %237 = vector.shape_cast %236 : vector<1x32x32xf32> to vector<32x32xf32>
    %cst_126 = arith.constant dense<0.000000e+00> : vector<64x32xf32>
    %238 = tpu.matmul %234, %237, %cst_126 {dimension_numbers = #tpu.dot_dimension_numbers<[1], [0], [0], [1], [0, 0, 1, 1], [], []>} : vector<64x32xf32>, vector<32x32xf32>, vector<64x32xf32> -> vector<64x32xf32>
    %c0_127 = arith.constant 0 : index
    %c0_128 = arith.constant 0 : index
    %c0_129 = arith.constant 0 : index
    %239 = vector.load %arg12[%c0_127, %c0_128, %c0_129] : memref<2x1x32xf32, #tpu.memory_space<vmem>>, vector<1x1x32xf32>
    %240 = vector.shape_cast %239 : vector<1x1x32xf32> to vector<1x32xf32>
    %241 = vector.broadcast %240 : vector<1x32xf32> to vector<64x32xf32>
    %242 = arith.addf %238, %241 : vector<64x32xf32>
    %c1_130 = arith.constant 1 : index
    %c0_131 = arith.constant 0 : index
    %c0_132 = arith.constant 0 : index
    %243 = vector.load %arg10[%c1_130, %c0_131, %c0_132] : memref<2x32x32xf32, #tpu.memory_space<vmem>>, vector<1x32x32xf32>
    %244 = vector.shape_cast %243 : vector<1x32x32xf32> to vector<32x32xf32>
    %cst_133 = arith.constant dense<0.000000e+00> : vector<64x32xf32>
    %245 = tpu.matmul %235, %244, %cst_133 {dimension_numbers = #tpu.dot_dimension_numbers<[1], [0], [0], [1], [0, 0, 1, 1], [], []>} : vector<64x32xf32>, vector<32x32xf32>, vector<64x32xf32> -> vector<64x32xf32>
    %c1_134 = arith.constant 1 : index
    %c0_135 = arith.constant 0 : index
    %c0_136 = arith.constant 0 : index
    %246 = vector.load %arg12[%c1_134, %c0_135, %c0_136] : memref<2x1x32xf32, #tpu.memory_space<vmem>>, vector<1x1x32xf32>
    %247 = vector.shape_cast %246 : vector<1x1x32xf32> to vector<1x32xf32>
    %248 = vector.broadcast %247 : vector<1x32xf32> to vector<64x32xf32>
    %249 = arith.addf %245, %248 : vector<64x32xf32>
    %c0_137 = arith.constant 0 : index
    %c0_138 = arith.constant 0 : index
    %c0_139 = arith.constant 0 : index
    %250 = vector.load %arg11[%c0_137, %c0_138, %c0_139] : memref<2x32x32xf32, #tpu.memory_space<vmem>>, vector<1x32x32xf32>
    %251 = vector.shape_cast %250 : vector<1x32x32xf32> to vector<32x32xf32>
    %c1_140 = arith.constant 1 : index
    %c0_141 = arith.constant 0 : index
    %c0_142 = arith.constant 0 : index
    %252 = vector.load %arg11[%c1_140, %c0_141, %c0_142] : memref<2x32x32xf32, #tpu.memory_space<vmem>>, vector<1x32x32xf32>
    %253 = vector.shape_cast %252 : vector<1x32x32xf32> to vector<32x32xf32>
    %cst_143 = arith.constant 0.000000e+00 : f32
    %254 = vector.broadcast %cst_143 : f32 to vector<8x32xf32>
    %cst_144 = arith.constant 0.000000e+00 : f32
    %255 = vector.broadcast %cst_144 : f32 to vector<8x32xf32>
    %256 = vector.extract_strided_slice %242 {offsets = [0, 0], sizes = [8, 32], strides = [1, 1]} : vector<64x32xf32> to vector<8x32xf32>
    %cst_145 = arith.constant dense<0.000000e+00> : vector<8x32xf32>
    %257 = tpu.matmul %254, %251, %cst_145 {dimension_numbers = #tpu.dot_dimension_numbers<[1], [0], [0], [1], [0, 0, 1, 1], [], []>} : vector<8x32xf32>, vector<32x32xf32>, vector<8x32xf32> -> vector<8x32xf32>
    %258 = arith.addf %256, %257 : vector<8x32xf32>
    %259 = math.tanh %258 : vector<8x32xf32>
    %260 = vector.extract_strided_slice %249 {offsets = [56, 0], sizes = [8, 32], strides = [1, 1]} : vector<64x32xf32> to vector<8x32xf32>
    %cst_146 = arith.constant dense<0.000000e+00> : vector<8x32xf32>
    %261 = tpu.matmul %255, %253, %cst_146 {dimension_numbers = #tpu.dot_dimension_numbers<[1], [0], [0], [1], [0, 0, 1, 1], [], []>} : vector<8x32xf32>, vector<32x32xf32>, vector<8x32xf32> -> vector<8x32xf32>
    %262 = arith.addf %260, %261 : vector<8x32xf32>
    %263 = math.tanh %262 : vector<8x32xf32>
    %c0_147 = arith.constant 0 : index
    %c0_148 = arith.constant 0 : index
    %264 = vector.load %arg19[%c0_147, %c0_148] : memref<64x32xf32, #tpu.memory_space<vmem>>, vector<8x32xf32>
    tpu.vector_store %arg19[%c0_147, %c0_148], %259 {strides = array<i32>} : memref<64x32xf32, #tpu.memory_space<vmem>>, vector<8x32xf32>,
    %c56_149 = arith.constant 56 : index
    %c0_150 = arith.constant 0 : index
    %265 = vector.load %arg20[%c56_149, %c0_150] : memref<64x32xf32, #tpu.memory_space<vmem>>, vector<8x32xf32>
    tpu.vector_store %arg20[%c56_149, %c0_150], %263 {strides = array<i32>} : memref<64x32xf32, #tpu.memory_space<vmem>>, vector<8x32xf32>,
    %266 = vector.extract_strided_slice %242 {offsets = [8, 0], sizes = [8, 32], strides = [1, 1]} : vector<64x32xf32> to vector<8x32xf32>
    %cst_151 = arith.constant dense<0.000000e+00> : vector<8x32xf32>
    %267 = tpu.matmul %259, %251, %cst_151 {dimension_numbers = #tpu.dot_dimension_numbers<[1], [0], [0], [1], [0, 0, 1, 1], [], []>} : vector<8x32xf32>, vector<32x32xf32>, vector<8x32xf32> -> vector<8x32xf32>
    %268 = arith.addf %266, %267 : vector<8x32xf32>
    %269 = math.tanh %268 : vector<8x32xf32>
    %270 = vector.extract_strided_slice %249 {offsets = [48, 0], sizes = [8, 32], strides = [1, 1]} : vector<64x32xf32> to vector<8x32xf32>
    %cst_152 = arith.constant dense<0.000000e+00> : vector<8x32xf32>
    %271 = tpu.matmul %263, %253, %cst_152 {dimension_numbers = #tpu.dot_dimension_numbers<[1], [0], [0], [1], [0, 0, 1, 1], [], []>} : vector<8x32xf32>, vector<32x32xf32>, vector<8x32xf32> -> vector<8x32xf32>
    %272 = arith.addf %270, %271 : vector<8x32xf32>
    %273 = math.tanh %272 : vector<8x32xf32>
    %c8_153 = arith.constant 8 : index
    %c0_154 = arith.constant 0 : index
    %274 = vector.load %arg19[%c8_153, %c0_154] : memref<64x32xf32, #tpu.memory_space<vmem>>, vector<8x32xf32>
    tpu.vector_store %arg19[%c8_153, %c0_154], %269 {strides = array<i32>} : memref<64x32xf32, #tpu.memory_space<vmem>>, vector<8x32xf32>,
    %c48_155 = arith.constant 48 : index
    %c0_156 = arith.constant 0 : index
    %275 = vector.load %arg20[%c48_155, %c0_156] : memref<64x32xf32, #tpu.memory_space<vmem>>, vector<8x32xf32>
    tpu.vector_store %arg20[%c48_155, %c0_156], %273 {strides = array<i32>} : memref<64x32xf32, #tpu.memory_space<vmem>>, vector<8x32xf32>,
    %276 = vector.extract_strided_slice %242 {offsets = [16, 0], sizes = [8, 32], strides = [1, 1]} : vector<64x32xf32> to vector<8x32xf32>
    %cst_157 = arith.constant dense<0.000000e+00> : vector<8x32xf32>
    %277 = tpu.matmul %269, %251, %cst_157 {dimension_numbers = #tpu.dot_dimension_numbers<[1], [0], [0], [1], [0, 0, 1, 1], [], []>} : vector<8x32xf32>, vector<32x32xf32>, vector<8x32xf32> -> vector<8x32xf32>
    %278 = arith.addf %276, %277 : vector<8x32xf32>
    %279 = math.tanh %278 : vector<8x32xf32>
    %280 = vector.extract_strided_slice %249 {offsets = [40, 0], sizes = [8, 32], strides = [1, 1]} : vector<64x32xf32> to vector<8x32xf32>
    %cst_158 = arith.constant dense<0.000000e+00> : vector<8x32xf32>
    %281 = tpu.matmul %273, %253, %cst_158 {dimension_numbers = #tpu.dot_dimension_numbers<[1], [0], [0], [1], [0, 0, 1, 1], [], []>} : vector<8x32xf32>, vector<32x32xf32>, vector<8x32xf32> -> vector<8x32xf32>
    %282 = arith.addf %280, %281 : vector<8x32xf32>
    %283 = math.tanh %282 : vector<8x32xf32>
    %c16_159 = arith.constant 16 : index
    %c0_160 = arith.constant 0 : index
    %284 = vector.load %arg19[%c16_159, %c0_160] : memref<64x32xf32, #tpu.memory_space<vmem>>, vector<8x32xf32>
    tpu.vector_store %arg19[%c16_159, %c0_160], %279 {strides = array<i32>} : memref<64x32xf32, #tpu.memory_space<vmem>>, vector<8x32xf32>,
    %c40_161 = arith.constant 40 : index
    %c0_162 = arith.constant 0 : index
    %285 = vector.load %arg20[%c40_161, %c0_162] : memref<64x32xf32, #tpu.memory_space<vmem>>, vector<8x32xf32>
    tpu.vector_store %arg20[%c40_161, %c0_162], %283 {strides = array<i32>} : memref<64x32xf32, #tpu.memory_space<vmem>>, vector<8x32xf32>,
    %286 = vector.extract_strided_slice %242 {offsets = [24, 0], sizes = [8, 32], strides = [1, 1]} : vector<64x32xf32> to vector<8x32xf32>
    %cst_163 = arith.constant dense<0.000000e+00> : vector<8x32xf32>
    %287 = tpu.matmul %279, %251, %cst_163 {dimension_numbers = #tpu.dot_dimension_numbers<[1], [0], [0], [1], [0, 0, 1, 1], [], []>} : vector<8x32xf32>, vector<32x32xf32>, vector<8x32xf32> -> vector<8x32xf32>
    %288 = arith.addf %286, %287 : vector<8x32xf32>
    %289 = math.tanh %288 : vector<8x32xf32>
    %290 = vector.extract_strided_slice %249 {offsets = [32, 0], sizes = [8, 32], strides = [1, 1]} : vector<64x32xf32> to vector<8x32xf32>
    %cst_164 = arith.constant dense<0.000000e+00> : vector<8x32xf32>
    %291 = tpu.matmul %283, %253, %cst_164 {dimension_numbers = #tpu.dot_dimension_numbers<[1], [0], [0], [1], [0, 0, 1, 1], [], []>} : vector<8x32xf32>, vector<32x32xf32>, vector<8x32xf32> -> vector<8x32xf32>
    %292 = arith.addf %290, %291 : vector<8x32xf32>
    %293 = math.tanh %292 : vector<8x32xf32>
    %c24_165 = arith.constant 24 : index
    %c0_166 = arith.constant 0 : index
    %294 = vector.load %arg19[%c24_165, %c0_166] : memref<64x32xf32, #tpu.memory_space<vmem>>, vector<8x32xf32>
    tpu.vector_store %arg19[%c24_165, %c0_166], %289 {strides = array<i32>} : memref<64x32xf32, #tpu.memory_space<vmem>>, vector<8x32xf32>,
    %c32_167 = arith.constant 32 : index
    %c0_168 = arith.constant 0 : index
    %295 = vector.load %arg20[%c32_167, %c0_168] : memref<64x32xf32, #tpu.memory_space<vmem>>, vector<8x32xf32>
    tpu.vector_store %arg20[%c32_167, %c0_168], %293 {strides = array<i32>} : memref<64x32xf32, #tpu.memory_space<vmem>>, vector<8x32xf32>,
    %296 = vector.extract_strided_slice %242 {offsets = [32, 0], sizes = [8, 32], strides = [1, 1]} : vector<64x32xf32> to vector<8x32xf32>
    %cst_169 = arith.constant dense<0.000000e+00> : vector<8x32xf32>
    %297 = tpu.matmul %289, %251, %cst_169 {dimension_numbers = #tpu.dot_dimension_numbers<[1], [0], [0], [1], [0, 0, 1, 1], [], []>} : vector<8x32xf32>, vector<32x32xf32>, vector<8x32xf32> -> vector<8x32xf32>
    %298 = arith.addf %296, %297 : vector<8x32xf32>
    %299 = math.tanh %298 : vector<8x32xf32>
    %300 = vector.extract_strided_slice %249 {offsets = [24, 0], sizes = [8, 32], strides = [1, 1]} : vector<64x32xf32> to vector<8x32xf32>
    %cst_170 = arith.constant dense<0.000000e+00> : vector<8x32xf32>
    %301 = tpu.matmul %293, %253, %cst_170 {dimension_numbers = #tpu.dot_dimension_numbers<[1], [0], [0], [1], [0, 0, 1, 1], [], []>} : vector<8x32xf32>, vector<32x32xf32>, vector<8x32xf32> -> vector<8x32xf32>
    %302 = arith.addf %300, %301 : vector<8x32xf32>
    %303 = math.tanh %302 : vector<8x32xf32>
    %c32_171 = arith.constant 32 : index
    %c0_172 = arith.constant 0 : index
    %304 = vector.load %arg19[%c32_171, %c0_172] : memref<64x32xf32, #tpu.memory_space<vmem>>, vector<8x32xf32>
    tpu.vector_store %arg19[%c32_171, %c0_172], %299 {strides = array<i32>} : memref<64x32xf32, #tpu.memory_space<vmem>>, vector<8x32xf32>,
    %c24_173 = arith.constant 24 : index
    %c0_174 = arith.constant 0 : index
    %305 = vector.load %arg20[%c24_173, %c0_174] : memref<64x32xf32, #tpu.memory_space<vmem>>, vector<8x32xf32>
    tpu.vector_store %arg20[%c24_173, %c0_174], %303 {strides = array<i32>} : memref<64x32xf32, #tpu.memory_space<vmem>>, vector<8x32xf32>,
    %306 = vector.extract_strided_slice %242 {offsets = [40, 0], sizes = [8, 32], strides = [1, 1]} : vector<64x32xf32> to vector<8x32xf32>
    %cst_175 = arith.constant dense<0.000000e+00> : vector<8x32xf32>
    %307 = tpu.matmul %299, %251, %cst_175 {dimension_numbers = #tpu.dot_dimension_numbers<[1], [0], [0], [1], [0, 0, 1, 1], [], []>} : vector<8x32xf32>, vector<32x32xf32>, vector<8x32xf32> -> vector<8x32xf32>
    %308 = arith.addf %306, %307 : vector<8x32xf32>
    %309 = math.tanh %308 : vector<8x32xf32>
    %310 = vector.extract_strided_slice %249 {offsets = [16, 0], sizes = [8, 32], strides = [1, 1]} : vector<64x32xf32> to vector<8x32xf32>
    %cst_176 = arith.constant dense<0.000000e+00> : vector<8x32xf32>
    %311 = tpu.matmul %303, %253, %cst_176 {dimension_numbers = #tpu.dot_dimension_numbers<[1], [0], [0], [1], [0, 0, 1, 1], [], []>} : vector<8x32xf32>, vector<32x32xf32>, vector<8x32xf32> -> vector<8x32xf32>
    %312 = arith.addf %310, %311 : vector<8x32xf32>
    %313 = math.tanh %312 : vector<8x32xf32>
    %c40_177 = arith.constant 40 : index
    %c0_178 = arith.constant 0 : index
    %314 = vector.load %arg19[%c40_177, %c0_178] : memref<64x32xf32, #tpu.memory_space<vmem>>, vector<8x32xf32>
    tpu.vector_store %arg19[%c40_177, %c0_178], %309 {strides = array<i32>} : memref<64x32xf32, #tpu.memory_space<vmem>>, vector<8x32xf32>,
    %c16_179 = arith.constant 16 : index
    %c0_180 = arith.constant 0 : index
    %315 = vector.load %arg20[%c16_179, %c0_180] : memref<64x32xf32, #tpu.memory_space<vmem>>, vector<8x32xf32>
    tpu.vector_store %arg20[%c16_179, %c0_180], %313 {strides = array<i32>} : memref<64x32xf32, #tpu.memory_space<vmem>>, vector<8x32xf32>,
    %316 = vector.extract_strided_slice %242 {offsets = [48, 0], sizes = [8, 32], strides = [1, 1]} : vector<64x32xf32> to vector<8x32xf32>
    %cst_181 = arith.constant dense<0.000000e+00> : vector<8x32xf32>
    %317 = tpu.matmul %309, %251, %cst_181 {dimension_numbers = #tpu.dot_dimension_numbers<[1], [0], [0], [1], [0, 0, 1, 1], [], []>} : vector<8x32xf32>, vector<32x32xf32>, vector<8x32xf32> -> vector<8x32xf32>
    %318 = arith.addf %316, %317 : vector<8x32xf32>
    %319 = math.tanh %318 : vector<8x32xf32>
    %320 = vector.extract_strided_slice %249 {offsets = [8, 0], sizes = [8, 32], strides = [1, 1]} : vector<64x32xf32> to vector<8x32xf32>
    %cst_182 = arith.constant dense<0.000000e+00> : vector<8x32xf32>
    %321 = tpu.matmul %313, %253, %cst_182 {dimension_numbers = #tpu.dot_dimension_numbers<[1], [0], [0], [1], [0, 0, 1, 1], [], []>} : vector<8x32xf32>, vector<32x32xf32>, vector<8x32xf32> -> vector<8x32xf32>
    %322 = arith.addf %320, %321 : vector<8x32xf32>
    %323 = math.tanh %322 : vector<8x32xf32>
    %c48_183 = arith.constant 48 : index
    %c0_184 = arith.constant 0 : index
    %324 = vector.load %arg19[%c48_183, %c0_184] : memref<64x32xf32, #tpu.memory_space<vmem>>, vector<8x32xf32>
    tpu.vector_store %arg19[%c48_183, %c0_184], %319 {strides = array<i32>} : memref<64x32xf32, #tpu.memory_space<vmem>>, vector<8x32xf32>,
    %c8_185 = arith.constant 8 : index
    %c0_186 = arith.constant 0 : index
    %325 = vector.load %arg20[%c8_185, %c0_186] : memref<64x32xf32, #tpu.memory_space<vmem>>, vector<8x32xf32>
    tpu.vector_store %arg20[%c8_185, %c0_186], %323 {strides = array<i32>} : memref<64x32xf32, #tpu.memory_space<vmem>>, vector<8x32xf32>,
    %326 = vector.extract_strided_slice %242 {offsets = [56, 0], sizes = [8, 32], strides = [1, 1]} : vector<64x32xf32> to vector<8x32xf32>
    %cst_187 = arith.constant dense<0.000000e+00> : vector<8x32xf32>
    %327 = tpu.matmul %319, %251, %cst_187 {dimension_numbers = #tpu.dot_dimension_numbers<[1], [0], [0], [1], [0, 0, 1, 1], [], []>} : vector<8x32xf32>, vector<32x32xf32>, vector<8x32xf32> -> vector<8x32xf32>
    %328 = arith.addf %326, %327 : vector<8x32xf32>
    %329 = math.tanh %328 : vector<8x32xf32>
    %330 = vector.extract_strided_slice %249 {offsets = [0, 0], sizes = [8, 32], strides = [1, 1]} : vector<64x32xf32> to vector<8x32xf32>
    %cst_188 = arith.constant dense<0.000000e+00> : vector<8x32xf32>
    %331 = tpu.matmul %323, %253, %cst_188 {dimension_numbers = #tpu.dot_dimension_numbers<[1], [0], [0], [1], [0, 0, 1, 1], [], []>} : vector<8x32xf32>, vector<32x32xf32>, vector<8x32xf32> -> vector<8x32xf32>
    %332 = arith.addf %330, %331 : vector<8x32xf32>
    %333 = math.tanh %332 : vector<8x32xf32>
    %c56_189 = arith.constant 56 : index
    %c0_190 = arith.constant 0 : index
    %334 = vector.load %arg19[%c56_189, %c0_190] : memref<64x32xf32, #tpu.memory_space<vmem>>, vector<8x32xf32>
    tpu.vector_store %arg19[%c56_189, %c0_190], %329 {strides = array<i32>} : memref<64x32xf32, #tpu.memory_space<vmem>>, vector<8x32xf32>,
    %c0_191 = arith.constant 0 : index
    %c0_192 = arith.constant 0 : index
    %335 = vector.load %arg20[%c0_191, %c0_192] : memref<64x32xf32, #tpu.memory_space<vmem>>, vector<8x32xf32>
    tpu.vector_store %arg20[%c0_191, %c0_192], %333 {strides = array<i32>} : memref<64x32xf32, #tpu.memory_space<vmem>>, vector<8x32xf32>,
    %336 = tpu.iota {dimensions = array<i32: 1>} : vector<1x8xi32>
    %c4_i32 = arith.constant 4 : i32
    %337 = vector.broadcast %c4_i32 : i32 to vector<1x8xi32>
    %338 = arith.cmpi sge, %336, %337 : vector<1x8xi32>
    %c0_193 = arith.constant 0 : index
    %c0_194 = arith.constant 0 : index
    %c0_195 = arith.constant 0 : index
    %339 = vector.load %arg17[%c0_193, %c0_194, %c0_195] : memref<2x16x32xf32, #tpu.memory_space<vmem>>, vector<1x16x32xf32>
    %340 = vector.shape_cast %339 : vector<1x16x32xf32> to vector<16x32xf32>
    %c0_196 = arith.constant 0 : index
    %c0_197 = arith.constant 0 : index
    %c0_198 = arith.constant 0 : index
    %341 = vector.load %arg13[%c0_196, %c0_197, %c0_198] : memref<2x32x32xf32, #tpu.memory_space<vmem>>, vector<1x32x32xf32>
    %342 = vector.shape_cast %341 : vector<1x32x32xf32> to vector<32x32xf32>
    %cst_199 = arith.constant dense<0.000000e+00> : vector<16x32xf32>
    %343 = tpu.matmul %340, %342, %cst_199 {dimension_numbers = #tpu.dot_dimension_numbers<[1], [0], [0], [1], [0, 0, 1, 1], [], []>} : vector<16x32xf32>, vector<32x32xf32>, vector<16x32xf32> -> vector<16x32xf32>
    %c0_200 = arith.constant 0 : index
    %c0_201 = arith.constant 0 : index
    %c0_202 = arith.constant 0 : index
    %344 = vector.load %arg14[%c0_200, %c0_201, %c0_202] : memref<2x1x32xf32, #tpu.memory_space<vmem>>, vector<1x1x32xf32>
    %345 = vector.shape_cast %344 : vector<1x1x32xf32> to vector<1x32xf32>
    %346 = vector.broadcast %345 : vector<1x32xf32> to vector<16x32xf32>
    %347 = arith.addf %343, %346 : vector<16x32xf32>
    %cst_203 = arith.constant 0.000000e+00 : f32
    %348 = vector.broadcast %cst_203 : f32 to vector<16x32xf32>
    %349 = arith.maximumf %347, %348 : vector<16x32xf32>
    %c0_204 = arith.constant 0 : index
    %c0_205 = arith.constant 0 : index
    %c0_206 = arith.constant 0 : index
    %350 = vector.load %arg15[%c0_204, %c0_205, %c0_206] : memref<2x32x8xf32, #tpu.memory_space<vmem>>, vector<1x32x8xf32>
    %351 = vector.shape_cast %350 : vector<1x32x8xf32> to vector<32x8xf32>
    %cst_207 = arith.constant dense<0.000000e+00> : vector<16x8xf32>
    %352 = tpu.matmul %349, %351, %cst_207 {dimension_numbers = #tpu.dot_dimension_numbers<[1], [0], [0], [1], [0, 0, 1, 1], [], []>} : vector<16x32xf32>, vector<32x8xf32>, vector<16x8xf32> -> vector<16x8xf32>
    %c0_208 = arith.constant 0 : index
    %c0_209 = arith.constant 0 : index
    %c0_210 = arith.constant 0 : index
    %353 = vector.load %arg16[%c0_208, %c0_209, %c0_210] : memref<2x1x8xf32, #tpu.memory_space<vmem>>, vector<1x1x8xf32>
    %354 = vector.shape_cast %353 : vector<1x1x8xf32> to vector<1x8xf32>
    %355 = vector.broadcast %354 : vector<1x8xf32> to vector<16x8xf32>
    %356 = arith.addf %352, %355 : vector<16x8xf32>
    %cst_211 = arith.constant 2.000000e+01 : f32
    %357 = vector.broadcast %cst_211 : f32 to vector<16x8xf32>
    %358 = arith.cmpf ogt, %356, %357 : vector<16x8xf32>
    %cst_212 = arith.constant 2.000000e+01 : f32
    %359 = vector.broadcast %cst_212 : f32 to vector<16x8xf32>
    %360 = arith.minimumf %356, %359 : vector<16x8xf32>
    %361 = math.exp %360 : vector<16x8xf32>
    %362 = math.log1p %361 : vector<16x8xf32>
    %363 = arith.select %358, %356, %362 : vector<16x8xi1>, vector<16x8xf32>
    %364 = vector.shape_cast %338 : vector<1x8xi1> to vector<1x8xi1>
    %365 = vector.broadcast %364 : vector<1x8xi1> to vector<16x8xi1>
    %366 = arith.select %365, %363, %356 : vector<16x8xi1>, vector<16x8xf32>
    %367 = vector.extract_strided_slice %366 {offsets = [8, 0], sizes = [8, 8], strides = [1, 1]} : vector<16x8xf32> to vector<8x8xf32>
    %368 = vector.extract_strided_slice %366 {offsets = [0, 0], sizes = [8, 8], strides = [1, 1]} : vector<16x8xf32> to vector<8x8xf32>
    %369 = vector.shape_cast %338 : vector<1x8xi1> to vector<1x8xi1>
    %370 = vector.broadcast %369 : vector<1x8xi1> to vector<8x8xi1>
    %371 = arith.select %370, %367, %368 : vector<8x8xi1>, vector<8x8xf32>
    %c0_213 = arith.constant 0 : index
    %c0_214 = arith.constant 0 : index
    %c0_215 = arith.constant 0 : index
    %372 = vector.load %arg18[%c0_213, %c0_214, %c0_215] : memref<2x64x8xf32, #tpu.memory_space<vmem>>, vector<1x8x8xf32>
    %373 = vector.shape_cast %372 : vector<1x8x8xf32> to vector<8x8xf32>
    %374 = vector.shape_cast %371 : vector<8x8xf32> to vector<1x8x8xf32>
    tpu.vector_store %arg18[%c0_213, %c0_214, %c0_215], %374 {strides = array<i32>} : memref<2x64x8xf32, #tpu.memory_space<vmem>>, vector<1x8x8xf32>,
    %c0_216 = arith.constant 0 : index
    %c0_217 = arith.constant 0 : index
    %375 = vector.load %arg19[%c0_216, %c0_217] : memref<64x32xf32, #tpu.memory_space<vmem>>, vector<56x32xf32>
    %c0_218 = arith.constant 0 : index
    %c0_219 = arith.constant 0 : index
    %c0_220 = arith.constant 0 : index
    %376 = vector.load %arg13[%c0_218, %c0_219, %c0_220] : memref<2x32x32xf32, #tpu.memory_space<vmem>>, vector<1x32x32xf32>
    %377 = vector.shape_cast %376 : vector<1x32x32xf32> to vector<32x32xf32>
    %cst_221 = arith.constant dense<0.000000e+00> : vector<56x32xf32>
    %378 = tpu.matmul %375, %377, %cst_221 {dimension_numbers = #tpu.dot_dimension_numbers<[1], [0], [0], [1], [0, 0, 1, 1], [], []>} : vector<56x32xf32>, vector<32x32xf32>, vector<56x32xf32> -> vector<56x32xf32>
    %c0_222 = arith.constant 0 : index
    %c0_223 = arith.constant 0 : index
    %c0_224 = arith.constant 0 : index
    %379 = vector.load %arg14[%c0_222, %c0_223, %c0_224] : memref<2x1x32xf32, #tpu.memory_space<vmem>>, vector<1x1x32xf32>
    %380 = vector.shape_cast %379 : vector<1x1x32xf32> to vector<1x32xf32>
    %381 = vector.broadcast %380 : vector<1x32xf32> to vector<56x32xf32>
    %382 = arith.addf %378, %381 : vector<56x32xf32>
    %cst_225 = arith.constant 0.000000e+00 : f32
    %383 = vector.broadcast %cst_225 : f32 to vector<56x32xf32>
    %384 = arith.maximumf %382, %383 : vector<56x32xf32>
    %c0_226 = arith.constant 0 : index
    %c0_227 = arith.constant 0 : index
    %c0_228 = arith.constant 0 : index
    %385 = vector.load %arg15[%c0_226, %c0_227, %c0_228] : memref<2x32x8xf32, #tpu.memory_space<vmem>>, vector<1x32x8xf32>
    %386 = vector.shape_cast %385 : vector<1x32x8xf32> to vector<32x8xf32>
    %cst_229 = arith.constant dense<0.000000e+00> : vector<56x8xf32>
    %387 = tpu.matmul %384, %386, %cst_229 {dimension_numbers = #tpu.dot_dimension_numbers<[1], [0], [0], [1], [0, 0, 1, 1], [], []>} : vector<56x32xf32>, vector<32x8xf32>, vector<56x8xf32> -> vector<56x8xf32>
    %c0_230 = arith.constant 0 : index
    %c0_231 = arith.constant 0 : index
    %c0_232 = arith.constant 0 : index
    %388 = vector.load %arg16[%c0_230, %c0_231, %c0_232] : memref<2x1x8xf32, #tpu.memory_space<vmem>>, vector<1x1x8xf32>
    %389 = vector.shape_cast %388 : vector<1x1x8xf32> to vector<1x8xf32>
    %390 = vector.broadcast %389 : vector<1x8xf32> to vector<56x8xf32>
    %391 = arith.addf %387, %390 : vector<56x8xf32>
    %cst_233 = arith.constant 2.000000e+01 : f32
    %392 = vector.broadcast %cst_233 : f32 to vector<56x8xf32>
    %393 = arith.cmpf ogt, %391, %392 : vector<56x8xf32>
    %cst_234 = arith.constant 2.000000e+01 : f32
    %394 = vector.broadcast %cst_234 : f32 to vector<56x8xf32>
    %395 = arith.minimumf %391, %394 : vector<56x8xf32>
    %396 = math.exp %395 : vector<56x8xf32>
    %397 = math.log1p %396 : vector<56x8xf32>
    %398 = arith.select %393, %391, %397 : vector<56x8xi1>, vector<56x8xf32>
    %399 = vector.shape_cast %338 : vector<1x8xi1> to vector<1x8xi1>
    %400 = vector.broadcast %399 : vector<1x8xi1> to vector<56x8xi1>
    %401 = arith.select %400, %398, %391 : vector<56x8xi1>, vector<56x8xf32>
    %c0_235 = arith.constant 0 : index
    %c8_236 = arith.constant 8 : index
    %c0_237 = arith.constant 0 : index
    %402 = vector.load %arg18[%c0_235, %c8_236, %c0_237] : memref<2x64x8xf32, #tpu.memory_space<vmem>>, vector<1x56x8xf32>
    %403 = vector.shape_cast %402 : vector<1x56x8xf32> to vector<56x8xf32>
    %404 = vector.shape_cast %401 : vector<56x8xf32> to vector<1x56x8xf32>
    tpu.vector_store %arg18[%c0_235, %c8_236, %c0_237], %404 {strides = array<i32>} : memref<2x64x8xf32, #tpu.memory_space<vmem>>, vector<1x56x8xf32>,
    %c1_238 = arith.constant 1 : index
    %c0_239 = arith.constant 0 : index
    %c0_240 = arith.constant 0 : index
    %405 = vector.load %arg17[%c1_238, %c0_239, %c0_240] : memref<2x16x32xf32, #tpu.memory_space<vmem>>, vector<1x16x32xf32>
    %406 = vector.shape_cast %405 : vector<1x16x32xf32> to vector<16x32xf32>
    %c1_241 = arith.constant 1 : index
    %c0_242 = arith.constant 0 : index
    %c0_243 = arith.constant 0 : index
    %407 = vector.load %arg13[%c1_241, %c0_242, %c0_243] : memref<2x32x32xf32, #tpu.memory_space<vmem>>, vector<1x32x32xf32>
    %408 = vector.shape_cast %407 : vector<1x32x32xf32> to vector<32x32xf32>
    %cst_244 = arith.constant dense<0.000000e+00> : vector<16x32xf32>
    %409 = tpu.matmul %406, %408, %cst_244 {dimension_numbers = #tpu.dot_dimension_numbers<[1], [0], [0], [1], [0, 0, 1, 1], [], []>} : vector<16x32xf32>, vector<32x32xf32>, vector<16x32xf32> -> vector<16x32xf32>
    %c1_245 = arith.constant 1 : index
    %c0_246 = arith.constant 0 : index
    %c0_247 = arith.constant 0 : index
    %410 = vector.load %arg14[%c1_245, %c0_246, %c0_247] : memref<2x1x32xf32, #tpu.memory_space<vmem>>, vector<1x1x32xf32>
    %411 = vector.shape_cast %410 : vector<1x1x32xf32> to vector<1x32xf32>
    %412 = vector.broadcast %411 : vector<1x32xf32> to vector<16x32xf32>
    %413 = arith.addf %409, %412 : vector<16x32xf32>
    %cst_248 = arith.constant 0.000000e+00 : f32
    %414 = vector.broadcast %cst_248 : f32 to vector<16x32xf32>
    %415 = arith.maximumf %413, %414 : vector<16x32xf32>
    %c1_249 = arith.constant 1 : index
    %c0_250 = arith.constant 0 : index
    %c0_251 = arith.constant 0 : index
    %416 = vector.load %arg15[%c1_249, %c0_250, %c0_251] : memref<2x32x8xf32, #tpu.memory_space<vmem>>, vector<1x32x8xf32>
    %417 = vector.shape_cast %416 : vector<1x32x8xf32> to vector<32x8xf32>
    %cst_252 = arith.constant dense<0.000000e+00> : vector<16x8xf32>
    %418 = tpu.matmul %415, %417, %cst_252 {dimension_numbers = #tpu.dot_dimension_numbers<[1], [0], [0], [1], [0, 0, 1, 1], [], []>} : vector<16x32xf32>, vector<32x8xf32>, vector<16x8xf32> -> vector<16x8xf32>
    %c1_253 = arith.constant 1 : index
    %c0_254 = arith.constant 0 : index
    %c0_255 = arith.constant 0 : index
    %419 = vector.load %arg16[%c1_253, %c0_254, %c0_255] : memref<2x1x8xf32, #tpu.memory_space<vmem>>, vector<1x1x8xf32>
    %420 = vector.shape_cast %419 : vector<1x1x8xf32> to vector<1x8xf32>
    %421 = vector.broadcast %420 : vector<1x8xf32> to vector<16x8xf32>
    %422 = arith.addf %418, %421 : vector<16x8xf32>
    %cst_256 = arith.constant 2.000000e+01 : f32
    %423 = vector.broadcast %cst_256 : f32 to vector<16x8xf32>
    %424 = arith.cmpf ogt, %422, %423 : vector<16x8xf32>
    %cst_257 = arith.constant 2.000000e+01 : f32
    %425 = vector.broadcast %cst_257 : f32 to vector<16x8xf32>
    %426 = arith.minimumf %422, %425 : vector<16x8xf32>
    %427 = math.exp %426 : vector<16x8xf32>
    %428 = math.log1p %427 : vector<16x8xf32>
    %429 = arith.select %424, %422, %428 : vector<16x8xi1>, vector<16x8xf32>
    %430 = vector.shape_cast %338 : vector<1x8xi1> to vector<1x8xi1>
    %431 = vector.broadcast %430 : vector<1x8xi1> to vector<16x8xi1>
    %432 = arith.select %431, %429, %422 : vector<16x8xi1>, vector<16x8xf32>
    %c8_258 = arith.constant 8 : index
    %c0_259 = arith.constant 0 : index
    %433 = vector.load %arg20[%c8_258, %c0_259] : memref<64x32xf32, #tpu.memory_space<vmem>>, vector<56x32xf32>
    %c1_260 = arith.constant 1 : index
    %c0_261 = arith.constant 0 : index
    %c0_262 = arith.constant 0 : index
    %434 = vector.load %arg13[%c1_260, %c0_261, %c0_262] : memref<2x32x32xf32, #tpu.memory_space<vmem>>, vector<1x32x32xf32>
    %435 = vector.shape_cast %434 : vector<1x32x32xf32> to vector<32x32xf32>
    %cst_263 = arith.constant dense<0.000000e+00> : vector<56x32xf32>
    %436 = tpu.matmul %433, %435, %cst_263 {dimension_numbers = #tpu.dot_dimension_numbers<[1], [0], [0], [1], [0, 0, 1, 1], [], []>} : vector<56x32xf32>, vector<32x32xf32>, vector<56x32xf32> -> vector<56x32xf32>
    %c1_264 = arith.constant 1 : index
    %c0_265 = arith.constant 0 : index
    %c0_266 = arith.constant 0 : index
    %437 = vector.load %arg14[%c1_264, %c0_265, %c0_266] : memref<2x1x32xf32, #tpu.memory_space<vmem>>, vector<1x1x32xf32>
    %438 = vector.shape_cast %437 : vector<1x1x32xf32> to vector<1x32xf32>
    %439 = vector.broadcast %438 : vector<1x32xf32> to vector<56x32xf32>
    %440 = arith.addf %436, %439 : vector<56x32xf32>
    %cst_267 = arith.constant 0.000000e+00 : f32
    %441 = vector.broadcast %cst_267 : f32 to vector<56x32xf32>
    %442 = arith.maximumf %440, %441 : vector<56x32xf32>
    %c1_268 = arith.constant 1 : index
    %c0_269 = arith.constant 0 : index
    %c0_270 = arith.constant 0 : index
    %443 = vector.load %arg15[%c1_268, %c0_269, %c0_270] : memref<2x32x8xf32, #tpu.memory_space<vmem>>, vector<1x32x8xf32>
    %444 = vector.shape_cast %443 : vector<1x32x8xf32> to vector<32x8xf32>
    %cst_271 = arith.constant dense<0.000000e+00> : vector<56x8xf32>
    %445 = tpu.matmul %442, %444, %cst_271 {dimension_numbers = #tpu.dot_dimension_numbers<[1], [0], [0], [1], [0, 0, 1, 1], [], []>} : vector<56x32xf32>, vector<32x8xf32>, vector<56x8xf32> -> vector<56x8xf32>
    %c1_272 = arith.constant 1 : index
    %c0_273 = arith.constant 0 : index
    %c0_274 = arith.constant 0 : index
    %446 = vector.load %arg16[%c1_272, %c0_273, %c0_274] : memref<2x1x8xf32, #tpu.memory_space<vmem>>, vector<1x1x8xf32>
    %447 = vector.shape_cast %446 : vector<1x1x8xf32> to vector<1x8xf32>
    %448 = vector.broadcast %447 : vector<1x8xf32> to vector<56x8xf32>
    %449 = arith.addf %445, %448 : vector<56x8xf32>
    %cst_275 = arith.constant 2.000000e+01 : f32
    %450 = vector.broadcast %cst_275 : f32 to vector<56x8xf32>
    %451 = arith.cmpf ogt, %449, %450 : vector<56x8xf32>
    %cst_276 = arith.constant 2.000000e+01 : f32
    %452 = vector.broadcast %cst_276 : f32 to vector<56x8xf32>
    %453 = arith.minimumf %449, %452 : vector<56x8xf32>
    %454 = math.exp %453 : vector<56x8xf32>
    %455 = math.log1p %454 : vector<56x8xf32>
    %456 = arith.select %451, %449, %455 : vector<56x8xi1>, vector<56x8xf32>
    %457 = vector.shape_cast %338 : vector<1x8xi1> to vector<1x8xi1>
    %458 = vector.broadcast %457 : vector<1x8xi1> to vector<56x8xi1>
    %459 = arith.select %458, %456, %449 : vector<56x8xi1>, vector<56x8xf32>
    %c1_277 = arith.constant 1 : index
    %c0_278 = arith.constant 0 : index
    %c0_279 = arith.constant 0 : index
    %460 = vector.load %arg18[%c1_277, %c0_278, %c0_279] : memref<2x64x8xf32, #tpu.memory_space<vmem>>, vector<1x56x8xf32>
    %461 = vector.shape_cast %460 : vector<1x56x8xf32> to vector<56x8xf32>
    %462 = vector.shape_cast %459 : vector<56x8xf32> to vector<1x56x8xf32>
    tpu.vector_store %arg18[%c1_277, %c0_278, %c0_279], %462 {strides = array<i32>} : memref<2x64x8xf32, #tpu.memory_space<vmem>>, vector<1x56x8xf32>,
    %463 = vector.extract_strided_slice %432 {offsets = [8, 0], sizes = [8, 8], strides = [1, 1]} : vector<16x8xf32> to vector<8x8xf32>
    %464 = vector.extract_strided_slice %432 {offsets = [0, 0], sizes = [8, 8], strides = [1, 1]} : vector<16x8xf32> to vector<8x8xf32>
    %465 = vector.shape_cast %338 : vector<1x8xi1> to vector<1x8xi1>
    %466 = vector.broadcast %465 : vector<1x8xi1> to vector<8x8xi1>
    %467 = arith.select %466, %463, %464 : vector<8x8xi1>, vector<8x8xf32>
    %c1_280 = arith.constant 1 : index
    %c56_281 = arith.constant 56 : index
    %c0_282 = arith.constant 0 : index
    %468 = vector.load %arg18[%c1_280, %c56_281, %c0_282] : memref<2x64x8xf32, #tpu.memory_space<vmem>>, vector<1x8x8xf32>
    %469 = vector.shape_cast %468 : vector<1x8x8xf32> to vector<8x8xf32>
    %470 = vector.shape_cast %467 : vector<8x8xf32> to vector<1x8x8xf32>
    tpu.vector_store %arg18[%c1_280, %c56_281, %c0_282], %470 {strides = array<i32>} : memref<2x64x8xf32, #tpu.memory_space<vmem>>, vector<1x8x8xf32>,
    return
  }
}

</mosaic_0001>

<bundles_post_ra>
// kernel: sub.1
= control target key start
LH: loop header
LB: loop body
LE: loop exit
PB: predicated region body
PF: predicated region fallthrough
CT: control target
= control target key end

     0   :  { %s56_s0 = inlined_call_operand.vmem [shape: f32[2,8,4], index: 0, kind: input, shape index: {}]   ;;  %s57_s1 = inlined_call_operand.vmem [shape: f32[2,8,4], index: 1, kind: input, shape index: {}]   ;;  %s58_s2 = inlined_call_operand.vmem [shape: f32[2,8,4], index: 2, kind: output, shape index: {}]  }
   0x1   :  { %v3_v0 = vld [vmem:[%s56_s0] sm:$0xf]  ;;  %v20_v2 = vld [vmem:[%s56_s0 + $0x4] sm:$0xf] }
   0x2   :  { %v4_v1 = vld [vmem:[%s57_s1] sm:$0xf]  ;;  %v21_v4 = vld [vmem:[%s57_s1 + $0x4] sm:$0xf] }
   0x3   :  { %v7_v3 = vsub.f32 %v3_v0, %v4_v1  ;;  %v16_v5 = vsub.f32 %v20_v2, %v21_v4 }
   0x5   :  { %9 = vst [vmem:[%s58_s2] sm:$0xf] %v7_v3  ;;  %22 = vst [vmem:[%s58_s2 + $0x4] sm:$0xf] %v16_v5 }

// kernel: rnn_twins_forward.1
= control target key start
LH: loop header
LB: loop body
LE: loop exit
PB: predicated region body
PF: predicated region fallthrough
CT: control target
= control target key end

     0   :  { %s8911_s0 = inlined_call_operand.vmem [shape: f32[64,8], index: 0, kind: input, shape index: {}]   ;;  %s8912_s1 = inlined_call_operand.hbm [shape: f32[2,8,32], index: 1, kind: input, shape index: {}]   ;;  %s8913_s2 = inlined_call_operand.hbm [shape: f32[2,1,32], index: 2, kind: input, shape index: {}]   ;;  %s8914_s3 = inlined_call_operand.hbm [shape: f32[2,1,32], index: 3, kind: input, shape index: {}]   ;;  %s8915_s4 = inlined_call_operand.hbm [shape: f32[2,1,32], index: 4, kind: input, shape index: {}]   ;;  %s8916_s5 = inlined_call_operand.vmem [shape: f32[2,32,8], index: 5, kind: input, shape index: {}]   ;;  %s8917_s6 = inlined_call_operand.hbm [shape: f32[2,1,8], index: 6, kind: input, shape index: {}]   ;;  %s8918_s7 = inlined_call_operand.vmem [shape: f32[2,8,32], index: 7, kind: input, shape index: {}]   ;;  %s8919_s8 = inlined_call_operand.vmem [shape: f32[2,32,32], index: 8, kind: input, shape index: {}]   ;;  %s8920_s9 = inlined_call_operand.hbm [shape: f32[2,1,32], index: 9, kind: input, shape index: {}]   ;;  %s8921_s10 = inlined_call_operand.vmem [shape: f32[2,32,32], index: 10, kind: input, shape index: {}]   ;;  %s8922_s11 = inlined_call_operand.vmem [shape: f32[2,32,32], index: 11, kind: input, shape index: {}]   ;;  %s8923_s12 = inlined_call_operand.vmem [shape: f32[2,1,32], index: 12, kind: input, shape index: {}]   ;;  %s8924_s13 = inlined_call_operand.vmem [shape: f32[2,32,32], index: 13, kind: input, shape index: {}]   ;;  %s8925_s14 = inlined_call_operand.hbm [shape: f32[2,1,32], index: 14, kind: input, shape index: {}]   ;;  %s8926_s15 = inlined_call_operand.vmem [shape: f32[2,32,8], index: 15, kind: input, shape index: {}]   ;;  %s8927_s16 = inlined_call_operand.hbm [shape: f32[2,1,8], index: 16, kind: input, shape index: {}]   ;;  %s8928_s17 = inlined_call_operand.vmem [shape: f32[2,16,32], index: 17, kind: input, shape index: {}]   ;;  %s8929_s18 = inlined_call_operand.vmem [shape: f32[2,64,8], index: 18, kind: output, shape index: {}]  }
   0x1   :  { %8931 = sst [smem:[#allocation22_spill]] %s8911_s0 }
   0x2   :  { %8932 = sst [smem:[#allocation23_spill]] %s8912_s1 }
   0x3   :  { %8933 = sst [smem:[#allocation24_spill]] %s8913_s2 }
   0x4   :  { %23 = vsyncpa [#allocation5], 0 }
   0x5   :  { %24 = vsyncpa [#allocation7], 0 }
   0x6   :  { %25 = vsyncpa [#allocation10], 0 }
   0x7   :  { %26 = vsyncpa [#allocation13], 0 }
   0x8   :  { %27 = vsyncpa [#allocation16], 0  ;;  %s7095_s27 = smov [#allocation6]  }
   0x9   :  { %s47_s28 = sshll.u32 %s7095_s27, 4  ;;  %s48_s28 = int_to_ptr.vmem [resolvable:$true] %s47_s28 }
   0xa   :  { %s6933_s29 = scalar_lea.vmem %s48_s28, 32  ;;  %p6938_p1 = scmp.lt.s32.totalorder %s48_s28, %s48_s28 }
   0xb   :  { %p6934_p0 = scmp.ne.s32.totalorder %s48_s28, %s6933_s29  ;;  %p6939_p2 = scmp.lt.s32.totalorder %s6933_s29, %s6933_s29 }
   0xd   :  { %p6940_p3 = por %p6939_p2, %p6938_p1 }
   0xf   :  { %p6941_p4 = pnand %p6940_p3, %p6934_p0 }
  0x11   :  { %6944 = shalt.err (!%p6941_p4)
}
  0x12   :  { %s7096_s30 = smov 16   ;;  %s7097_s0 = smov 1  }
  0x13   :  { %s8934_s20 = sld [smem:[#allocation24_spill]]  ;;  %s7098_s21 = smov [#allocation9]  }
  0x14   :  { %s71_s22 = sshll.u32 %s7098_s21, 4  ;;  %s7099_s2 = smov [#allocation12]   ;;  %s72_s22 = int_to_ptr.vmem [resolvable:$true] %s71_s22 }
  0x15   :  { %s101_s23 = sshll.u32 %s7099_s2, 4  ;;  %s6953_s24 = scalar_lea.vmem %s72_s22, 32  ;;  %s102_s23 = int_to_ptr.vmem [resolvable:$true] %s101_s23 }
  0x16   :  { %p6954_p5 = scmp.ne.s32.totalorder %s72_s22, %s6953_s24  ;;  %p6958_p6 = scmp.lt.s32.totalorder %s72_s22, %s72_s22 }
  0x17   :  { %p6959_p7 = scmp.lt.s32.totalorder %s6953_s24, %s6953_s24 }
  0x19   :  { %53 = dma.hbm_to_vmem [thread:$0]  %s8934_s20, 32, %s48_s28, [#allocation7], %s7096_s30, %s7096_s30, %s7097_s0  }
  0x1a   :  { %p6960_p8 = por %p6959_p7, %p6958_p6 }
  0x1c   :  { %p6961_p9 = pnand %p6960_p8, %p6954_p5 }
  0x1e   :  { %6964 = shalt.err (!%p6961_p9)
}
  0x1f   :  { %77 = dma.hbm_to_vmem [thread:$0]  %s8915_s4, 32, %s72_s22, [#allocation10], %s7096_s30, %s7096_s30, %s7097_s0  }
  0x20   :  { %s6973_s27 = scalar_lea.vmem %s102_s23, 32  ;;  %p6978_p11 = scmp.lt.s32.totalorder %s102_s23, %s102_s23 }
  0x21   :  { %p6974_p10 = scmp.ne.s32.totalorder %s102_s23, %s6973_s27  ;;  %p6979_p12 = scmp.lt.s32.totalorder %s6973_s27, %s6973_s27 }
  0x23   :  { %p6980_p13 = por %p6979_p12, %p6978_p11 }
  0x25   :  { %p6981_p0 = pnand %p6980_p13, %p6974_p10 }
  0x27   :  { %6984 = shalt.err (!%p6981_p0)
}
  0x28   :  { %107 = dma.hbm_to_vmem [thread:$0]  %s8920_s9, 32, %s102_s23, [#allocation13], %s7096_s30, %s7096_s30, %s7097_s0  }
  0x29   :  { %s7100_s19 = smov [#allocation4]  }
  0x2a   :  { %s35_s1 = sshll.u32 %s7100_s19, 4  ;;  %s36_s1 = int_to_ptr.vmem [resolvable:$true] %s35_s1 }
  0x2b   :  { %s6993_s20 = scalar_lea.vmem %s36_s1, 256  ;;  %p6998_p2 = scmp.lt.s32.totalorder %s36_s1, %s36_s1 }
  0x2c   :  { %p6994_p1 = scmp.ne.s32.totalorder %s36_s1, %s6993_s20  ;;  %p6999_p3 = scmp.lt.s32.totalorder %s6993_s20, %s6993_s20 }
  0x2e   :  { %p7000_p4 = por %p6999_p3, %p6998_p2 }
  0x30   :  { %p7001_p5 = pnand %p7000_p4, %p6994_p1 }
  0x32   :  { %7004 = shalt.err (!%p7001_p5)
}
  0x33   :  { %s7101_s4 = smov 128   ;;  %s7102_s21 = smov 8  }
  0x34   :  { %s8935_s24 = sld [smem:[#allocation23_spill]]  ;;  %s7103_s25 = smov [#allocation8]  }
  0x35   :  { %s59_s26 = sshll.u32 %s7103_s25, 4  ;;  %s7104_s27 = smov [#allocation11]   ;;  %s60_s26 = int_to_ptr.vmem [resolvable:$true] %s59_s26 }
  0x36   :  { %s85_s9 = sshll.u32 %s7104_s27, 4  ;;  %s7013_s23 = scalar_lea.vmem %s60_s26, 32  ;;  %s86_s9 = int_to_ptr.vmem [resolvable:$true] %s85_s9 }
  0x37   :  { %p7014_p6 = scmp.ne.s32.totalorder %s60_s26, %s7013_s23  ;;  %p7018_p7 = scmp.lt.s32.totalorder %s60_s26, %s60_s26 }
  0x38   :  { %p7019_p8 = scmp.lt.s32.totalorder %s7013_s23, %s7013_s23 }
  0x3a   :  { %41 = dma.hbm_to_vmem [thread:$0]  %s8935_s24, 256, %s36_s1, [#allocation5], %s7101_s4, %s7101_s4, %s7102_s21  }
  0x3b   :  { %p7020_p9 = por %p7019_p8, %p7018_p7 }
  0x3d   :  { %p7021_p10 = pnand %p7020_p9, %p7014_p6 }
  0x3f   :  { %7024 = shalt.err (!%p7021_p10)
}
  0x40   :  { %65 = dma.hbm_to_vmem [thread:$0]  %s8914_s3, 32, %s60_s26, [#allocation7], %s7096_s30, %s7096_s30, %s7097_s0  }
  0x41   :  { %s7033_s19 = scalar_lea.vmem %s86_s9, 32  ;;  %p7038_p12 = scmp.lt.s32.totalorder %s86_s9, %s86_s9 }
  0x42   :  { %p7034_p11 = scmp.ne.s32.totalorder %s86_s9, %s7033_s19  ;;  %p7039_p13 = scmp.lt.s32.totalorder %s7033_s19, %s7033_s19 }
  0x44   :  { %p7040_p0 = por %p7039_p13, %p7038_p12 }
  0x46   :  { %p7041_p1 = pnand %p7040_p0, %p7034_p11 }
  0x48   :  { %7044 = shalt.err (!%p7041_p1)
}
  0x49   :  { %91 = dma.hbm_to_vmem [thread:$0]  %s8917_s6, 32, %s86_s9, [#allocation10], %s7096_s30, %s7096_s30, %s7097_s0  }
  0x4a   :  { %s7105_s4 = smov [#allocation14]   ;;  %s7106_s22 = smov [#allocation15]  }
  0x4b   :  { %s121_s21 = sshll.u32 %s7105_s4, 4  ;;  %s135_s2 = sshll.u32 %s7106_s22, 4  ;;  %s122_s21 = int_to_ptr.vmem [resolvable:$true] %s121_s21  ;;  %s136_s2 = int_to_ptr.vmem [resolvable:$true] %s135_s2 }
  0x4c   :  { %s7053_s3 = scalar_lea.vmem %s122_s21, 32  ;;  %p7058_p3 = scmp.lt.s32.totalorder %s122_s21, %s122_s21 }
  0x4d   :  { %p7054_p2 = scmp.ne.s32.totalorder %s122_s21, %s7053_s3  ;;  %p7059_p4 = scmp.lt.s32.totalorder %s7053_s3, %s7053_s3 }
  0x4f   :  { %p7060_p5 = por %p7059_p4, %p7058_p3 }
  0x51   :  { %p7061_p6 = pnand %p7060_p5, %p7054_p2 }
  0x53   :  { %7064 = shalt.err (!%p7061_p6)
}
  0x54   :  { %127 = dma.hbm_to_vmem [thread:$0]  %s8925_s14, 32, %s122_s21, [#allocation13], %s7096_s30, %s7096_s30, %s7097_s0  }
  0x55   :  { %s7073_s6 = scalar_lea.vmem %s136_s2, 32  ;;  %p7078_p8 = scmp.lt.s32.totalorder %s136_s2, %s136_s2 }
  0x56   :  { %p7074_p7 = scmp.ne.s32.totalorder %s136_s2, %s7073_s6  ;;  %p7079_p9 = scmp.lt.s32.totalorder %s7073_s6, %s7073_s6 }
  0x58   :  { %p7080_p10 = por %p7079_p9, %p7078_p8 }
  0x5a   :  { %p7081_p11 = pnand %p7080_p10, %p7074_p7 }
  0x5c   :  { %7084 = shalt.err (!%p7081_p11)
}
  0x5d   :  { %141 = dma.hbm_to_vmem [thread:$0]  %s8927_s16, 32, %s136_s2, [#allocation16], %s7096_s30, %s7096_s30, %s7097_s0  }
  0x5e   :  { %7085 = dma.done.wait [#allocation5], 256  }
  0x5f   :  { %7086 = vsyncadd [#allocation5], 4294967040 }
  0x60   :  { %7087 = dma.done.wait [#allocation7], 64  }
  0x61   :  { %7088 = vsyncadd [#allocation7], 4294967232 }
  0x62   :  { %7089 = dma.done.wait [#allocation10], 64  }
  0x63   :  { %7090 = vsyncadd [#allocation10], 4294967232 }
  0x64   :  { %7091 = dma.done.wait [#allocation13], 64  }
  0x65   :  { %7092 = vsyncadd [#allocation13], 4294967232 }
  0x66   :  { %7093 = dma.done.wait [#allocation16], 32  }
  0x67   :  { %7094 = vsyncadd [#allocation16], 4294967264  ;;  %vm313_vm0 = vcmask 64512   ;;  %v305_v0 = vld [vmem:[#allocation4] sm:$0xff]  ;;  %s8936_s23 = sld [smem:[#allocation22_spill]]  ;;  %v806_v4 = vld [vmem:[#allocation4 + $0x8] sm:$0xff]  ;;  %v176_v10 = vlaneseq }
  0x68   :  { %6019 = vmatprep.subr.mxu0 %v305_v0  ;;  %v572_v13 = vld [vmem:[%s8916_s5 + $0x18] sm:$0xff]  ;;  %v571_v14 = vld [vmem:[%s8916_s5 + $0x10] sm:$0xff]  ;;  %v570_v19 = vld [vmem:[%s8916_s5 + $0x8] sm:$0xff]  ;;  %v7107_v27 = vmov 0.0   ;;  %vm451_vm5 = vcmask 261120   ;;  %vm7108_vm10 = vmmov 0  }
  0x69   :  { %6020 = vmatpush3.msra.mxu0 %v305_v0  ;;  %v177_v11 = vshrl.u32 %v176_v10, 7  ;;  %6033 = vmatprep.subr.mxu1 %v572_v13  ;;  %v569_v20 = vld [vmem:[%s8916_s5] sm:$0xff]  ;;  %v5525_v21 = vld [vmem:[#allocation6] ss:$0 sm:$0xff]  ;;  %v7310_v30 = vld [vmem:[%s8916_s5 + $0x38] sm:$0xff] }
  0x6a   :  { %6053 = vmatprep.subr.mxu0 %v806_v4  ;;  %6034 = vmatpush3.msra.mxu1 %v572_v13 }
  0x6b   :  { %v178_v12 = vadd.s32 8, %v177_v11  ;;  %v180_v16 = vadd.s32 24, %v177_v11  ;;  %6035 = vmatprep.subr.mxu1 %v571_v14  ;;  %v189_v17 = vand.u32 7, %v177_v11  ;;  %v179_v18 = vadd.s32 16, %v177_v11 }
  0x6c   :  { %6036 = vmatpush3.msra.mxu1 %v571_v14  ;;  %v182_v23 = vadd.s32 40, %v177_v11  ;;  %v181_v24 = vadd.s32 32, %v177_v11  ;;  %v184_v36 = vadd.s32 56, %v177_v11  ;;  %v183_v37 = vadd.s32 48, %v177_v11 }
  0x6d   :  { %v168_v1 = vld [vmem:[%s8936_s23] sm:$0xff]  ;;  %v169_v2 = vld [vmem:[%s8936_s23 + $0x8] sm:$0xff]  ;;  %v170_v3 = vld [vmem:[%s8936_s23 + $0x10] sm:$0xff]  ;;  %v196_v15 = vand.u32 7, %v178_v12  ;;  %6037 = vmatprep.subr.mxu1 %v570_v19  ;;  %v210_v22 = vand.u32 7, %v180_v16  ;;  %vm281_vm2 = vcmp.lt.s32.totalorder %v189_v17, 2 }
  0x6e   :  { %6021 = vmatprep.mubr.msk.f32.mxu0 %vm313_vm0, %v168_v1  ;;  %v171_v5 = vld [vmem:[%s8936_s23 + $0x18] sm:$0xff]  ;;  %v172_v6 = vld [vmem:[%s8936_s23 + $0x20] sm:$0xff]  ;;  %v173_v7 = vld [vmem:[%s8936_s23 + $0x28] sm:$0xff]  ;;  %6038 = vmatpush3.msra.mxu1 %v570_v19  ;;  %v203_v25 = vand.u32 7, %v179_v18  ;;  %v7313_v31 = vsel %vm281_vm2, 1.0, %v7107_v27  ;;  %v224_v33 = vand.u32 7, %v182_v23 }
  0x6f   :  { %6022 = vmatmul.mubr.msk.f32.vlgmr.msra.gmra.mxu0 %vm313_vm0, %v169_v2  ;;  %v174_v8 = vld [vmem:[%s8936_s23 + $0x30] sm:$0xff]  ;;  %v175_v9 = vld [vmem:[%s8936_s23 + $0x38] sm:$0xff]  ;;  %vm282_vm1 = vcmp.lt.s32.totalorder %v196_v15, 2  ;;  %6039 = vmatprep.subr.mxu1 %v569_v20  ;;  %vm284_vm3 = vcmp.lt.s32.totalorder %v210_v22, 2  ;;  %v217_v34 = vand.u32 7, %v181_v24  ;;  %v238_v47 = vand.u32 7, %v184_v36 }
  0x70   :  { %6024 = vmatprep.mubr.msk.f32.mxu0 %vm313_vm0, %v170_v3  ;;  %6054 = vmatpush3.msra.mxu0 %v806_v4  ;;  %v7303_v28 = vsel %vm282_vm1, 1.0, %v7107_v27  ;;  %vm283_vm4 = vcmp.lt.s32.totalorder %v203_v25, 2  ;;  %v7325_v42 = vsel %vm284_vm3, 1.0, %v7107_v27  ;;  %vm286_vm6 = vcmp.lt.s32.totalorder %v224_v33, 2 }
  0x71   :  { %6040 = vmatpush3.msra.mxu1 %v569_v20  ;;  %v7328_v43 = vsel %vm283_vm4, 1.0, %v7107_v27  ;;  %vm285_vm7 = vcmp.lt.s32.totalorder %v217_v34, 2  ;;  %v231_v48 = vand.u32 7, %v183_v37  ;;  %v7341_v55 = vsel %vm286_vm6, 1.0, %v7107_v27 }
  0x72   :  { %6067 = vmatprep.subr.mxu1 %v7310_v30  ;;  %v7344_v56 = vsel %vm285_vm7, 1.0, %v7107_v27  ;;  %vm288_vm8 = vcmp.lt.s32.totalorder %v238_v47, 2 }
  0x73   :  { %6025 = vmatmul.mubr.msk.f32.gmra.mxu0 %vm313_vm0, %v171_v5  ;;  %vm287_vm9 = vcmp.lt.s32.totalorder %v231_v48, 2 }
  0x74   :  { %6027 = vmatprep.mubr.msk.f32.mxu0 %vm313_vm0, %v172_v6  ;;  %v7360_v4 = vsel %vm287_vm9, 1.0, %v7107_v27 }
  0x77   :  { %6028 = vmatmul.mubr.msk.f32.gmra.mxu0 %vm313_vm0, %v173_v7 }
  0x78   :  { %6030 = vmatprep.mubr.msk.f32.mxu0 %vm313_vm0, %v174_v8 }
  0x7b   :  { %6031 = vmatmul.mubr.msk.f32.gmra.mxu0 %vm313_vm0, %v175_v9 }
  0x7c   :  { %6055 = vmatprep.mubr.msk.f32.mxu0 %vm313_vm0, %v168_v1 }
  0x7f   :  { %6056 = vmatmul.mubr.msk.f32.vlgmr.msra.gmra.mxu0 %vm313_vm0, %v169_v2 }
  0x80   :  { %6058 = vmatprep.mubr.msk.f32.mxu0 %vm313_vm0, %v170_v3  ;;  %v7357_v3 = vsel %vm288_vm8, 1.0, %v7107_v27 }
  0x83   :  { %6059 = vmatmul.mubr.msk.f32.gmra.mxu0 %vm313_vm0, %v171_v5 }
  0x84   :  { %6061 = vmatprep.mubr.msk.f32.mxu0 %vm313_vm0, %v172_v6  ;;  %v5545_v6 = vld [vmem:[#allocation6 + $0x1] ss:$0 sm:$0xff] }
  0x87   :  { %6062 = vmatmul.mubr.msk.f32.gmra.mxu0 %vm313_vm0, %v173_v7 }
  0x88   :  { %6064 = vmatprep.mubr.msk.f32.mxu0 %vm313_vm0, %v174_v8 }
  0x8b   :  { %6065 = vmatmul.mubr.msk.f32.gmra.mxu0 %vm313_vm0, %v175_v9 }
 0x12f   :  { %v6023_v26 = vpop.f32.mrf.mxu0 }
 0x130   :  { %v7305_v29 = vadd.f32 %v6023_v26, %v5525_v21 }
 0x131   :  { %v404_v32 = vpop.f32.mrf.mxu0 }
 0x132   :  { %v7316_v35 = vadd.f32 %v5525_v21, %v404_v32  ;;  %v444_v39 = vmul.f32 %v7303_v28, %v7305_v29 }
 0x133   :  { %v6026_v38 = vpop.f32.mrf.mxu0 }
 0x134   :  { %v443_v40 = vmul.f32 %v7313_v31, %v7316_v35  ;;  %v7322_v41 = vadd.f32 %v6026_v38, %v5525_v21  ;;  %v453_v50 = vsel %vm451_vm5, %v444_v39, 0.0 }
 0x135   :  { %v414_v44 = vpop.f32.mrf.mxu0 }
 0x136   :  { %v452_v45 = vsel %vm451_vm5, %v443_v40, 0.0  ;;  %v7331_v46 = vadd.f32 %v5525_v21, %v414_v44  ;;  %v446_v51 = vmul.f32 %v7325_v42, %v7322_v41 }
 0x137   :  { %v6029_v49 = vpop.f32.mrf.mxu0  ;;  %v454_v54 = vadd.f32 %v453_v50, %v452_v45 }
 0x138   :  { %v445_v52 = vmul.f32 %v7328_v43, %v7331_v46  ;;  %v7338_v53 = vadd.f32 %v6029_v49, %v5525_v21  ;;  %v457_v62 = vsel %vm451_vm5, %v446_v51, 0.0 }
 0x139   :  { %v424_v57 = vpop.f32.mrf.mxu0 }
 0x13a   :  { %v455_v58 = vsel %vm451_vm5, %v445_v52, 0.0  ;;  %v7347_v59 = vadd.f32 %v5525_v21, %v424_v57  ;;  %v448_v63 = vmul.f32 %v7341_v55, %v7338_v53 }
 0x13b   :  { %v456_v60 = vadd.f32 %v455_v58, %v454_v54  ;;  %v6032_v61 = vpop.f32.mrf.mxu0 }
 0x13c   :  { %v447_v0 = vmul.f32 %v7344_v56, %v7347_v59  ;;  %v7354_v1 = vadd.f32 %v6032_v61, %v5525_v21  ;;  %v461_v12 = vsel %vm451_vm5, %v448_v63, 0.0 }
 0x13d   :  { %v458_v2 = vadd.f32 %v457_v62, %v456_v60  ;;  %v434_v5 = vpop.f32.mrf.mxu0 }
 0x13e   :  { %v459_v7 = vsel %vm451_vm5, %v447_v0, 0.0  ;;  %v7363_v8 = vadd.f32 %v5525_v21, %v434_v5  ;;  %v450_v13 = vmul.f32 %v7357_v3, %v7354_v1 }
 0x13f   :  { %v460_v9 = vadd.f32 %v459_v7, %v458_v2  ;;  %v6057_v11 = vpop.f32.mrf.mxu0 }
 0x140   :  { %v449_v14 = vmul.f32 %v7360_v4, %v7363_v8  ;;  %v7370_v15 = vadd.f32 %v6057_v11, %v5545_v6  ;;  %v465_v23 = vsel %vm451_vm5, %v450_v13, 0.0 }
 0x141   :  { %v462_v16 = vadd.f32 %v461_v12, %v460_v9  ;;  %v881_v17 = vpop.f32.mrf.mxu0 }
 0x142   :  { %v463_v18 = vsel %vm451_vm5, %v449_v14, 0.0  ;;  %v921_v19 = vmul.f32 %v7303_v28, %v7370_v15  ;;  %v7375_v20 = vadd.f32 %v5545_v6, %v881_v17 }
 0x143   :  { %v464_v21 = vadd.f32 %v463_v18, %v462_v16  ;;  %v6060_v22 = vpop.f32.mrf.mxu0 }
 0x144   :  { %v929_v24 = vsel %vm451_vm5, %v921_v19, 0.0  ;;  %v920_v25 = vmul.f32 %v7313_v31, %v7375_v20  ;;  %v7381_v26 = vadd.f32 %v6060_v22, %v5545_v6 }
 0x145   :  { %v466_v32 = vadd.f32 %v465_v23, %v464_v21  ;;  %v891_v33 = vpop.f32.mrf.mxu0 }
 0x146   :  { %v928_v34 = vsel %vm451_vm5, %v920_v25, 0.0  ;;  %v923_v36 = vmul.f32 %v7325_v42, %v7381_v26  ;;  %v7386_v37 = vadd.f32 %v5545_v6, %v891_v33 }
 0x147   :  { %v467_v38 = vrot.slane %v466_v32, 4  ;;  %v930_v39 = vadd.f32 %v929_v24, %v928_v34  ;;  %v6063_v40 = vpop.f32.mrf.mxu0 }
 0x148   :  { %v922_v44 = vmul.f32 %v7328_v43, %v7386_v37  ;;  %v7390_v47 = vadd.f32 %v6063_v40, %v5545_v6  ;;  %v933_v49 = vsel %vm451_vm5, %v923_v36, 0.0 }
 0x149   :  { %v468_v45 = vadd.f32 %v467_v38, %v466_v32  ;;  %v901_v48 = vpop.f32.mrf.mxu0 }
 0x14a   :  { %v931_v50 = vsel %vm451_vm5, %v922_v44, 0.0  ;;  %v7394_v51 = vadd.f32 %v5545_v6, %v901_v48  ;;  %v925_v61 = vmul.f32 %v7341_v55, %v7390_v47 }
 0x14b   :  { %v469_v52 = vrot.slane %v468_v45, 2  ;;  %v932_v54 = vadd.f32 %v931_v50, %v930_v39  ;;  %v6066_v57 = vpop.f32.mrf.mxu0 }
 0x14c   :  { %v924_v58 = vmul.f32 %v7344_v56, %v7394_v51  ;;  %v937_v12 = vsel %vm451_vm5, %v925_v61, 0.0  ;;  %v7406_v13 = vadd.f32 %v6066_v57, %v5545_v6 }
 0x14d   :  { %v470_v60 = vadd.f32 %v469_v52, %v468_v45  ;;  %v934_v62 = vadd.f32 %v933_v49, %v932_v54  ;;  %v911_v63 = vpop.f32.mrf.mxu0 }
 0x14e   :  { %v935_v0 = vsel %vm451_vm5, %v924_v58, 0.0  ;;  %v7401_v2 = vadd.f32 %v5545_v6, %v911_v63  ;;  %v927_v24 = vmul.f32 %v7357_v3, %v7406_v13 }
 0x14f   :  { %v471_v5 = vrot.slane %v470_v60, 1  ;;  %v936_v7 = vadd.f32 %v935_v0, %v934_v62 }
 0x150   :  { %v926_v9 = vmul.f32 %v7360_v4, %v7401_v2  ;;  %v941_v38 = vsel %vm451_vm5, %v927_v24, 0.0 }
 0x151   :  { %v472_v11 = vadd.f32 %v471_v5, %v470_v60  ;;  %v938_v16 = vadd.f32 %v937_v12, %v936_v7 }
 0x152   :  { %v939_v17 = vsel %vm451_vm5, %v926_v9, 0.0 }
 0x153   :  { %v474_v14 = vmul.f32 0.0625, %v472_v11 }
 0x155   :  { %v7410_v18 = vsub.f32 %v7316_v35, %v474_v14  ;;  %v7413_v19 = vsub.f32 %v7305_v29, %v474_v14  ;;  %v7416_v21 = vsub.f32 %v7331_v46, %v474_v14  ;;  %v7419_v22 = vsub.f32 %v7322_v41, %v474_v14 }
 0x156   :  { %v7422_v23 = vsub.f32 %v7347_v59, %v474_v14  ;;  %v7425_v6 = vsub.f32 %v7338_v53, %v474_v14  ;;  %v7438_v59 = vsub.f32 %v7363_v8, %v474_v14  ;;  %v940_v53 = vadd.f32 %v939_v17, %v938_v16 }
 0x157   :  { %v483_v35 = vmul.f32 %v7410_v18, %v7410_v18  ;;  %v484_v29 = vmul.f32 %v7413_v19, %v7413_v19  ;;  %v485_v46 = vmul.f32 %v7416_v21, %v7416_v21  ;;  %v486_v41 = vmul.f32 %v7419_v22, %v7419_v22 }
 0x158   :  { %v487_v25 = vmul.f32 %v7422_v23, %v7422_v23  ;;  %v7446_v36 = vsub.f32 %v7354_v1, %v474_v14  ;;  %v488_v39 = vmul.f32 %v7425_v6, %v7425_v6  ;;  %v489_v48 = vmul.f32 %v7438_v59, %v7438_v59 }
 0x159   :  { %v491_v32 = vmul.f32 %v7313_v31, %v483_v35  ;;  %v492_v33 = vmul.f32 %v7303_v28, %v484_v29  ;;  %v493_v34 = vmul.f32 %v7328_v43, %v485_v46  ;;  %v494_v8 = vmul.f32 %v7325_v42, %v486_v41 }
 0x15a   :  { %v495_v49 = vmul.f32 %v7344_v56, %v487_v25  ;;  %v942_v50 = vadd.f32 %v941_v38, %v940_v53  ;;  %v490_v54 = vmul.f32 %v7446_v36, %v7446_v36  ;;  %v496_v57 = vmul.f32 %v7341_v55, %v488_v39 }
 0x15b   :  { %v499_v40 = vsel %vm451_vm5, %v491_v32, 0.0  ;;  %v500_v44 = vsel %vm451_vm5, %v492_v33, 0.0  ;;  %v502_v1 = vsel %vm451_vm5, %v493_v34, 0.0  ;;  %v504_v58 = vsel %vm451_vm5, %v494_v8, 0.0 }
 0x15c   :  { %v501_v45 = vadd.f32 %v500_v44, %v499_v40  ;;  %v943_v60 = vrot.slane %v942_v50, 4  ;;  %v497_v62 = vmul.f32 %v7360_v4, %v489_v48  ;;  %v506_v63 = vsel %vm451_vm5, %v495_v49, 0.0 }
 0x15d   :  { %v498_v7 = vmul.f32 %v7357_v3, %v490_v54  ;;  %v508_v9 = vsel %vm451_vm5, %v496_v57, 0.0 }
 0x15e   :  { %v503_v52 = vadd.f32 %v502_v1, %v501_v45  ;;  %v944_v0 = vadd.f32 %v943_v60, %v942_v50  ;;  %v510_v14 = vsel %vm451_vm5, %v497_v62, 0.0 }
 0x15f   :  { %v512_v24 = vsel %vm451_vm5, %v498_v7, 0.0 }
 0x160   :  { %v505_v61 = vadd.f32 %v504_v58, %v503_v52  ;;  %v945_v11 = vrot.slane %v944_v0, 2 }
 0x162   :  { %v507_v5 = vadd.f32 %v506_v63, %v505_v61  ;;  %v946_v16 = vadd.f32 %v945_v11, %v944_v0 }
 0x164   :  { %v509_v12 = vadd.f32 %v508_v9, %v507_v5  ;;  %v947_v35 = vrot.slane %v946_v16, 1 }
 0x166   :  { %v511_v17 = vadd.f32 %v510_v14, %v509_v12  ;;  %v948_v46 = vadd.f32 %v947_v35, %v946_v16 }
 0x168   :  { %v513_v29 = vadd.f32 %v512_v24, %v511_v17  ;;  %v949_v53 = vmul.f32 0.0625, %v948_v46 }
 0x16a   :  { %v514_v41 = vrot.slane %v513_v29, 4  ;;  %v7469_v32 = vsub.f32 %v7375_v20, %v949_v53  ;;  %v7472_v33 = vsub.f32 %v7370_v15, %v949_v53  ;;  %v7475_v34 = vsub.f32 %v7386_v37, %v949_v53 }
 0x16b   :  { %v7478_v38 = vsub.f32 %v7381_v26, %v949_v53  ;;  %v7481_v8 = vsub.f32 %v7394_v51, %v949_v53  ;;  %v7490_v37 = vsub.f32 %v7390_v47, %v949_v53  ;;  %v7497_v49 = vsub.f32 %v7401_v2, %v949_v53 }
 0x16c   :  { %v515_v25 = vadd.f32 %v514_v41, %v513_v29  ;;  %v958_v40 = vmul.f32 %v7469_v32, %v7469_v32  ;;  %v959_v20 = vmul.f32 %v7472_v33, %v7472_v33  ;;  %v960_v15 = vmul.f32 %v7475_v34, %v7475_v34 }
 0x16d   :  { %v961_v26 = vmul.f32 %v7478_v38, %v7478_v38  ;;  %v962_v1 = vmul.f32 %v7481_v8, %v7481_v8  ;;  %v7503_v52 = vsub.f32 %v7406_v13, %v949_v53  ;;  %v964_v60 = vmul.f32 %v7497_v49, %v7497_v49  ;;  %v5534_v53 = vld [vmem:[#allocation8] ss:$0 sm:$0xff] }
 0x16e   :  { %v516_v39 = vrot.slane %v515_v25, 2  ;;  %v966_v45 = vmul.f32 %v7313_v31, %v958_v40  ;;  %v967_v51 = vmul.f32 %v7303_v28, %v959_v20  ;;  %v968_v50 = vmul.f32 %v7328_v43, %v960_v15  ;;  %v5535_v20 = vld [vmem:[#allocation9] ss:$0 sm:$0xff] }
 0x16f   :  { %v963_v31 = vmul.f32 %v7490_v37, %v7490_v37  ;;  %v969_v28 = vmul.f32 %v7325_v42, %v961_v26  ;;  %v970_v43 = vmul.f32 %v7344_v56, %v962_v1  ;;  %v965_v63 = vmul.f32 %v7503_v52, %v7503_v52 }
 0x170   :  { %v517_v44 = vadd.f32 %v516_v39, %v515_v25  ;;  %v974_v47 = vsel %vm451_vm5, %v966_v45, 0.0  ;;  %v975_v57 = vsel %vm451_vm5, %v967_v51, 0.0  ;;  %v977_v13 = vsel %vm451_vm5, %v968_v50, 0.0 }
 0x171   :  { %v976_v2 = vadd.f32 %v975_v57, %v974_v47  ;;  %v971_v0 = vmul.f32 %v7341_v55, %v963_v31  ;;  %v979_v42 = vsel %vm451_vm5, %v969_v28, 0.0  ;;  %v972_v7 = vmul.f32 %v7360_v4, %v964_v60 }
 0x172   :  { %v518_v48 = vrot.slane %v517_v44, 1  ;;  %v981_v9 = vsel %vm451_vm5, %v970_v43, 0.0  ;;  %v973_v56 = vmul.f32 %v7357_v3, %v965_v63 }
 0x173   :  { %v978_v61 = vadd.f32 %v977_v13, %v976_v2  ;;  %v983_v12 = vsel %vm451_vm5, %v971_v0, 0.0  ;;  %v985_v16 = vsel %vm451_vm5, %v972_v7, 0.0 }
 0x174   :  { %v519_v54 = vadd.f32 %v518_v48, %v517_v44  ;;  %v987_v24 = vsel %vm451_vm5, %v973_v56, 0.0 }
 0x175   :  { %v980_v5 = vadd.f32 %v979_v42, %v978_v61 }
 0x176   :  { %v520_v58 = vmul.f32 0.0625, %v519_v54 }
 0x177   :  { %v982_v11 = vadd.f32 %v981_v9, %v980_v5  ;;  %v5555_v9 = vld [vmem:[#allocation9 + $0x1] ss:$0 sm:$0xff] }
 0x178   :  { %v521_v62 = vadd.f32 1e-05, %v520_v58 }
 0x179   :  { %v984_v14 = vadd.f32 %v983_v12, %v982_v11 }
 0x17a   :  { %6681 = vrsqrt.f32 %v521_v62  ;;  %v5554_v62 = vld [vmem:[#allocation8 + $0x1] ss:$0 sm:$0xff] }
 0x17b   :  { %v986_v17 = vadd.f32 %v985_v16, %v984_v14 }
 0x17d   :  { %v988_v55 = vadd.f32 %v987_v24, %v986_v17 }
 0x17f   :  { %v989_v35 = vrot.slane %v988_v55, 4 }
 0x181   :  { %v990_v29 = vadd.f32 %v989_v35, %v988_v55  ;;  %v5557_v35 = vld [vmem:[%s8916_s5 + $0x28] sm:$0xff] }
 0x183   :  { %v991_v41 = vrot.slane %v990_v29, 2 }
 0x185   :  { %v992_v25 = vadd.f32 %v991_v41, %v990_v29 }
 0x187   :  { %v6682_v46 = vpop.eup %6681  ;;  %v993_v39 = vrot.slane %v992_v25, 1 }
 0x188   :  { %v524_v4 = vmul.f32 %v6682_v46, %v7413_v19  ;;  %v525_v3 = vmul.f32 %v6682_v46, %v7416_v21  ;;  %v523_v44 = vmul.f32 %v6682_v46, %v7410_v18  ;;  %v526_v26 = vmul.f32 %v6682_v46, %v7419_v22 }
 0x189   :  { %v994_v15 = vadd.f32 %v993_v39, %v992_v25  ;;  %v527_v51 = vmul.f32 %v6682_v46, %v7422_v23  ;;  %v528_v54 = vmul.f32 %v6682_v46, %v7425_v6  ;;  %v529_v21 = vmul.f32 %v6682_v46, %v7438_v59 }
 0x18a   :  { %v539_v40 = vmul.f32 %v5534_v53, %v524_v4  ;;  %v540_v48 = vmul.f32 %v5534_v53, %v525_v3  ;;  %v538_v50 = vmul.f32 %v5534_v53, %v523_v44  ;;  %v541_v31 = vmul.f32 %v5534_v53, %v526_v26 }
 0x18b   :  { %v995_v45 = vmul.f32 0.0625, %v994_v15  ;;  %v542_v28 = vmul.f32 %v5534_v53, %v527_v51  ;;  %v530_v18 = vmul.f32 %v6682_v46, %v7446_v36  ;;  %v543_v22 = vmul.f32 %v5534_v53, %v528_v54 }
 0x18c   :  { %v554_v1 = vadd.f32 %v5535_v20, %v539_v40  ;;  %v553_v19 = vadd.f32 %v5535_v20, %v538_v50  ;;  %v555_v57 = vadd.f32 %v5535_v20, %v540_v48  ;;  %v556_v2 = vadd.f32 %v5535_v20, %v541_v31 }
 0x18d   :  { %v996_v47 = vadd.f32 1e-05, %v995_v45  ;;  %v544_v23 = vmul.f32 %v5534_v53, %v529_v21  ;;  %v557_v58 = vadd.f32 %v5535_v20, %v542_v28  ;;  %v545_v60 = vmul.f32 %v5534_v53, %v530_v18 }
 0x18e   :  { %6683 = vtanh.f32 %v554_v1  ;;  %v558_v43 = vadd.f32 %v5535_v20, %v543_v22 }
 0x18f   :  { %6685 = vrsqrt.f32 %v996_v47  ;;  %v559_v13 = vadd.f32 %v5535_v20, %v544_v23  ;;  %v560_v6 = vadd.f32 %v5535_v20, %v545_v60 }
 0x190   :  { %6687 = vtanh.f32 %v553_v19  ;;  %v5536_v19 = vld [vmem:[#allocation11] ss:$0 sm:$0xff] }
 0x191   :  { %6689 = vtanh.f32 %v555_v57 }
 0x192   :  { %6691 = vtanh.f32 %v556_v2 }
 0x193   :  { %6693 = vtanh.f32 %v557_v58 }
 0x194   :  { %6695 = vtanh.f32 %v558_v43 }
 0x195   :  { %6697 = vtanh.f32 %v559_v13 }
 0x196   :  { %6699 = vtanh.f32 %v560_v6 }
 0x19b   :  { %v6684_v59 = vpop.eup %6683 }
 0x19c   :  { %v6686_v61 = vpop.eup %6685 }
 0x19d   :  { %v6688_v63 = vpop.eup %6687  ;;  %v998_v36 = vmul.f32 %v6686_v61, %v7469_v32  ;;  %v999_v0 = vmul.f32 %v6686_v61, %v7472_v33  ;;  %v1000_v42 = vmul.f32 %v6686_v61, %v7475_v34  ;;  %v1001_v5 = vmul.f32 %v6686_v61, %v7478_v38  ;;  %v5558_v32 = vld [vmem:[%s8916_s5 + $0x30] sm:$0xff] }
 0x19e   :  { %v1002_v7 = vmul.f32 %v6686_v61, %v7481_v8  ;;  %6041 = vmatprep.mubr.msk.f32.mxu1 %vm451_vm5, %v6688_v63  ;;  %v6690_v11 = vpop.eup %6689  ;;  %v1003_v33 = vmul.f32 %v6686_v61, %v7490_v37  ;;  %v1004_v34 = vmul.f32 %v6686_v61, %v7497_v49  ;;  %v1005_v37 = vmul.f32 %v6686_v61, %v7503_v52 }
 0x19f   :  { %v1014_v56 = vmul.f32 %v5554_v62, %v998_v36  ;;  %v1015_v12 = vmul.f32 %v5554_v62, %v999_v0  ;;  %v1016_v14 = vmul.f32 %v5554_v62, %v1000_v42  ;;  %6042 = vmatmul.mubr.msk.f32.vlgmr.msra.gmra.mxu1 %vm451_vm5, %v6684_v59  ;;  %v1017_v38 = vmul.f32 %v5554_v62, %v1001_v5  ;;  %v6692_v55 = vpop.eup %6691 }
 0x1a0   :  { %6044 = vmatprep.mubr.msk.f32.mxu1 %vm451_vm5, %v6690_v11  ;;  %v1018_v8 = vmul.f32 %v5554_v62, %v1002_v7  ;;  %6068 = vmatpush3.msra.mxu1 %v7310_v30  ;;  %v6694_v29 = vpop.eup %6693  ;;  %v1019_v49 = vmul.f32 %v5554_v62, %v1003_v33  ;;  %v5556_v30 = vld [vmem:[%s8916_s5 + $0x20] sm:$0xff]  ;;  %v1020_v41 = vmul.f32 %v5554_v62, %v1004_v34  ;;  %v5560_v7 = vld [vmem:[#allocation11 + $0x1] ss:$0 sm:$0xff] }
 0x1a1   :  { %v1030_v16 = vadd.f32 %v5555_v9, %v1014_v56  ;;  %v1031_v17 = vadd.f32 %v5555_v9, %v1015_v12  ;;  %v1032_v24 = vadd.f32 %v5555_v9, %v1016_v14  ;;  %6069 = vmatprep.subr.mxu1 %v5558_v32  ;;  %v1033_v46 = vadd.f32 %v5555_v9, %v1017_v38  ;;  %v6696_v53 = vpop.eup %6695 }
 0x1a2   :  { %6070 = vmatpush3.msra.mxu1 %v5558_v32  ;;  %v1034_v4 = vadd.f32 %v5555_v9, %v1018_v8  ;;  %v6698_v25 = vpop.eup %6697  ;;  %v1021_v52 = vmul.f32 %v5554_v62, %v1005_v37  ;;  %v1035_v39 = vadd.f32 %v5555_v9, %v1019_v49  ;;  %v1036_v40 = vadd.f32 %v5555_v9, %v1020_v41 }
 0x1a3   :  { %6701 = vtanh.f32 %v1030_v16  ;;  %6045 = vmatmul.mubr.msk.f32.gmra.mxu1 %vm451_vm5, %v6692_v55  ;;  %6071 = vmatprep.subr.mxu1 %v5557_v35  ;;  %v6700_v3 = vpop.eup %6699 }
 0x1a4   :  { %6703 = vtanh.f32 %v1031_v17  ;;  %6047 = vmatprep.mubr.msk.f32.mxu1 %vm451_vm5, %v6694_v29  ;;  %6072 = vmatpush3.msra.mxu1 %v5557_v35  ;;  %v1037_v20 = vadd.f32 %v5555_v9, %v1021_v52 }
 0x1a5   :  { %6705 = vtanh.f32 %v1032_v24  ;;  %6073 = vmatprep.subr.mxu1 %v5556_v30 }
 0x1a6   :  { %6707 = vtanh.f32 %v1033_v46  ;;  %6074 = vmatpush3.msra.mxu1 %v5556_v30 }
 0x1a7   :  { %6048 = vmatmul.mubr.msk.f32.gmra.mxu1 %vm451_vm5, %v6696_v53  ;;  %6709 = vtanh.f32 %v1034_v4 }
 0x1a8   :  { %6050 = vmatprep.mubr.msk.f32.mxu1 %vm451_vm5, %v6698_v25  ;;  %6711 = vtanh.f32 %v1035_v39 }
 0x1a9   :  { %6713 = vtanh.f32 %v1036_v40 }
 0x1aa   :  { %6715 = vtanh.f32 %v1037_v20 }
 0x1ab   :  { %6051 = vmatmul.mubr.msk.f32.gmra.mxu1 %vm451_vm5, %v6700_v3 }
 0x1b0   :  { %v6702_v15 = vpop.eup %6701 }
 0x1b1   :  { %v6704_v44 = vpop.eup %6703  ;;  %6075 = vmatprep.mubr.msk.f32.mxu1 %vm451_vm5, %v6702_v15 }
 0x1b2   :  { %v6706_v26 = vpop.eup %6705  ;;  %6076 = vmatmul.mubr.msk.f32.vlgmr.msra.gmra.mxu1 %vm451_vm5, %v6704_v44 }
 0x1b3   :  { %6078 = vmatprep.mubr.msk.f32.mxu1 %vm451_vm5, %v6706_v26  ;;  %v6708_v45 = vpop.eup %6707 }
 0x1b4   :  { %v6710_v51 = vpop.eup %6709 }
 0x1b5   :  { %v6712_v48 = vpop.eup %6711 }
 0x1b6   :  { %6079 = vmatmul.mubr.msk.f32.gmra.mxu1 %vm451_vm5, %v6708_v45  ;;  %v6714_v1 = vpop.eup %6713 }
 0x1b7   :  { %6081 = vmatprep.mubr.msk.f32.mxu1 %vm451_vm5, %v6710_v51  ;;  %v6716_v50 = vpop.eup %6715 }
 0x1ba   :  { %6082 = vmatmul.mubr.msk.f32.gmra.mxu1 %vm451_vm5, %v6712_v48 }
 0x1bb   :  { %6084 = vmatprep.mubr.msk.f32.mxu1 %vm451_vm5, %v6714_v1 }
 0x1be   :  { %6085 = vmatmul.mubr.msk.f32.gmra.mxu1 %vm451_vm5, %v6716_v50 }
 0x25f   :  { %v6043_v47 = vpop.f32.mrf.mxu1 }
 0x260   :  { %v7568_v28 = vadd.f32 %v6043_v47, %v5536_v19 }
 0x261   :  { %v670_v54 = vpop.f32.mrf.mxu1 }
 0x262   :  { %v7566_v31 = vadd.f32 %v5536_v19, %v670_v54  ;;  %v712_v60 = vsel %vm313_vm0, %v7568_v28, -inf }
 0x263   :  { %v6046_v21 = vpop.f32.mrf.mxu1 }
 0x264   :  { %v709_v57 = vsel %vm313_vm0, %v7566_v31, -inf  ;;  %v7574_v23 = vadd.f32 %v6046_v21, %v5536_v19 }
 0x265   :  { %v680_v18 = vpop.f32.mrf.mxu1  ;;  %710 = vmax.xlane.f32.xlu0 %v709_v57 }
 0x266   :  { %v7572_v22 = vadd.f32 %v5536_v19, %v680_v18  ;;  %v718_v61 = vsel %vm313_vm0, %v7574_v23, -inf }
 0x267   :  { %v6049_v2 = vpop.f32.mrf.mxu1 }
 0x268   :  { %v715_v58 = vsel %vm313_vm0, %v7572_v22, -inf  ;;  %v7582_v59 = vadd.f32 %v6049_v2, %v5536_v19 }
 0x269   :  { %v690_v43 = vpop.f32.mrf.mxu1  ;;  %716 = vmax.xlane.f32.xlu1 %v715_v58  ;;  %713 = vmax.xlane.f32.xlu0 %v712_v60 }
 0x26a   :  { %v7580_v13 = vadd.f32 %v5536_v19, %v690_v43  ;;  %v724_v42 = vsel %vm313_vm0, %v7582_v59, -inf }
 0x26b   :  { %v6052_v6 = vpop.f32.mrf.mxu1 }
 0x26c   :  { %v721_v62 = vsel %vm313_vm0, %v7580_v13, -inf  ;;  %v7590_v0 = vadd.f32 %v6052_v6, %v5536_v19 }
 0x26d   :  { %v700_v63 = vpop.f32.mrf.mxu1  ;;  %719 = vmax.xlane.f32.xlu1 %v718_v61  ;;  %722 = vmax.xlane.f32.xlu0 %v721_v62 }
 0x26e   :  { %v7588_v36 = vadd.f32 %v5536_v19, %v700_v63  ;;  %v730_v12 = vsel %vm313_vm0, %v7590_v0, -inf }
 0x270   :  { %v727_v5 = vsel %vm313_vm0, %v7588_v36, -inf }
 0x271   :  { %725 = vmax.xlane.f32.xlu1 %v724_v42  ;;  %728 = vmax.xlane.f32.xlu0 %v727_v5 }
 0x272   :  { %v6077_v9 = vpop.f32.mrf.mxu1 }
 0x273   :  { %v7596_v11 = vadd.f32 %v6077_v9, %v5560_v7 }
 0x274   :  { %v1149_v56 = vpop.f32.mrf.mxu1 }
 0x275   :  { %v7600_v14 = vadd.f32 %v5560_v7, %v1149_v56  ;;  %731 = vmax.xlane.f32.xlu1 %v730_v12  ;;  %v1191_v8 = vsel %vm313_vm0, %v7596_v11, -inf }
 0x276   :  { %v6080_v32 = vpop.f32.mrf.mxu1 }
 0x277   :  { %v1188_v33 = vsel %vm313_vm0, %v7600_v14, -inf  ;;  %v7604_v34 = vadd.f32 %v6080_v32, %v5560_v7 }
 0x278   :  { %v1159_v38 = vpop.f32.mrf.mxu1  ;;  %1189 = vmax.xlane.f32.xlu0 %v1188_v33 }
 0x279   :  { %v7608_v16 = vadd.f32 %v5560_v7, %v1159_v38  ;;  %1192 = vmax.xlane.f32.xlu1 %v1191_v8  ;;  %v1197_v29 = vsel %vm313_vm0, %v7604_v34, -inf }
 0x27a   :  { %v6083_v17 = vpop.f32.mrf.mxu1 }
 0x27b   :  { %v1194_v24 = vsel %vm313_vm0, %v7608_v16, -inf  ;;  %v7612_v55 = vadd.f32 %v6083_v17, %v5560_v7 }
 0x27c   :  { %v1169_v35 = vpop.f32.mrf.mxu1  ;;  %1195 = vmax.xlane.f32.xlu0 %v1194_v24 }
 0x27d   :  { %v7616_v37 = vadd.f32 %v5560_v7, %v1169_v35  ;;  %1198 = vmax.xlane.f32.xlu1 %v1197_v29  ;;  %v1203_v4 = vsel %vm313_vm0, %v7612_v55, -inf }
 0x27e   :  { %v6086_v49 = vpop.f32.mrf.mxu1 }
 0x27f   :  { %v1200_v46 = vsel %vm313_vm0, %v7616_v37, -inf  ;;  %v7620_v30 = vadd.f32 %v6086_v49, %v5560_v7 }
 0x280   :  { %v1179_v41 = vpop.f32.mrf.mxu1  ;;  %1201 = vmax.xlane.f32.xlu0 %v1200_v46 }
 0x281   :  { %v7624_v53 = vadd.f32 %v5560_v7, %v1179_v41  ;;  %1204 = vmax.xlane.f32.xlu1 %v1203_v4  ;;  %v1209_v52 = vsel %vm313_vm0, %v7620_v30, -inf }
 0x283   :  { %v1206_v25 = vsel %vm313_vm0, %v7624_v53, -inf }
 0x284   :  { %1207 = vmax.xlane.f32.xlu0 %v1206_v25 }
 0x285   :  { %1210 = vmax.xlane.f32.xlu1 %v1209_v52 }
 0x2ee   :  { %v711_v39 = vpop.xlane.xlu0 %710 }
 0x2ef   :  { %v733_v3 = vsub.f32 %v7566_v31, %v711_v39 }
 0x2f1   :  { %v741_v40 = vmul.f32 1.442695, %v733_v3 }
 0x2f2   :  { %v717_v20 = vpop.xlane.xlu1 %716  ;;  %v714_v15 = vpop.xlane.xlu0 %713 }
 0x2f3   :  { %6717 = vpow2.f32 %v741_v40  ;;  %v735_v44 = vsub.f32 %v7572_v22, %v717_v20  ;;  %v734_v26 = vsub.f32 %v7568_v28, %v714_v15 }
 0x2f5   :  { %v745_v45 = vmul.f32 1.442695, %v735_v44  ;;  %v743_v51 = vmul.f32 1.442695, %v734_v26 }
 0x2f6   :  { %v720_v48 = vpop.xlane.xlu1 %719  ;;  %v723_v1 = vpop.xlane.xlu0 %722 }
 0x2f7   :  { %6719 = vpow2.f32 %v745_v45  ;;  %v736_v50 = vsub.f32 %v7574_v23, %v720_v48  ;;  %v737_v47 = vsub.f32 %v7580_v13, %v723_v1 }
 0x2f8   :  { %6721 = vpow2.f32 %v743_v51 }
 0x2f9   :  { %v747_v19 = vmul.f32 1.442695, %v736_v50  ;;  %v749_v54 = vmul.f32 1.442695, %v737_v47 }
 0x2fa   :  { %v726_v31 = vpop.xlane.xlu1 %725  ;;  %v729_v21 = vpop.xlane.xlu0 %728 }
 0x2fb   :  { %6723 = vpow2.f32 %v747_v19  ;;  %v738_v57 = vsub.f32 %v7582_v59, %v726_v31  ;;  %v739_v18 = vsub.f32 %v7588_v36, %v729_v21 }
 0x2fc   :  { %6725 = vpow2.f32 %v749_v54 }
 0x2fd   :  { %v751_v28 = vmul.f32 1.442695, %v738_v57  ;;  %v753_v22 = vmul.f32 1.442695, %v739_v18  ;;  %v1284_v18 = vld [vmem:[%s8918_s7] sm:$0xff] }
 0x2fe   :  { %v732_v2 = vpop.xlane.xlu1 %731  ;;  %6087 = vmatprep.subr.mxu0 %v1284_v18 }
 0x2ff   :  { %6727 = vpow2.f32 %v751_v28  ;;  %v740_v58 = vsub.f32 %v7590_v0, %v732_v2  ;;  %6088 = vmatpush3.msra.mxu0 %v1284_v18  ;;  %v5578_v28 = vld [vmem:[%s8918_s7 + $0x8] sm:$0xff]  ;;  %v6924_v18 = vld [vmem:[%s8936_s23 + $0x38] sm:$0xff] }
 0x300   :  { %v7638_v23 = vpop.eup %6717  ;;  %6729 = vpow2.f32 %v753_v22  ;;  %6115 = vmatprep.subr.mxu0 %v7107_v27  ;;  %6101 = vmatprep.subr.mxu1 %v5578_v28 }
 0x301   :  { %v755_v60 = vmul.f32 1.442695, %v740_v58  ;;  %v1190_v43 = vpop.xlane.xlu0 %1189  ;;  %v757_v13 = vsel %vm313_vm0, %v7638_v23, 0.0  ;;  %6102 = vmatpush3.msra.mxu1 %v5578_v28 }
 0x302   :  { %v1212_v6 = vsub.f32 %v7600_v14, %v1190_v43  ;;  %v1193_v59 = vpop.xlane.xlu1 %1192  ;;  %758 = vadd.xlane.f32.xlu0 %v757_v13  ;;  %6126 = vmatprep.subr.mxu1 %v7107_v27 }
 0x303   :  { %6731 = vpow2.f32 %v755_v60  ;;  %v1213_v61 = vsub.f32 %v7596_v11, %v1193_v59 }
 0x304   :  { %v7644_v62 = vpop.eup %6719  ;;  %v1220_v63 = vmul.f32 1.442695, %v1212_v6 }
 0x305   :  { %v7646_v36 = vpop.eup %6721  ;;  %v1222_v0 = vmul.f32 1.442695, %v1213_v61  ;;  %v1196_v42 = vpop.xlane.xlu0 %1195  ;;  %v763_v5 = vsel %vm313_vm0, %v7644_v62, 0.0 }
 0x306   :  { %6733 = vpow2.f32 %v1220_v63  ;;  %v1214_v7 = vsub.f32 %v7608_v16, %v1196_v42  ;;  %v1199_v9 = vpop.xlane.xlu1 %1198  ;;  %764 = vadd.xlane.f32.xlu0 %v763_v5  ;;  %v760_v56 = vsel %vm313_vm0, %v7646_v36, 0.0 }
 0x307   :  { %6735 = vpow2.f32 %v1222_v0  ;;  %v1215_v11 = vsub.f32 %v7604_v34, %v1199_v9  ;;  %761 = vadd.xlane.f32.xlu1 %v760_v56  ;;  %v7722_v0 = vld [vmem:[%s8936_s23] sm:$0xff] }
 0x308   :  { %v7654_v12 = vpop.eup %6723  ;;  %v1224_v14 = vmul.f32 1.442695, %v1214_v7 }
 0x309   :  { %v7656_v32 = vpop.eup %6725  ;;  %v1226_v33 = vmul.f32 1.442695, %v1215_v11  ;;  %v1202_v38 = vpop.xlane.xlu0 %1201  ;;  %v766_v8 = vsel %vm313_vm0, %v7654_v12, 0.0 }
 0x30a   :  { %6737 = vpow2.f32 %v1224_v14  ;;  %v1216_v16 = vsub.f32 %v7616_v37, %v1202_v38  ;;  %v1205_v17 = vpop.xlane.xlu1 %1204  ;;  %v769_v24 = vsel %vm313_vm0, %v7656_v32, 0.0  ;;  %v7731_v14 = vld [vmem:[%s8936_s23 + $0x10] sm:$0xff]  ;;  %v6919_v38 = vld [vmem:[%s8936_s23 + $0x8] sm:$0xff] }
 0x30b   :  { %6739 = vpow2.f32 %v1226_v33  ;;  %v1217_v34 = vsub.f32 %v7612_v55, %v1205_v17  ;;  %767 = vadd.xlane.f32.xlu1 %v766_v8  ;;  %770 = vadd.xlane.f32.xlu0 %v769_v24 }
 0x30c   :  { %v7664_v35 = vpop.eup %6727  ;;  %v1228_v29 = vmul.f32 1.442695, %v1216_v16 }
 0x30d   :  { %v7666_v49 = vpop.eup %6729  ;;  %v1230_v46 = vmul.f32 1.442695, %v1217_v34  ;;  %v1208_v41 = vpop.xlane.xlu0 %1207  ;;  %v772_v4 = vsel %vm313_vm0, %v7664_v35, 0.0  ;;  %v7747_v34 = vld [vmem:[%s8919_s8 + $0x10] sm:$0xff] }
 0x30e   :  { %6741 = vpow2.f32 %v1228_v29  ;;  %v1218_v37 = vsub.f32 %v7624_v53, %v1208_v41  ;;  %v1211_v25 = vpop.xlane.xlu1 %1210  ;;  %v775_v52 = vsel %vm313_vm0, %v7666_v49, 0.0  ;;  %v6920_v41 = vld [vmem:[%s8936_s23 + $0x18] sm:$0xff] }
 0x30f   :  { %6743 = vpow2.f32 %v1230_v46  ;;  %v1219_v55 = vsub.f32 %v7620_v30, %v1211_v25  ;;  %773 = vadd.xlane.f32.xlu1 %v772_v4  ;;  %776 = vadd.xlane.f32.xlu0 %v775_v52  ;;  %v6921_v52 = vld [vmem:[%s8936_s23 + $0x20] sm:$0xff] }
 0x310   :  { %v7674_v39 = vpop.eup %6731  ;;  %v1232_v3 = vmul.f32 1.442695, %v1218_v37 }
 0x311   :  { %v1234_v40 = vmul.f32 1.442695, %v1219_v55  ;;  %v778_v20 = vsel %vm313_vm0, %v7674_v39, 0.0 }
 0x312   :  { %6745 = vpow2.f32 %v1232_v3 }
 0x313   :  { %v7678_v15 = vpop.eup %6733  ;;  %6747 = vpow2.f32 %v1234_v40  ;;  %779 = vadd.xlane.f32.xlu1 %v778_v20  ;;  %v7771_v40 = vld [vmem:[%s8919_s8] sm:$0xff] }
 0x314   :  { %v7680_v53 = vpop.eup %6735  ;;  %v1236_v44 = vsel %vm313_vm0, %v7678_v15, 0.0 }
 0x315   :  { %1237 = vadd.xlane.f32.xlu0 %v1236_v44  ;;  %v1239_v30 = vsel %vm313_vm0, %v7680_v53, 0.0 }
 0x317   :  { %v7686_v26 = vpop.eup %6737  ;;  %1240 = vadd.xlane.f32.xlu1 %v1239_v30  ;;  %v6922_v30 = vld [vmem:[%s8936_s23 + $0x28] sm:$0xff] }
 0x318   :  { %v7688_v45 = vpop.eup %6739  ;;  %v1242_v51 = vsel %vm313_vm0, %v7686_v26, 0.0 }
 0x319   :  { %1243 = vadd.xlane.f32.xlu0 %v1242_v51  ;;  %v1245_v48 = vsel %vm313_vm0, %v7688_v45, 0.0 }
 0x31b   :  { %v7694_v1 = vpop.eup %6741  ;;  %1246 = vadd.xlane.f32.xlu1 %v1245_v48 }
 0x31c   :  { %v7696_v50 = vpop.eup %6743  ;;  %v1248_v47 = vsel %vm313_vm0, %v7694_v1, 0.0 }
 0x31d   :  { %1249 = vadd.xlane.f32.xlu0 %v1248_v47  ;;  %v1251_v19 = vsel %vm313_vm0, %v7696_v50, 0.0  ;;  %v6923_v47 = vld [vmem:[%s8936_s23 + $0x30] sm:$0xff] }
 0x31f   :  { %v7702_v54 = vpop.eup %6745  ;;  %1252 = vadd.xlane.f32.xlu1 %v1251_v19 }
 0x320   :  { %v7704_v31 = vpop.eup %6747  ;;  %v1254_v21 = vsel %vm313_vm0, %v7702_v54, 0.0 }
 0x321   :  { %1255 = vadd.xlane.f32.xlu0 %v1254_v21  ;;  %v1257_v57 = vsel %vm313_vm0, %v7704_v31, 0.0 }
 0x323   :  { %1258 = vadd.xlane.f32.xlu1 %v1257_v57 }
 0x38b   :  { %v759_v22 = vpop.xlane.xlu0 %758 }
 0x38c   :  { %6749 = vrcp.f32 %v759_v22 }
 0x38f   :  { %v765_v2 = vpop.xlane.xlu0 %764 }
 0x390   :  { %v762_v58 = vpop.xlane.xlu1 %761  ;;  %6751 = vrcp.f32 %v765_v2 }
 0x391   :  { %6753 = vrcp.f32 %v762_v58 }
 0x394   :  { %v768_v60 = vpop.xlane.xlu1 %767  ;;  %v771_v43 = vpop.xlane.xlu0 %770 }
 0x395   :  { %6755 = vrcp.f32 %v768_v60 }
 0x396   :  { %6757 = vrcp.f32 %v771_v43 }
 0x398   :  { %v774_v13 = vpop.xlane.xlu1 %773  ;;  %v777_v6 = vpop.xlane.xlu0 %776 }
 0x399   :  { %v6750_v59 = vpop.eup %6749  ;;  %6759 = vrcp.f32 %v774_v13 }
 0x39a   :  { %6761 = vrcp.f32 %v777_v6  ;;  %v789_v61 = vmul.f32 %v6750_v59, %v7638_v23 }
 0x39c   :  { %v780_v63 = vpop.xlane.xlu1 %779  ;;  %v797_v42 = vmul.f32 %v7722_v0, %v789_v61  ;;  %v7811_v61 = vld [vmem:[%s8919_s8 + $0x30] sm:$0xff] }
 0x39d   :  { %v6752_v5 = vpop.eup %6751  ;;  %6763 = vrcp.f32 %v780_v63 }
 0x39e   :  { %v6754_v7 = vpop.eup %6753  ;;  %v1238_v9 = vpop.xlane.xlu0 %1237  ;;  %6089 = vmatprep.mubr.msk.f32.mxu0 %vm313_vm0, %v797_v42  ;;  %v791_v56 = vmul.f32 %v6752_v5, %v7644_v62  ;;  %v7740_v62 = vld [vmem:[%s8919_s8 + $0x18] sm:$0xff] }
 0x39f   :  { %v790_v11 = vmul.f32 %v6754_v7, %v7646_v36  ;;  %6765 = vrcp.f32 %v1238_v9 }
 0x3a0   :  { %v1241_v23 = vpop.xlane.xlu1 %1240  ;;  %v799_v33 = vmul.f32 %v7731_v14, %v791_v56 }
 0x3a1   :  { %v798_v8 = vmul.f32 %v6919_v38, %v790_v11  ;;  %6767 = vrcp.f32 %v1241_v23 }
 0x3a2   :  { %v6756_v36 = vpop.eup %6755  ;;  %v1244_v16 = vpop.xlane.xlu0 %1243 }
 0x3a3   :  { %v6758_v17 = vpop.eup %6757  ;;  %6769 = vrcp.f32 %v1244_v16  ;;  %6090 = vmatmul.mubr.msk.f32.vlgmr.msra.gmra.mxu0 %vm313_vm0, %v798_v8  ;;  %v792_v24 = vmul.f32 %v6756_v36, %v7654_v12  ;;  %v7759_v12 = vld [vmem:[%s8919_s8 + $0x8] sm:$0xff] }
 0x3a4   :  { %v1247_v29 = vpop.xlane.xlu1 %1246  ;;  %6092 = vmatprep.mubr.msk.f32.mxu0 %vm313_vm0, %v799_v33  ;;  %6116 = vmatpush3.msra.mxu0 %v7740_v62  ;;  %v793_v46 = vmul.f32 %v6758_v17, %v7656_v32 }
 0x3a5   :  { %6771 = vrcp.f32 %v1247_v29  ;;  %v800_v4 = vmul.f32 %v6920_v41, %v792_v24  ;;  %6117 = vmatprep.subr.mxu0 %v7107_v27 }
 0x3a6   :  { %v6760_v37 = vpop.eup %6759  ;;  %v1250_v25 = vpop.xlane.xlu0 %1249  ;;  %v801_v32 = vmul.f32 %v6921_v52, %v793_v46  ;;  %6118 = vmatpush3.msra.mxu0 %v7747_v34 }
 0x3a7   :  { %v6762_v55 = vpop.eup %6761  ;;  %6773 = vrcp.f32 %v1250_v25  ;;  %6093 = vmatmul.mubr.msk.f32.gmra.mxu0 %vm313_vm0, %v800_v4  ;;  %v794_v3 = vmul.f32 %v6760_v37, %v7664_v35  ;;  %6119 = vmatprep.subr.mxu0 %v7107_v27 }
 0x3a8   :  { %v1253_v20 = vpop.xlane.xlu1 %1252  ;;  %6095 = vmatprep.mubr.msk.f32.mxu0 %vm313_vm0, %v801_v32  ;;  %v795_v44 = vmul.f32 %v6762_v55, %v7666_v49  ;;  %6120 = vmatpush3.msra.mxu0 %v7759_v12  ;;  %v5579_v32 = vld [vmem:[#allocation12 + $0x1] ss:$0 sm:$0xff] }
 0x3a9   :  { %6775 = vrcp.f32 %v1253_v20  ;;  %v802_v35 = vmul.f32 %v6922_v30, %v794_v3  ;;  %6121 = vmatprep.subr.mxu0 %v7107_v27 }
 0x3aa   :  { %v6764_v51 = vpop.eup %6763  ;;  %v1256_v48 = vpop.xlane.xlu0 %1255  ;;  %v803_v19 = vmul.f32 %v6923_v47, %v795_v44  ;;  %6122 = vmatpush3.msra.mxu0 %v7771_v40 }
 0x3ab   :  { %6777 = vrcp.f32 %v1256_v48  ;;  %6096 = vmatmul.mubr.msk.f32.gmra.mxu0 %vm313_vm0, %v802_v35  ;;  %v796_v49 = vmul.f32 %v6764_v51, %v7674_v39  ;;  %6137 = vmatprep.subr.mxu0 %v7107_v27 }
 0x3ac   :  { %v6766_v21 = vpop.eup %6765  ;;  %v1259_v57 = vpop.xlane.xlu1 %1258  ;;  %6098 = vmatprep.mubr.msk.f32.mxu0 %vm313_vm0, %v803_v19 }
 0x3ad   :  { %6779 = vrcp.f32 %v1259_v57  ;;  %v804_v28 = vmul.f32 %v6924_v18, %v796_v49  ;;  %v1268_v22 = vmul.f32 %v6766_v21, %v7678_v15  ;;  %v7802_v15 = vld [vmem:[%s8919_s8 + $0x38] sm:$0xff] }
 0x3ae   :  { %v6768_v2 = vpop.eup %6767 }
 0x3af   :  { %v1269_v58 = vmul.f32 %v6768_v2, %v7680_v53  ;;  %6099 = vmatmul.mubr.msk.f32.gmra.mxu0 %vm313_vm0, %v804_v28  ;;  %v1276_v39 = vmul.f32 %v7722_v0, %v1268_v22 }
 0x3b0   :  { %v6770_v60 = vpop.eup %6769  ;;  %6123 = vmatprep.mubr.msk.f32.mxu0 %vm7108_vm10, %v7107_v27 }
 0x3b1   :  { %v1277_v43 = vmul.f32 %v6919_v38, %v1269_v58  ;;  %6103 = vmatprep.mubr.msk.f32.mxu1 %vm313_vm0, %v1276_v39  ;;  %v1270_v13 = vmul.f32 %v6770_v60, %v7686_v26 }
 0x3b2   :  { %v6772_v53 = vpop.eup %6771 }
 0x3b3   :  { %6104 = vmatmul.mubr.msk.f32.vlgmr.msra.gmra.mxu1 %vm313_vm0, %v1277_v43  ;;  %6124 = vmatmul.mubr.f32.vlgmr.msra.gmra.mxu0 %v7107_v27  ;;  %v1278_v6 = vmul.f32 %v7731_v14, %v1270_v13  ;;  %v1271_v59 = vmul.f32 %v6772_v53, %v7688_v45  ;;  %v7821_v45 = vld [vmem:[%s8919_s8 + $0x28] sm:$0xff] }
 0x3b4   :  { %v6774_v26 = vpop.eup %6773  ;;  %6127 = vmatpush3.msra.mxu1 %v7802_v15  ;;  %6138 = vmatpush3.msra.mxu0 %v7740_v62 }
 0x3b5   :  { %6106 = vmatprep.mubr.msk.f32.mxu1 %vm313_vm0, %v1278_v6  ;;  %v1279_v63 = vmul.f32 %v6920_v41, %v1271_v59  ;;  %v1272_v0 = vmul.f32 %v6774_v26, %v7694_v1  ;;  %6128 = vmatprep.subr.mxu1 %v7107_v27  ;;  %v7831_v1 = vld [vmem:[%s8919_s8 + $0x20] sm:$0xff] }
 0x3b6   :  { %v6776_v42 = vpop.eup %6775  ;;  %6129 = vmatpush3.msra.mxu1 %v7811_v61  ;;  %6139 = vmatprep.subr.mxu0 %v7107_v27 }
 0x3b7   :  { %6107 = vmatmul.mubr.msk.f32.gmra.mxu1 %vm313_vm0, %v1279_v63  ;;  %v1280_v5 = vmul.f32 %v6921_v52, %v1272_v0  ;;  %v1273_v7 = vmul.f32 %v6776_v42, %v7696_v50  ;;  %6130 = vmatprep.subr.mxu1 %v7107_v27 }
 0x3b8   :  { %v6778_v9 = vpop.eup %6777  ;;  %6131 = vmatpush3.msra.mxu1 %v7821_v45  ;;  %6140 = vmatpush3.msra.mxu0 %v7747_v34 }
 0x3b9   :  { %6109 = vmatprep.mubr.msk.f32.mxu1 %vm313_vm0, %v1280_v5  ;;  %v1281_v56 = vmul.f32 %v6922_v30, %v1273_v7  ;;  %v1274_v11 = vmul.f32 %v6778_v9, %v7702_v54  ;;  %6132 = vmatprep.subr.mxu1 %v7107_v27 }
 0x3ba   :  { %v6780_v50 = vpop.eup %6779  ;;  %6133 = vmatpush3.msra.mxu1 %v7831_v1  ;;  %6141 = vmatprep.subr.mxu0 %v7107_v27 }
 0x3bb   :  { %6110 = vmatmul.mubr.msk.f32.gmra.mxu1 %vm313_vm0, %v1281_v56  ;;  %v1282_v23 = vmul.f32 %v6923_v47, %v1274_v11  ;;  %v1275_v14 = vmul.f32 %v6780_v50, %v7704_v31  ;;  %6142 = vmatpush3.msra.mxu0 %v7759_v12  ;;  %v5569_v31 = vld [vmem:[#allocation12] ss:$0 sm:$0xff] }
 0x3bc   :  { %6143 = vmatprep.subr.mxu0 %v7107_v27  ;;  %6145 = vmatprep.mubr.msk.f32.mxu0 %vm7108_vm10, %v7107_v27 }
 0x3bd   :  { %6112 = vmatprep.mubr.msk.f32.mxu1 %vm313_vm0, %v1282_v23  ;;  %v1283_v54 = vmul.f32 %v6924_v18, %v1275_v14  ;;  %6144 = vmatpush3.msra.mxu0 %v7771_v40 }
 0x3be   :  { %6148 = vmatprep.subr.mxu1 %v7107_v27  ;;  %6159 = vmatprep.subr.mxu0 %v7107_v27 }
 0x3bf   :  { %6113 = vmatmul.mubr.msk.f32.gmra.mxu1 %vm313_vm0, %v1283_v54 }
 0x3c0   :  { %6134 = vmatprep.mubr.msk.f32.mxu1 %vm7108_vm10, %v7107_v27 }
 0x3c3   :  { %6135 = vmatmul.mubr.f32.vlgmr.msra.gmra.mxu1 %v7107_v27 }
 0x3c4   :  { %6149 = vmatpush3.msra.mxu1 %v7802_v15  ;;  %6156 = vmatprep.mubr.msk.f32.mxu1 %vm7108_vm10, %v7107_v27 }
 0x3c5   :  { %6150 = vmatprep.subr.mxu1 %v7107_v27 }
 0x3c6   :  { %6151 = vmatpush3.msra.mxu1 %v7811_v61 }
 0x3c7   :  { %6152 = vmatprep.subr.mxu1 %v7107_v27 }
 0x3c8   :  { %6153 = vmatpush3.msra.mxu1 %v7821_v45 }
 0x3c9   :  { %6154 = vmatprep.subr.mxu1 %v7107_v27 }
 0x3ca   :  { %6155 = vmatpush3.msra.mxu1 %v7831_v1 }
 0x3cb   :  { %6170 = vmatprep.subr.mxu1 %v7107_v27 }
 0x463   :  { %v6091_v33 = vpop.f32.mrf.mxu0 }
 0x464   :  { %v7864_v38 = vadd.f32 %v6091_v33, %v5569_v31 }
 0x465   :  { %v1382_v8 = vpop.f32.mrf.mxu0 }
 0x466   :  { %v1383_v55 = vadd.f32 %v5569_v31, %v1382_v8 }
 0x467   :  { %v6094_v36 = vpop.f32.mrf.mxu0 }
 0x468   :  { %v7866_v16 = vadd.f32 %v6094_v36, %v5569_v31 }
 0x469   :  { %v1392_v17 = vpop.f32.mrf.mxu0 }
 0x46a   :  { %v7868_v24 = vadd.f32 %v5569_v31, %v1392_v17 }
 0x46b   :  { %v6097_v29 = vpop.f32.mrf.mxu0 }
 0x46c   :  { %v7870_v46 = vadd.f32 %v6097_v29, %v5569_v31 }
 0x46d   :  { %v1402_v41 = vpop.f32.mrf.mxu0 }
 0x46e   :  { %v7872_v4 = vadd.f32 %v5569_v31, %v1402_v41 }
 0x46f   :  { %v6100_v37 = vpop.f32.mrf.mxu0 }
 0x470   :  { %v7874_v25 = vadd.f32 %v6100_v37, %v5569_v31 }
 0x471   :  { %v1412_v52 = vpop.f32.mrf.mxu0 }
 0x472   :  { %v7876_v3 = vadd.f32 %v5569_v31, %v1412_v52 }
 0x473   :  { %v6105_v20 = vpop.f32.mrf.mxu1  ;;  %v1638_v44 = vpop.f32.mrf.mxu0 }
 0x474   :  { %v7878_v30 = vadd.f32 %v6105_v20, %v5579_v32  ;;  %v1642_v35 = vadd.f32 %v1638_v44, %v1383_v55 }
 0x475   :  { %v1521_v51 = vpop.f32.mrf.mxu1  ;;  %v6125_v48 = vpop.f32.mrf.mxu0 }
 0x476   :  { %6781 = vtanh.f32 %v1642_v35  ;;  %v7880_v47 = vadd.f32 %v5579_v32, %v1521_v51 }
 0x477   :  { %v6108_v19 = vpop.f32.mrf.mxu1 }
 0x478   :  { %v7882_v49 = vadd.f32 %v6108_v19, %v5579_v32 }
 0x479   :  { %v1531_v21 = vpop.f32.mrf.mxu1 }
 0x47a   :  { %v7884_v57 = vadd.f32 %v5579_v32, %v1531_v21 }
 0x47b   :  { %v6111_v18 = vpop.f32.mrf.mxu1 }
 0x47c   :  { %v7886_v28 = vadd.f32 %v6111_v18, %v5579_v32 }
 0x47d   :  { %v1541_v22 = vpop.f32.mrf.mxu1 }
 0x47e   :  { %v7888_v2 = vadd.f32 %v5579_v32, %v1541_v22 }
 0x47f   :  { %v6114_v58 = vpop.f32.mrf.mxu1 }
 0x480   :  { %v1557_v60 = vadd.f32 %v6114_v58, %v5579_v32 }
 0x481   :  { %v1551_v39 = vpop.f32.mrf.mxu1 }
 0x482   :  { %v1552_v43 = vadd.f32 %v5579_v32, %v1551_v39  ;;  %v2798_v39 = vld [vmem:[%s8921_s10] sm:$0xff] }
 0x483   :  { %v6782_v13 = vpop.eup %6781  ;;  %v1710_v53 = vpop.f32.mrf.mxu1 }
 0x484   :  { %1716 = vst.msk [vmem:[#allocation2] sm:$0xff] %vm451_vm5, %v6782_v13  ;;  %v1714_v6 = vadd.f32 %v1710_v53, %v1557_v60  ;;  %6146 = vmatmul.mubr.msk.f32.vlgmr.msra.gmra.mxu0 %vm451_vm5, %v6782_v13 }
 0x485   :  { %v6136_v59 = vpop.f32.mrf.mxu1  ;;  %6160 = vmatpush3.msra.mxu0 %v7740_v62  ;;  %6167 = vmatprep.mubr.msk.f32.mxu0 %vm7108_vm10, %v7107_v27 }
 0x486   :  { %6783 = vtanh.f32 %v1714_v6  ;;  %6161 = vmatprep.subr.mxu0 %v7107_v27 }
 0x487   :  { %6162 = vmatpush3.msra.mxu0 %v7747_v34 }
 0x488   :  { %6163 = vmatprep.subr.mxu0 %v7107_v27 }
 0x489   :  { %6164 = vmatpush3.msra.mxu0 %v7759_v12 }
 0x48a   :  { %6165 = vmatprep.subr.mxu0 %v7107_v27 }
 0x48b   :  { %6166 = vmatpush3.msra.mxu0 %v7771_v40 }
 0x48c   :  { %6181 = vmatprep.subr.mxu0 %v7107_v27 }
 0x493   :  { %v6784_v26 = vpop.eup %6783 }
 0x494   :  { %1717 = vst.msk [vmem:[#allocation3 + $0x38] sm:$0xff] %vm451_vm5, %v6784_v26  ;;  %6157 = vmatmul.mubr.msk.f32.vlgmr.msra.gmra.mxu1 %vm451_vm5, %v6784_v26  ;;  %v8070_v26 = vld [vmem:[%s8922_s11 + $0x18] sm:$0xff] }
 0x495   :  { %6171 = vmatpush3.msra.mxu1 %v7802_v15  ;;  %6178 = vmatprep.mubr.msk.f32.mxu1 %vm7108_vm10, %v7107_v27 }
 0x496   :  { %6172 = vmatprep.subr.mxu1 %v7107_v27 }
 0x497   :  { %6173 = vmatpush3.msra.mxu1 %v7811_v61 }
 0x498   :  { %6174 = vmatprep.subr.mxu1 %v7107_v27 }
 0x499   :  { %6175 = vmatpush3.msra.mxu1 %v7821_v45 }
 0x49a   :  { %6176 = vmatprep.subr.mxu1 %v7107_v27 }
 0x49b   :  { %6177 = vmatpush3.msra.mxu1 %v7831_v1 }
 0x49c   :  { %6192 = vmatprep.subr.mxu1 %v7107_v27 }
 0x544   :  { %v1787_v63 = vpop.f32.mrf.mxu0 }
 0x545   :  { %v1791_v0 = vadd.f32 %v1787_v63, %v7864_v38  ;;  %v8077_v63 = vld [vmem:[%s8922_s11 + $0x10] sm:$0xff] }
 0x546   :  { %v6147_v42 = vpop.f32.mrf.mxu0 }
 0x547   :  { %6785 = vtanh.f32 %v1791_v0  ;;  %v8083_v0 = vld [vmem:[%s8922_s11 + $0x8] sm:$0xff]  ;;  %v5618_v42 = vld [vmem:[%s8921_s10 + $0x38] sm:$0xff] }
 0x554   :  { %v6786_v5 = vpop.eup %6785  ;;  %v1862_v7 = vpop.f32.mrf.mxu1 }
 0x555   :  { %1868 = vst.msk [vmem:[#allocation2 + $0x8] sm:$0xff] %vm451_vm5, %v6786_v5  ;;  %v1866_v9 = vadd.f32 %v1862_v7, %v1552_v43  ;;  %6168 = vmatmul.mubr.msk.f32.vlgmr.msra.gmra.mxu0 %vm451_vm5, %v6786_v5  ;;  %v8092_v5 = vld [vmem:[%s8922_s11] sm:$0xff]  ;;  %v5617_v7 = vld [vmem:[%s8921_s10 + $0x30] sm:$0xff] }
 0x556   :  { %v6158_v56 = vpop.f32.mrf.mxu1  ;;  %6182 = vmatpush3.msra.mxu0 %v7740_v62  ;;  %6189 = vmatprep.mubr.msk.f32.mxu0 %vm7108_vm10, %v7107_v27 }
 0x557   :  { %6787 = vtanh.f32 %v1866_v9  ;;  %6183 = vmatprep.subr.mxu0 %v7107_v27  ;;  %v5616_v9 = vld [vmem:[%s8921_s10 + $0x28] sm:$0xff]  ;;  %v5615_v56 = vld [vmem:[%s8921_s10 + $0x20] sm:$0xff] }
 0x558   :  { %6184 = vmatpush3.msra.mxu0 %v7747_v34 }
 0x559   :  { %6185 = vmatprep.subr.mxu0 %v7107_v27 }
 0x55a   :  { %6186 = vmatpush3.msra.mxu0 %v7759_v12 }
 0x55b   :  { %6187 = vmatprep.subr.mxu0 %v7107_v27 }
 0x55c   :  { %6188 = vmatpush3.msra.mxu0 %v7771_v40 }
 0x55d   :  { %6203 = vmatprep.subr.mxu0 %v7107_v27 }
 0x564   :  { %v6788_v11 = vpop.eup %6787 }
 0x565   :  { %1869 = vst.msk [vmem:[#allocation3 + $0x30] sm:$0xff] %vm451_vm5, %v6788_v11  ;;  %6179 = vmatmul.mubr.msk.f32.vlgmr.msra.gmra.mxu1 %vm451_vm5, %v6788_v11 }
 0x566   :  { %6193 = vmatpush3.msra.mxu1 %v7802_v15  ;;  %6200 = vmatprep.mubr.msk.f32.mxu1 %vm7108_vm10, %v7107_v27 }
 0x567   :  { %6194 = vmatprep.subr.mxu1 %v7107_v27 }
 0x568   :  { %6195 = vmatpush3.msra.mxu1 %v7811_v61 }
 0x569   :  { %6196 = vmatprep.subr.mxu1 %v7107_v27 }
 0x56a   :  { %6197 = vmatpush3.msra.mxu1 %v7821_v45 }
 0x56b   :  { %6198 = vmatprep.subr.mxu1 %v7107_v27 }
 0x56c   :  { %6199 = vmatpush3.msra.mxu1 %v7831_v1 }
 0x56d   :  { %6214 = vmatprep.subr.mxu1 %v7107_v27 }
 0x615   :  { %v1939_v50 = vpop.f32.mrf.mxu0 }
 0x616   :  { %v1943_v23 = vadd.f32 %v1939_v50, %v7868_v24 }
 0x617   :  { %v6169_v14 = vpop.f32.mrf.mxu0 }
 0x618   :  { %6789 = vtanh.f32 %v1943_v23 }
 0x625   :  { %v6790_v54 = vpop.eup %6789  ;;  %v2014_v31 = vpop.f32.mrf.mxu1 }
 0x626   :  { %2020 = vst.msk [vmem:[#allocation2 + $0x10] sm:$0xff] %vm451_vm5, %v6790_v54  ;;  %v2018_v33 = vadd.f32 %v2014_v31, %v7886_v28  ;;  %6190 = vmatmul.mubr.msk.f32.vlgmr.msra.gmra.mxu0 %vm451_vm5, %v6790_v54 }
 0x627   :  { %v6180_v38 = vpop.f32.mrf.mxu1  ;;  %6204 = vmatpush3.msra.mxu0 %v7740_v62  ;;  %6211 = vmatprep.mubr.msk.f32.mxu0 %vm7108_vm10, %v7107_v27 }
 0x628   :  { %6791 = vtanh.f32 %v2018_v33  ;;  %6205 = vmatprep.subr.mxu0 %v7107_v27 }
 0x629   :  { %6206 = vmatpush3.msra.mxu0 %v7747_v34 }
 0x62a   :  { %6207 = vmatprep.subr.mxu0 %v7107_v27 }
 0x62b   :  { %6208 = vmatpush3.msra.mxu0 %v7759_v12 }
 0x62c   :  { %6209 = vmatprep.subr.mxu0 %v7107_v27 }
 0x62d   :  { %6210 = vmatpush3.msra.mxu0 %v7771_v40  ;;  %v2784_v60 = vld [vmem:[#allocation2 + $0x10] sm:$0xff] }
 0x62e   :  { %6225 = vmatprep.subr.mxu0 %v7107_v27 }
 0x635   :  { %v6792_v8 = vpop.eup %6791 }
 0x636   :  { %2021 = vst.msk [vmem:[#allocation3 + $0x28] sm:$0xff] %vm451_vm5, %v6792_v8  ;;  %6201 = vmatmul.mubr.msk.f32.vlgmr.msra.gmra.mxu1 %vm451_vm5, %v6792_v8  ;;  %v8129_v8 = vld [vmem:[%s8922_s11 + $0x38] sm:$0xff] }
 0x637   :  { %6215 = vmatpush3.msra.mxu1 %v7802_v15  ;;  %6222 = vmatprep.mubr.msk.f32.mxu1 %vm7108_vm10, %v7107_v27 }
 0x638   :  { %6216 = vmatprep.subr.mxu1 %v7107_v27 }
 0x639   :  { %6217 = vmatpush3.msra.mxu1 %v7811_v61 }
 0x63a   :  { %6218 = vmatprep.subr.mxu1 %v7107_v27 }
 0x63b   :  { %6219 = vmatpush3.msra.mxu1 %v7821_v45 }
 0x63c   :  { %6220 = vmatprep.subr.mxu1 %v7107_v27 }
 0x63d   :  { %6221 = vmatpush3.msra.mxu1 %v7831_v1 }
 0x63e   :  { %6236 = vmatprep.subr.mxu1 %v7107_v27 }
 0x6e6   :  { %v2091_v36 = vpop.f32.mrf.mxu0 }
 0x6e7   :  { %v2095_v17 = vadd.f32 %v2091_v36, %v7866_v16 }
 0x6e8   :  { %v6191_v24 = vpop.f32.mrf.mxu0 }
 0x6e9   :  { %6793 = vtanh.f32 %v2095_v17  ;;  %v8136_v24 = vld [vmem:[%s8922_s11 + $0x30] sm:$0xff] }
 0x6f6   :  { %v6794_v29 = vpop.eup %6793  ;;  %v2166_v41 = vpop.f32.mrf.mxu1 }
 0x6f7   :  { %2172 = vst.msk [vmem:[#allocation2 + $0x18] sm:$0xff] %vm451_vm5, %v6794_v29  ;;  %v2170_v37 = vadd.f32 %v2166_v41, %v7888_v2  ;;  %6212 = vmatmul.mubr.msk.f32.vlgmr.msra.gmra.mxu0 %vm451_vm5, %v6794_v29  ;;  %v8144_v29 = vld [vmem:[%s8922_s11 + $0x28] sm:$0xff] }
 0x6f8   :  { %v6202_v52 = vpop.f32.mrf.mxu1  ;;  %6226 = vmatpush3.msra.mxu0 %v7740_v62  ;;  %6233 = vmatprep.mubr.msk.f32.mxu0 %vm7108_vm10, %v7107_v27 }
 0x6f9   :  { %6795 = vtanh.f32 %v2170_v37  ;;  %6227 = vmatprep.subr.mxu0 %v7107_v27  ;;  %v8152_v52 = vld [vmem:[%s8922_s11 + $0x20] sm:$0xff] }
 0x6fa   :  { %6228 = vmatpush3.msra.mxu0 %v7747_v34 }
 0x6fb   :  { %6229 = vmatprep.subr.mxu0 %v7107_v27 }
 0x6fc   :  { %6230 = vmatpush3.msra.mxu0 %v7759_v12 }
 0x6fd   :  { %6231 = vmatprep.subr.mxu0 %v7107_v27 }
 0x6fe   :  { %6232 = vmatpush3.msra.mxu0 %v7771_v40  ;;  %v2785_v43 = vld [vmem:[#allocation2 + $0x18] sm:$0xff] }
 0x6ff   :  { %6247 = vmatprep.subr.mxu0 %v7107_v27 }
 0x706   :  { %v6796_v16 = vpop.eup %6795 }
 0x707   :  { %2173 = vst.msk [vmem:[#allocation3 + $0x20] sm:$0xff] %vm451_vm5, %v6796_v16  ;;  %6223 = vmatmul.mubr.msk.f32.vlgmr.msra.gmra.mxu1 %vm451_vm5, %v6796_v16  ;;  %v2795_v16 = vld [vmem:[#allocation3 + $0x28] sm:$0xff] }
 0x708   :  { %6237 = vmatpush3.msra.mxu1 %v7802_v15  ;;  %6244 = vmatprep.mubr.msk.f32.mxu1 %vm7108_vm10, %v7107_v27 }
 0x709   :  { %6238 = vmatprep.subr.mxu1 %v7107_v27 }
 0x70a   :  { %6239 = vmatpush3.msra.mxu1 %v7811_v61 }
 0x70b   :  { %6240 = vmatprep.subr.mxu1 %v7107_v27 }
 0x70c   :  { %6241 = vmatpush3.msra.mxu1 %v7821_v45 }
 0x70d   :  { %6242 = vmatprep.subr.mxu1 %v7107_v27 }
 0x70e   :  { %6243 = vmatpush3.msra.mxu1 %v7831_v1  ;;  %v2794_v37 = vld [vmem:[#allocation3 + $0x20] sm:$0xff] }
 0x70f   :  { %6258 = vmatprep.subr.mxu1 %v7107_v27 }
 0x7b7   :  { %v2243_v32 = vpop.f32.mrf.mxu0 }
 0x7b8   :  { %v2247_v55 = vadd.f32 %v2243_v32, %v7872_v4  ;;  %v2796_v32 = vld [vmem:[#allocation3 + $0x30] sm:$0xff] }
 0x7b9   :  { %v6213_v20 = vpop.f32.mrf.mxu0 }
 0x7ba   :  { %6797 = vtanh.f32 %v2247_v55  ;;  %v2797_v55 = vld [vmem:[#allocation3 + $0x38] sm:$0xff] }
 0x7c7   :  { %v6798_v44 = vpop.eup %6797  ;;  %v2318_v35 = vpop.f32.mrf.mxu1 }
 0x7c8   :  { %2324 = vst.msk [vmem:[#allocation2 + $0x20] sm:$0xff] %vm451_vm5, %v6798_v44  ;;  %v2322_v51 = vadd.f32 %v2318_v35, %v7882_v49  ;;  %6234 = vmatmul.mubr.msk.f32.vlgmr.msra.gmra.mxu0 %vm451_vm5, %v6798_v44 }
 0x7c9   :  { %v6224_v48 = vpop.f32.mrf.mxu1  ;;  %6248 = vmatpush3.msra.mxu0 %v7740_v62  ;;  %6255 = vmatprep.mubr.msk.f32.mxu0 %vm7108_vm10, %v7107_v27 }
 0x7ca   :  { %6799 = vtanh.f32 %v2322_v51  ;;  %6249 = vmatprep.subr.mxu0 %v7107_v27 }
 0x7cb   :  { %6250 = vmatpush3.msra.mxu0 %v7747_v34 }
 0x7cc   :  { %6251 = vmatprep.subr.mxu0 %v7107_v27 }
 0x7cd   :  { %6252 = vmatpush3.msra.mxu0 %v7759_v12 }
 0x7ce   :  { %6253 = vmatprep.subr.mxu0 %v7107_v27 }
 0x7cf   :  { %6254 = vmatpush3.msra.mxu0 %v7771_v40  ;;  %v2786_v13 = vld [vmem:[#allocation2 + $0x20] sm:$0xff] }
 0x7d0   :  { %6269 = vmatprep.subr.mxu0 %v7107_v27 }
 0x7d7   :  { %v6800_v4 = vpop.eup %6799 }
 0x7d8   :  { %2325 = vst.msk [vmem:[#allocation3 + $0x18] sm:$0xff] %vm451_vm5, %v6800_v4  ;;  %6245 = vmatmul.mubr.msk.f32.vlgmr.msra.gmra.mxu1 %vm451_vm5, %v6800_v4 }
 0x7d9   :  { %6259 = vmatpush3.msra.mxu1 %v7802_v15  ;;  %6266 = vmatprep.mubr.msk.f32.mxu1 %vm7108_vm10, %v7107_v27 }
 0x7da   :  { %6260 = vmatprep.subr.mxu1 %v7107_v27 }
 0x7db   :  { %6261 = vmatpush3.msra.mxu1 %v7811_v61 }
 0x7dc   :  { %6262 = vmatprep.subr.mxu1 %v7107_v27 }
 0x7dd   :  { %6263 = vmatpush3.msra.mxu1 %v7821_v45 }
 0x7de   :  { %6264 = vmatprep.subr.mxu1 %v7107_v27 }
 0x7df   :  { %6265 = vmatpush3.msra.mxu1 %v7831_v1  ;;  %v2793_v41 = vld [vmem:[#allocation3 + $0x18] sm:$0xff] }
 0x7e0   :  { %6280 = vmatprep.subr.mxu1 %v7107_v27 }
 0x888   :  { %v2395_v19 = vpop.f32.mrf.mxu0 }
 0x889   :  { %v2399_v49 = vadd.f32 %v2395_v19, %v7870_v46 }
 0x88a   :  { %v6235_v21 = vpop.f32.mrf.mxu0 }
 0x88b   :  { %6801 = vtanh.f32 %v2399_v49  ;;  %v8188_v49 = vld [vmem:[%s8923_s12] ss:$0 sm:$0xff] }
 0x898   :  { %v6802_v18 = vpop.eup %6801  ;;  %v2470_v28 = vpop.f32.mrf.mxu1 }
 0x899   :  { %2476 = vst.msk [vmem:[#allocation2 + $0x28] sm:$0xff] %vm451_vm5, %v6802_v18  ;;  %v2474_v22 = vadd.f32 %v2470_v28, %v7884_v57  ;;  %6256 = vmatmul.mubr.msk.f32.vlgmr.msra.gmra.mxu0 %vm451_vm5, %v6802_v18  ;;  %v2782_v57 = vld [vmem:[#allocation2] sm:$0xff] }
 0x89a   :  { %v6246_v2 = vpop.f32.mrf.mxu1  ;;  %6270 = vmatpush3.msra.mxu0 %v7740_v62  ;;  %6277 = vmatprep.mubr.msk.f32.mxu0 %vm7108_vm10, %v7107_v27  ;;  %v2801_v62 = vld [vmem:[%s8921_s10 + $0x18] sm:$0xff] }
 0x89b   :  { %6803 = vtanh.f32 %v2474_v22  ;;  %6271 = vmatprep.subr.mxu0 %v7107_v27 }
 0x89c   :  { %6272 = vmatpush3.msra.mxu0 %v7747_v34 }
 0x89d   :  { %6273 = vmatprep.subr.mxu0 %v7107_v27 }
 0x89e   :  { %6274 = vmatpush3.msra.mxu0 %v7759_v12 }
 0x89f   :  { %6275 = vmatprep.subr.mxu0 %v7107_v27 }
 0x8a0   :  { %6276 = vmatpush3.msra.mxu0 %v7771_v40  ;;  %v2787_v6 = vld [vmem:[#allocation2 + $0x28] sm:$0xff] }
 0x8a1   :  { %6291 = vmatprep.subr.mxu0 %v2801_v62 }
 0x8a8   :  { %v6804_v46 = vpop.eup %6803 }
 0x8a9   :  { %2477 = vst.msk [vmem:[#allocation3 + $0x10] sm:$0xff] %vm451_vm5, %v6804_v46  ;;  %6267 = vmatmul.mubr.msk.f32.vlgmr.msra.gmra.mxu1 %vm451_vm5, %v6804_v46  ;;  %v5620_v46 = vld [vmem:[%s8923_s12 + $0x1] ss:$0 sm:$0xff] }
 0x8aa   :  { %6281 = vmatpush3.msra.mxu1 %v7802_v15  ;;  %6288 = vmatprep.mubr.msk.f32.mxu1 %vm7108_vm10, %v7107_v27 }
 0x8ab   :  { %6282 = vmatprep.subr.mxu1 %v7107_v27 }
 0x8ac   :  { %6283 = vmatpush3.msra.mxu1 %v7811_v61 }
 0x8ad   :  { %6284 = vmatprep.subr.mxu1 %v7107_v27 }
 0x8ae   :  { %6285 = vmatpush3.msra.mxu1 %v7821_v45  ;;  %v2800_v45 = vld [vmem:[%s8921_s10 + $0x10] sm:$0xff] }
 0x8af   :  { %6286 = vmatprep.subr.mxu1 %v7107_v27 }
 0x8b0   :  { %6287 = vmatpush3.msra.mxu1 %v7831_v1  ;;  %v2792_v17 = vld [vmem:[#allocation3 + $0x10] sm:$0xff] }
 0x8b1   :  { %6311 = vmatprep.subr.mxu1 %v5618_v42 }
 0x959   :  { %v2547_v34 = vpop.f32.mrf.mxu0 }
 0x95a   :  { %v2551_v12 = vadd.f32 %v2547_v34, %v7876_v3  ;;  %v2799_v3 = vld [vmem:[%s8921_s10 + $0x8] sm:$0xff] }
 0x95b   :  { %v6257_v40 = vpop.f32.mrf.mxu0 }
 0x95c   :  { %6805 = vtanh.f32 %v2551_v12 }
 0x969   :  { %v6806_v15 = vpop.eup %6805  ;;  %v2622_v61 = vpop.f32.mrf.mxu1 }
 0x96a   :  { %2628 = vst.msk [vmem:[#allocation2 + $0x30] sm:$0xff] %vm451_vm5, %v6806_v15  ;;  %v2626_v1 = vadd.f32 %v2622_v61, %v7878_v30  ;;  %6278 = vmatmul.mubr.msk.f32.vlgmr.msra.gmra.mxu0 %vm451_vm5, %v6806_v15  ;;  %v2783_v30 = vld [vmem:[#allocation2 + $0x8] sm:$0xff] }
 0x96b   :  { %6292 = vmatpush3.msra.mxu0 %v2801_v62  ;;  %v6268_v58 = vpop.f32.mrf.mxu1  ;;  %6299 = vmatprep.mubr.msk.f32.mxu0 %vm451_vm5, %v2782_v57 }
 0x96c   :  { %6807 = vtanh.f32 %v2626_v1  ;;  %6293 = vmatprep.subr.mxu0 %v2800_v45 }
 0x96d   :  { %6294 = vmatpush3.msra.mxu0 %v2800_v45 }
 0x96e   :  { %6295 = vmatprep.subr.mxu0 %v2799_v3 }
 0x96f   :  { %6296 = vmatpush3.msra.mxu0 %v2799_v3 }
 0x970   :  { %6297 = vmatprep.subr.mxu0 %v2798_v39 }
 0x971   :  { %6298 = vmatpush3.msra.mxu0 %v2798_v39  ;;  %v2788_v59 = vld [vmem:[#allocation2 + $0x30] sm:$0xff] }
 0x972   :  { %6300 = vmatmul.mubr.msk.f32.vlgmr.msra.gmra.mxu0 %vm451_vm5, %v2783_v30  ;;  %6331 = vmatprep.subr.mxu0 %v7107_v27 }
 0x973   :  { %6302 = vmatprep.mubr.msk.f32.mxu0 %vm451_vm5, %v2784_v60  ;;  %6332 = vmatpush3.msra.mxu0 %v8070_v26 }
 0x974   :  { %6333 = vmatprep.subr.mxu0 %v7107_v27 }
 0x975   :  { %6334 = vmatpush3.msra.mxu0 %v8077_v63 }
 0x976   :  { %6303 = vmatmul.mubr.msk.f32.gmra.mxu0 %vm451_vm5, %v2785_v43  ;;  %6335 = vmatprep.subr.mxu0 %v7107_v27 }
 0x977   :  { %6305 = vmatprep.mubr.msk.f32.mxu0 %vm451_vm5, %v2786_v13  ;;  %6336 = vmatpush3.msra.mxu0 %v8083_v0 }
 0x978   :  { %6337 = vmatprep.subr.mxu0 %v7107_v27 }
 0x979   :  { %v6808_v53 = vpop.eup %6807  ;;  %6338 = vmatpush3.msra.mxu0 %v8092_v5 }
 0x97a   :  { %2629 = vst.msk [vmem:[#allocation3 + $0x8] sm:$0xff] %vm451_vm5, %v6808_v53  ;;  %6306 = vmatmul.mubr.msk.f32.gmra.mxu0 %vm451_vm5, %v2787_v6  ;;  %6289 = vmatmul.mubr.msk.f32.vlgmr.msra.gmra.mxu1 %vm451_vm5, %v6808_v53 }
 0x97b   :  { %6308 = vmatprep.mubr.msk.f32.mxu0 %vm451_vm5, %v2788_v59  ;;  %6312 = vmatpush3.msra.mxu1 %v5618_v42 }
 0x97c   :  { %6313 = vmatprep.subr.mxu1 %v5617_v7  ;;  %6353 = vmatprep.subr.mxu0 %v7107_v27 }
 0x97d   :  { %6314 = vmatpush3.msra.mxu1 %v5617_v7 }
 0x97e   :  { %6315 = vmatprep.subr.mxu1 %v5616_v9 }
 0x97f   :  { %6316 = vmatpush3.msra.mxu1 %v5616_v9 }
 0x980   :  { %6317 = vmatprep.subr.mxu1 %v5615_v56 }
 0x981   :  { %6318 = vmatpush3.msra.mxu1 %v5615_v56  ;;  %v2791_v36 = vld [vmem:[#allocation3 + $0x8] sm:$0xff] }
 0x982   :  { %6342 = vmatprep.subr.mxu1 %v7107_v27 }
 0xa2a   :  { %v2699_v11 = vpop.f32.mrf.mxu0 }
 0xa2b   :  { %v2703_v50 = vadd.f32 %v2699_v11, %v7874_v25 }
 0xa2c   :  { %v6279_v23 = vpop.f32.mrf.mxu0 }
 0xa2d   :  { %6809 = vtanh.f32 %v2703_v50 }
 0xa32   :  { %v6301_v20 = vpop.f32.mrf.mxu0 }
 0xa33   :  { %v2905_v9 = vadd.f32 %v6301_v20, %v8188_v49 }
 0xa34   :  { %v2899_v44 = vpop.f32.mrf.mxu0 }
 0xa35   :  { %v2900_v18 = vadd.f32 %v8188_v49, %v2899_v44 }
 0xa36   :  { %v8175_v35 = vpop.f32.mrf.mxu0 }
 0xa38   :  { %v8177_v51 = vpop.f32.mrf.mxu0 }
 0xa3a   :  { %v6810_v14 = vpop.eup %6809  ;;  %v2774_v54 = vpop.f32.mrf.mxu1 }
 0xa3b   :  { %2780 = vst.msk [vmem:[#allocation2 + $0x38] sm:$0xff] %vm451_vm5, %v6810_v14  ;;  %v2778_v31 = vadd.f32 %v2774_v54, %v7880_v47  ;;  %v8179_v48 = vpop.f32.mrf.mxu0 }
 0xa3c   :  { %v6290_v33 = vpop.f32.mrf.mxu1 }
 0xa3d   :  { %6811 = vtanh.f32 %v2778_v31  ;;  %v8181_v4 = vpop.f32.mrf.mxu0 }
 0xa42   :  { %v2789_v38 = vld [vmem:[#allocation2 + $0x38] sm:$0xff] }
 0xa43   :  { %6309 = vmatmul.mubr.msk.f32.gmra.mxu0 %vm451_vm5, %v2789_v38  ;;  %v2910_v38 = vadd.f32 %v8188_v49, %v8177_v51 }
 0xa44   :  { %6339 = vmatprep.mubr.msk.f32.mxu0 %vm7108_vm10, %v7107_v27 }
 0xa47   :  { %6340 = vmatmul.mubr.f32.vlgmr.msra.gmra.mxu0 %v7107_v27 }
 0xa48   :  { %6354 = vmatpush3.msra.mxu0 %v8070_v26  ;;  %6361 = vmatprep.mubr.msk.f32.mxu0 %vm7108_vm10, %v7107_v27 }
 0xa49   :  { %6355 = vmatprep.subr.mxu0 %v7107_v27 }
 0xa4a   :  { %v6812_v25 = vpop.eup %6811  ;;  %6356 = vmatpush3.msra.mxu0 %v8077_v63 }
 0xa4b   :  { %2781 = vst.msk [vmem:[#allocation3] sm:$0xff] %vm451_vm5, %v6812_v25  ;;  %6357 = vmatprep.subr.mxu0 %v7107_v27 }
 0xa4c   :  { %6358 = vmatpush3.msra.mxu0 %v8083_v0 }
 0xa4d   :  { %6359 = vmatprep.subr.mxu0 %v7107_v27 }
 0xa4e   :  { %6360 = vmatpush3.msra.mxu0 %v8092_v5 }
 0xa4f   :  { %6375 = vmatprep.subr.mxu0 %v7107_v27 }
 0xa52   :  { %v2790_v47 = vld [vmem:[#allocation3] sm:$0xff] }
 0xa53   :  { %6319 = vmatprep.mubr.msk.f32.mxu1 %vm451_vm5, %v2790_v47 }
 0xa54   :  { %6320 = vmatmul.mubr.msk.f32.vlgmr.msra.gmra.mxu1 %vm451_vm5, %v2791_v36 }
 0xa55   :  { %6322 = vmatprep.mubr.msk.f32.mxu1 %vm451_vm5, %v2792_v17  ;;  %6343 = vmatpush3.msra.mxu1 %v8129_v8 }
 0xa56   :  { %6344 = vmatprep.subr.mxu1 %v7107_v27 }
 0xa57   :  { %6345 = vmatpush3.msra.mxu1 %v8136_v24 }
 0xa58   :  { %6323 = vmatmul.mubr.msk.f32.gmra.mxu1 %vm451_vm5, %v2793_v41  ;;  %6346 = vmatprep.subr.mxu1 %v7107_v27 }
 0xa59   :  { %6325 = vmatprep.mubr.msk.f32.mxu1 %vm451_vm5, %v2794_v37  ;;  %6347 = vmatpush3.msra.mxu1 %v8144_v29 }
 0xa5a   :  { %6348 = vmatprep.subr.mxu1 %v7107_v27 }
 0xa5b   :  { %6349 = vmatpush3.msra.mxu1 %v8152_v52 }
 0xa5c   :  { %6326 = vmatmul.mubr.msk.f32.gmra.mxu1 %vm451_vm5, %v2795_v16  ;;  %6364 = vmatprep.subr.mxu1 %v7107_v27 }
 0xa5d   :  { %6328 = vmatprep.mubr.msk.f32.mxu1 %vm451_vm5, %v2796_v32 }
 0xa60   :  { %6329 = vmatmul.mubr.msk.f32.gmra.mxu1 %vm451_vm5, %v2797_v55  ;;  %v2915_v55 = vadd.f32 %v8175_v35, %v8188_v49 }
 0xa61   :  { %6350 = vmatprep.mubr.msk.f32.mxu1 %vm7108_vm10, %v7107_v27 }
 0xa64   :  { %6351 = vmatmul.mubr.f32.vlgmr.msra.gmra.mxu1 %v7107_v27 }
 0xa65   :  { %6365 = vmatpush3.msra.mxu1 %v8129_v8  ;;  %6372 = vmatprep.mubr.msk.f32.mxu1 %vm7108_vm10, %v7107_v27 }
 0xa66   :  { %6366 = vmatprep.subr.mxu1 %v7107_v27 }
 0xa67   :  { %6367 = vmatpush3.msra.mxu1 %v8136_v24 }
 0xa68   :  { %6368 = vmatprep.subr.mxu1 %v7107_v27 }
 0xa69   :  { %6369 = vmatpush3.msra.mxu1 %v8144_v29 }
 0xa6a   :  { %6370 = vmatprep.subr.mxu1 %v7107_v27 }
 0xa6b   :  { %6371 = vmatpush3.msra.mxu1 %v8152_v52 }
 0xa6c   :  { %6386 = vmatprep.subr.mxu1 %v7107_v27 }
 0xb03   :  { %v8183_v19 = vpop.f32.mrf.mxu0 }
 0xb05   :  { %v8190_v21 = vpop.f32.mrf.mxu0 }
 0xb07   :  { %v3155_v28 = vpop.f32.mrf.mxu0 }
 0xb08   :  { %v3159_v22 = vadd.f32 %v3155_v28, %v2900_v18 }
 0xb09   :  { %v6341_v2 = vpop.f32.mrf.mxu0 }
 0xb0a   :  { %6813 = vtanh.f32 %v3159_v22 }
 0xb14   :  { %v6321_v62 = vpop.f32.mrf.mxu1 }
 0xb15   :  { %v8196_v34 = vadd.f32 %v6321_v62, %v5620_v46 }
 0xb16   :  { %v3041_v12 = vpop.f32.mrf.mxu1 }
 0xb17   :  { %v6814_v40 = vpop.eup %6813  ;;  %v8198_v15 = vadd.f32 %v5620_v46, %v3041_v12 }
 0xb18   :  { %3233 = vst.msk [vmem:[#allocation2] sm:$0xff] %vm451_vm5, %v6814_v40  ;;  %v6324_v61 = vpop.f32.mrf.mxu1  ;;  %6362 = vmatmul.mubr.msk.f32.vlgmr.msra.gmra.mxu0 %vm451_vm5, %v6814_v40 }
 0xb19   :  { %v8202_v45 = vadd.f32 %v6324_v61, %v5620_v46  ;;  %6376 = vmatpush3.msra.mxu0 %v8070_v26  ;;  %6383 = vmatprep.mubr.msk.f32.mxu0 %vm7108_vm10, %v7107_v27 }
 0xb1a   :  { %v3051_v1 = vpop.f32.mrf.mxu1  ;;  %6377 = vmatprep.subr.mxu0 %v7107_v27 }
 0xb1b   :  { %v8208_v57 = vadd.f32 %v5620_v46, %v3051_v1  ;;  %6378 = vmatpush3.msra.mxu0 %v8077_v63 }
 0xb1c   :  { %v6327_v58 = vpop.f32.mrf.mxu1  ;;  %6379 = vmatprep.subr.mxu0 %v7107_v27 }
 0xb1d   :  { %v8212_v3 = vadd.f32 %v6327_v58, %v5620_v46  ;;  %6380 = vmatpush3.msra.mxu0 %v8083_v0 }
 0xb1e   :  { %v3061_v39 = vpop.f32.mrf.mxu1  ;;  %6381 = vmatprep.subr.mxu0 %v7107_v27 }
 0xb1f   :  { %v8216_v30 = vadd.f32 %v5620_v46, %v3061_v39  ;;  %6382 = vmatpush3.msra.mxu0 %v8092_v5 }
 0xb20   :  { %v6330_v60 = vpop.f32.mrf.mxu1  ;;  %6397 = vmatprep.subr.mxu0 %v7107_v27 }
 0xb21   :  { %v3077_v13 = vadd.f32 %v6330_v60, %v5620_v46 }
 0xb22   :  { %v3071_v43 = vpop.f32.mrf.mxu1 }
 0xb23   :  { %v3072_v53 = vadd.f32 %v5620_v46, %v3071_v43  ;;  %v2920_v46 = vadd.f32 %v8188_v49, %v8181_v4 }
 0xb24   :  { %v3227_v6 = vpop.f32.mrf.mxu1 }
 0xb25   :  { %v3231_v59 = vadd.f32 %v3227_v6, %v3077_v13  ;;  %v4304_v6 = vld [vmem:[%s8924_s13] sm:$0xff] }
 0xb26   :  { %v6352_v42 = vpop.f32.mrf.mxu1 }
 0xb27   :  { %6815 = vtanh.f32 %v3231_v59  ;;  %v4303_v59 = vld [vmem:[%s8928_s17 + $0x8] sm:$0xff] }
 0xb34   :  { %v6816_v7 = vpop.eup %6815 }
 0xb35   :  { %3234 = vst.msk [vmem:[#allocation3 + $0x38] sm:$0xff] %vm451_vm5, %v6816_v7  ;;  %6373 = vmatmul.mubr.msk.f32.vlgmr.msra.gmra.mxu1 %vm451_vm5, %v6816_v7 }
 0xb36   :  { %6387 = vmatpush3.msra.mxu1 %v8129_v8  ;;  %6394 = vmatprep.mubr.msk.f32.mxu1 %vm7108_vm10, %v7107_v27 }
 0xb37   :  { %6388 = vmatprep.subr.mxu1 %v7107_v27 }
 0xb38   :  { %6389 = vmatpush3.msra.mxu1 %v8136_v24 }
 0xb39   :  { %6390 = vmatprep.subr.mxu1 %v7107_v27 }
 0xb3a   :  { %6391 = vmatpush3.msra.mxu1 %v8144_v29 }
 0xb3b   :  { %6392 = vmatprep.subr.mxu1 %v7107_v27 }
 0xb3c   :  { %6393 = vmatpush3.msra.mxu1 %v8152_v52 }
 0xb3d   :  { %6408 = vmatprep.subr.mxu1 %v7107_v27 }
 0xbd8   :  { %v3304_v56 = vpop.f32.mrf.mxu0 }
 0xbd9   :  { %v3308_v11 = vadd.f32 %v3304_v56, %v2905_v9  ;;  %v5674_v9 = vld [vmem:[%s8924_s13 + $0x38] sm:$0xff] }
 0xbda   :  { %v6363_v50 = vpop.f32.mrf.mxu0 }
 0xbdb   :  { %6817 = vtanh.f32 %v3308_v11  ;;  %v4524_v11 = vld [vmem:[#allocation2] sm:$0xff]  ;;  %v5673_v50 = vld [vmem:[%s8924_s13 + $0x30] sm:$0xff] }
 0xbe8   :  { %v6818_v23 = vpop.eup %6817 }
 0xbe9   :  { %3385 = vst.msk [vmem:[#allocation2 + $0x8] sm:$0xff] %vm451_vm5, %v6818_v23  ;;  %6384 = vmatmul.mubr.msk.f32.vlgmr.msra.gmra.mxu0 %vm451_vm5, %v6818_v23 }
 0xbea   :  { %6398 = vmatpush3.msra.mxu0 %v8070_v26  ;;  %6405 = vmatprep.mubr.msk.f32.mxu0 %vm7108_vm10, %v7107_v27 }
 0xbeb   :  { %6399 = vmatprep.subr.mxu0 %v7107_v27 }
 0xbec   :  { %6400 = vmatpush3.msra.mxu0 %v8077_v63 }
 0xbed   :  { %6401 = vmatprep.subr.mxu0 %v7107_v27 }
 0xbee   :  { %6402 = vmatpush3.msra.mxu0 %v8083_v0 }
 0xbef   :  { %6403 = vmatprep.subr.mxu0 %v7107_v27 }
 0xbf0   :  { %6404 = vmatpush3.msra.mxu0 %v8092_v5  ;;  %v4525_v23 = vld [vmem:[#allocation2 + $0x8] sm:$0xff] }
 0xbf1   :  { %6419 = vmatprep.subr.mxu0 %v7107_v27 }
 0xbf5   :  { %v3379_v14 = vpop.f32.mrf.mxu1 }
 0xbf6   :  { %v3383_v54 = vadd.f32 %v3379_v14, %v3072_v53  ;;  %v5671_v14 = vld [vmem:[%s8924_s13 + $0x20] sm:$0xff] }
 0xbf7   :  { %v6374_v31 = vpop.f32.mrf.mxu1 }
 0xbf8   :  { %6819 = vtanh.f32 %v3383_v54 }
 0xc05   :  { %v6820_v33 = vpop.eup %6819 }
 0xc06   :  { %3386 = vst.msk [vmem:[#allocation3 + $0x30] sm:$0xff] %vm451_vm5, %v6820_v33  ;;  %6395 = vmatmul.mubr.msk.f32.vlgmr.msra.gmra.mxu1 %vm451_vm5, %v6820_v33 }
 0xc07   :  { %6409 = vmatpush3.msra.mxu1 %v8129_v8  ;;  %6416 = vmatprep.mubr.msk.f32.mxu1 %vm7108_vm10, %v7107_v27 }
 0xc08   :  { %6410 = vmatprep.subr.mxu1 %v7107_v27 }
 0xc09   :  { %6411 = vmatpush3.msra.mxu1 %v8136_v24 }
 0xc0a   :  { %6412 = vmatprep.subr.mxu1 %v7107_v27 }
 0xc0b   :  { %6413 = vmatpush3.msra.mxu1 %v8144_v29 }
 0xc0c   :  { %6414 = vmatprep.subr.mxu1 %v7107_v27 }
 0xc0d   :  { %6415 = vmatpush3.msra.mxu1 %v8152_v52 }
 0xc0e   :  { %6430 = vmatprep.subr.mxu1 %v7107_v27 }
 0xca9   :  { %v3456_v25 = vpop.f32.mrf.mxu0 }
 0xcaa   :  { %v3460_v47 = vadd.f32 %v3456_v25, %v2910_v38 }
 0xcab   :  { %v6385_v36 = vpop.f32.mrf.mxu0 }
 0xcac   :  { %6821 = vtanh.f32 %v3460_v47  ;;  %v5669_v47 = vld [vmem:[%s8928_s17 + $0x10] sm:$0xff] }
 0xcb9   :  { %v6822_v17 = vpop.eup %6821 }
 0xcba   :  { %3537 = vst.msk [vmem:[#allocation2 + $0x10] sm:$0xff] %vm451_vm5, %v6822_v17  ;;  %6406 = vmatmul.mubr.msk.f32.vlgmr.msra.gmra.mxu0 %vm451_vm5, %v6822_v17  ;;  %v5670_v17 = vld [vmem:[%s8928_s17 + $0x18] sm:$0xff] }
 0xcbb   :  { %6420 = vmatpush3.msra.mxu0 %v8070_v26  ;;  %6427 = vmatprep.mubr.msk.f32.mxu0 %vm7108_vm10, %v7107_v27 }
 0xcbc   :  { %6421 = vmatprep.subr.mxu0 %v7107_v27 }
 0xcbd   :  { %6422 = vmatpush3.msra.mxu0 %v8077_v63 }
 0xcbe   :  { %6423 = vmatprep.subr.mxu0 %v7107_v27 }
 0xcbf   :  { %6424 = vmatpush3.msra.mxu0 %v8083_v0 }
 0xcc0   :  { %6425 = vmatprep.subr.mxu0 %v7107_v27 }
 0xcc1   :  { %6426 = vmatpush3.msra.mxu0 %v8092_v5  ;;  %v4526_v54 = vld [vmem:[#allocation2 + $0x10] sm:$0xff] }
 0xcc2   :  { %6441 = vmatprep.subr.mxu0 %v7107_v27 }
 0xcc6   :  { %v3531_v41 = vpop.f32.mrf.mxu1 }
 0xcc7   :  { %v3535_v37 = vadd.f32 %v3531_v41, %v8212_v3 }
 0xcc8   :  { %v6396_v16 = vpop.f32.mrf.mxu1 }
 0xcc9   :  { %6823 = vtanh.f32 %v3535_v37 }
 0xcd6   :  { %v6824_v32 = vpop.eup %6823 }
 0xcd7   :  { %3538 = vst.msk [vmem:[#allocation3 + $0x28] sm:$0xff] %vm451_vm5, %v6824_v32  ;;  %6417 = vmatmul.mubr.msk.f32.vlgmr.msra.gmra.mxu1 %vm451_vm5, %v6824_v32 }
 0xcd8   :  { %6431 = vmatpush3.msra.mxu1 %v8129_v8  ;;  %6438 = vmatprep.mubr.msk.f32.mxu1 %vm7108_vm10, %v7107_v27 }
 0xcd9   :  { %6432 = vmatprep.subr.mxu1 %v7107_v27 }
 0xcda   :  { %6433 = vmatpush3.msra.mxu1 %v8136_v24 }
 0xcdb   :  { %6434 = vmatprep.subr.mxu1 %v7107_v27 }
 0xcdc   :  { %6435 = vmatpush3.msra.mxu1 %v8144_v29 }
 0xcdd   :  { %6436 = vmatprep.subr.mxu1 %v7107_v27 }
 0xcde   :  { %6437 = vmatpush3.msra.mxu1 %v8152_v52 }
 0xcdf   :  { %6452 = vmatprep.subr.mxu1 %v7107_v27 }
 0xd7a   :  { %v3608_v20 = vpop.f32.mrf.mxu0 }
 0xd7b   :  { %v3612_v44 = vadd.f32 %v3608_v20, %v2915_v55  ;;  %v5141_v55 = vld [vmem:[#allocation3 + $0x28] sm:$0xff]  ;;  %v5142_v20 = vld [vmem:[#allocation3 + $0x30] sm:$0xff] }
 0xd7c   :  { %v6407_v51 = vpop.f32.mrf.mxu0 }
 0xd7d   :  { %6825 = vtanh.f32 %v3612_v44  ;;  %v5143_v44 = vld [vmem:[#allocation3 + $0x38] sm:$0xff] }
 0xd7e   :  { %v4401_v51 = vld [vmem:[%s8926_s15 + $0x18] sm:$0xff] }
 0xd8a   :  { %v6826_v18 = vpop.eup %6825 }
 0xd8b   :  { %3689 = vst.msk [vmem:[#allocation2 + $0x18] sm:$0xff] %vm451_vm5, %v6826_v18  ;;  %6428 = vmatmul.mubr.msk.f32.vlgmr.msra.gmra.mxu0 %vm451_vm5, %v6826_v18  ;;  %v4400_v18 = vld [vmem:[%s8926_s15 + $0x10] sm:$0xff] }
 0xd8c   :  { %6442 = vmatpush3.msra.mxu0 %v8070_v26  ;;  %6449 = vmatprep.mubr.msk.f32.mxu0 %vm7108_vm10, %v7107_v27 }
 0xd8d   :  { %6443 = vmatprep.subr.mxu0 %v7107_v27 }
 0xd8e   :  { %6444 = vmatpush3.msra.mxu0 %v8077_v63 }
 0xd8f   :  { %6445 = vmatprep.subr.mxu0 %v7107_v27 }
 0xd90   :  { %6446 = vmatpush3.msra.mxu0 %v8083_v0 }
 0xd91   :  { %6447 = vmatprep.subr.mxu0 %v7107_v27 }
 0xd92   :  { %6448 = vmatpush3.msra.mxu0 %v8092_v5  ;;  %v4527_v31 = vld [vmem:[#allocation2 + $0x18] sm:$0xff] }
 0xd93   :  { %6463 = vmatprep.subr.mxu0 %v7107_v27 }
 0xd97   :  { %v3683_v35 = vpop.f32.mrf.mxu1 }
 0xd98   :  { %v3687_v28 = vadd.f32 %v3683_v35, %v8216_v30  ;;  %v4399_v35 = vld [vmem:[%s8926_s15 + $0x8] sm:$0xff] }
 0xd99   :  { %v6418_v22 = vpop.f32.mrf.mxu1 }
 0xd9a   :  { %6827 = vtanh.f32 %v3687_v28  ;;  %v4398_v28 = vld [vmem:[%s8926_s15] sm:$0xff]  ;;  %v2935_v22 = vadd.f32 %v8183_v19, %v8188_v49 }
 0xda7   :  { %v6828_v2 = vpop.eup %6827 }
 0xda8   :  { %3690 = vst.msk [vmem:[#allocation3 + $0x20] sm:$0xff] %vm451_vm5, %v6828_v2  ;;  %6439 = vmatmul.mubr.msk.f32.vlgmr.msra.gmra.mxu1 %vm451_vm5, %v6828_v2 }
 0xda9   :  { %6453 = vmatpush3.msra.mxu1 %v8129_v8  ;;  %6460 = vmatprep.mubr.msk.f32.mxu1 %vm7108_vm10, %v7107_v27 }
 0xdaa   :  { %6454 = vmatprep.subr.mxu1 %v7107_v27 }
 0xdab   :  { %6455 = vmatpush3.msra.mxu1 %v8136_v24 }
 0xdac   :  { %6456 = vmatprep.subr.mxu1 %v7107_v27 }
 0xdad   :  { %6457 = vmatpush3.msra.mxu1 %v8144_v29 }
 0xdae   :  { %6458 = vmatprep.subr.mxu1 %v7107_v27 }
 0xdaf   :  { %6459 = vmatpush3.msra.mxu1 %v8152_v52  ;;  %v5140_v32 = vld [vmem:[#allocation3 + $0x20] sm:$0xff] }
 0xdb0   :  { %6474 = vmatprep.subr.mxu1 %v7107_v27 }
 0xe4b   :  { %v3760_v62 = vpop.f32.mrf.mxu0 }
 0xe4c   :  { %v3764_v12 = vadd.f32 %v3760_v62, %v2920_v46 }
 0xe4d   :  { %v6429_v40 = vpop.f32.mrf.mxu0 }
 0xe4e   :  { %6829 = vtanh.f32 %v3764_v12  ;;  %v8475_v12 = vld [vmem:[#allocation14] ss:$0 sm:$0xff] }
 0xe5b   :  { %v6830_v61 = vpop.eup %6829 }
 0xe5c   :  { %3841 = vst.msk [vmem:[#allocation2 + $0x20] sm:$0xff] %vm451_vm5, %v6830_v61  ;;  %6450 = vmatmul.mubr.msk.f32.vlgmr.msra.gmra.mxu0 %vm451_vm5, %v6830_v61 }
 0xe5d   :  { %6464 = vmatpush3.msra.mxu0 %v8070_v26  ;;  %6471 = vmatprep.mubr.msk.f32.mxu0 %vm7108_vm10, %v7107_v27 }
 0xe5e   :  { %6465 = vmatprep.subr.mxu0 %v7107_v27 }
 0xe5f   :  { %6466 = vmatpush3.msra.mxu0 %v8077_v63 }
 0xe60   :  { %6467 = vmatprep.subr.mxu0 %v7107_v27 }
 0xe61   :  { %6468 = vmatpush3.msra.mxu0 %v8083_v0 }
 0xe62   :  { %6469 = vmatprep.subr.mxu0 %v7107_v27 }
 0xe63   :  { %6470 = vmatpush3.msra.mxu0 %v8092_v5  ;;  %v4528_v38 = vld [vmem:[#allocation2 + $0x20] sm:$0xff] }
 0xe64   :  { %6485 = vmatprep.subr.mxu0 %v7107_v27 }
 0xe68   :  { %v3835_v4 = vpop.f32.mrf.mxu1 }
 0xe69   :  { %v3839_v1 = vadd.f32 %v3835_v4, %v8202_v45  ;;  %v2925_v45 = vadd.f32 %v8179_v48, %v8188_v49 }
 0xe6a   :  { %v6440_v58 = vpop.f32.mrf.mxu1 }
 0xe6b   :  { %6831 = vtanh.f32 %v3839_v1 }
 0xe78   :  { %v6832_v3 = vpop.eup %6831 }
 0xe79   :  { %3842 = vst.msk [vmem:[#allocation3 + $0x18] sm:$0xff] %vm451_vm5, %v6832_v3  ;;  %6461 = vmatmul.mubr.msk.f32.vlgmr.msra.gmra.mxu1 %vm451_vm5, %v6832_v3 }
 0xe7a   :  { %6475 = vmatpush3.msra.mxu1 %v8129_v8  ;;  %6482 = vmatprep.mubr.msk.f32.mxu1 %vm7108_vm10, %v7107_v27 }
 0xe7b   :  { %6476 = vmatprep.subr.mxu1 %v7107_v27 }
 0xe7c   :  { %6477 = vmatpush3.msra.mxu1 %v8136_v24 }
 0xe7d   :  { %6478 = vmatprep.subr.mxu1 %v7107_v27 }
 0xe7e   :  { %6479 = vmatpush3.msra.mxu1 %v8144_v29 }
 0xe7f   :  { %6480 = vmatprep.subr.mxu1 %v7107_v27 }
 0xe80   :  { %6481 = vmatpush3.msra.mxu1 %v8152_v52  ;;  %v5139_v16 = vld [vmem:[#allocation3 + $0x18] sm:$0xff] }
 0xe81   :  { %6496 = vmatprep.subr.mxu1 %v7107_v27 }
 0xf1c   :  { %v3912_v39 = vpop.f32.mrf.mxu0 }
 0xf1d   :  { %v3916_v30 = vadd.f32 %v3912_v39, %v2925_v45 }
 0xf1e   :  { %v6451_v60 = vpop.f32.mrf.mxu0 }
 0xf1f   :  { %6833 = vtanh.f32 %v3916_v30  ;;  %v8490_v60 = vld [vmem:[%s8926_s15 + $0x38] sm:$0xff] }
 0xf2c   :  { %v6834_v43 = vpop.eup %6833 }
 0xf2d   :  { %3993 = vst.msk [vmem:[#allocation2 + $0x28] sm:$0xff] %vm451_vm5, %v6834_v43  ;;  %6472 = vmatmul.mubr.msk.f32.vlgmr.msra.gmra.mxu0 %vm451_vm5, %v6834_v43 }
 0xf2e   :  { %6486 = vmatpush3.msra.mxu0 %v8070_v26  ;;  %6493 = vmatprep.mubr.msk.f32.mxu0 %vm7108_vm10, %v7107_v27 }
 0xf2f   :  { %6487 = vmatprep.subr.mxu0 %v7107_v27 }
 0xf30   :  { %6488 = vmatpush3.msra.mxu0 %v8077_v63  ;;  %v4307_v63 = vld [vmem:[%s8924_s13 + $0x18] sm:$0xff] }
 0xf31   :  { %6489 = vmatprep.subr.mxu0 %v7107_v27 }
 0xf32   :  { %6490 = vmatpush3.msra.mxu0 %v8083_v0  ;;  %v2930_v0 = vadd.f32 %v8188_v49, %v8190_v21  ;;  %v4305_v21 = vld [vmem:[%s8924_s13 + $0x8] sm:$0xff] }
 0xf33   :  { %6491 = vmatprep.subr.mxu0 %v7107_v27 }
 0xf34   :  { %6492 = vmatpush3.msra.mxu0 %v8092_v5  ;;  %v4529_v25 = vld [vmem:[#allocation2 + $0x28] sm:$0xff] }
 0xf35   :  { %6507 = vmatprep.subr.mxu0 %v4307_v63 }
 0xf39   :  { %v3987_v48 = vpop.f32.mrf.mxu1 }
 0xf3a   :  { %v3991_v13 = vadd.f32 %v3987_v48, %v8208_v57 }
 0xf3b   :  { %v6462_v53 = vpop.f32.mrf.mxu1 }
 0xf3c   :  { %6835 = vtanh.f32 %v3991_v13  ;;  %v8497_v53 = vld [vmem:[%s8926_s15 + $0x30] sm:$0xff] }
 0xf49   :  { %v6836_v26 = vpop.eup %6835 }
 0xf4a   :  { %3994 = vst.msk [vmem:[#allocation3 + $0x10] sm:$0xff] %vm451_vm5, %v6836_v26  ;;  %6483 = vmatmul.mubr.msk.f32.vlgmr.msra.gmra.mxu1 %vm451_vm5, %v6836_v26 }
 0xf4b   :  { %6497 = vmatpush3.msra.mxu1 %v8129_v8  ;;  %6504 = vmatprep.mubr.msk.f32.mxu1 %vm7108_vm10, %v7107_v27 }
 0xf4c   :  { %6498 = vmatprep.subr.mxu1 %v7107_v27 }
 0xf4d   :  { %6499 = vmatpush3.msra.mxu1 %v8136_v24  ;;  %v4302_v24 = vld [vmem:[%s8928_s17] sm:$0xff] }
 0xf4e   :  { %6500 = vmatprep.subr.mxu1 %v7107_v27 }
 0xf4f   :  { %6501 = vmatpush3.msra.mxu1 %v8144_v29 }
 0xf50   :  { %6502 = vmatprep.subr.mxu1 %v7107_v27 }
 0xf51   :  { %6503 = vmatpush3.msra.mxu1 %v8152_v52  ;;  %v4306_v52 = vld [vmem:[%s8924_s13 + $0x10] sm:$0xff] }
 0xf52   :  { %v5138_v37 = vld [vmem:[#allocation3 + $0x10] sm:$0xff]  ;;  %6518 = vmatprep.subr.mxu1 %v4401_v51 }
 0xfed   :  { %v4064_v5 = vpop.f32.mrf.mxu0 }
 0xfee   :  { %v4068_v8 = vadd.f32 %v4064_v5, %v2930_v0 }
 0xfef   :  { %v6473_v57 = vpop.f32.mrf.mxu0 }
 0xff0   :  { %6837 = vtanh.f32 %v4068_v8  ;;  %v5678_v57 = vld [vmem:[%s8926_s15 + $0x20] sm:$0xff] }
 0xffd   :  { %v6838_v29 = vpop.eup %6837 }
 0xffe   :  { %4145 = vst.msk [vmem:[#allocation2 + $0x30] sm:$0xff] %vm451_vm5, %v6838_v29  ;;  %6494 = vmatmul.mubr.msk.f32.vlgmr.msra.gmra.mxu0 %vm451_vm5, %v6838_v29 }
 0xfff   :  { %6508 = vmatpush3.msra.mxu0 %v4307_v63  ;;  %6515 = vmatprep.mubr.msk.f32.mxu0 %vm451_vm5, %v4302_v24 }
0x1000   :  { %6509 = vmatprep.subr.mxu0 %v4306_v52 }
0x1001   :  { %6510 = vmatpush3.msra.mxu0 %v4306_v52 }
0x1002   :  { %6511 = vmatprep.subr.mxu0 %v4305_v21 }
0x1003   :  { %6512 = vmatpush3.msra.mxu0 %v4305_v21 }
0x1004   :  { %6513 = vmatprep.subr.mxu0 %v4304_v6 }
0x1005   :  { %6514 = vmatpush3.msra.mxu0 %v4304_v6  ;;  %v4530_v36 = vld [vmem:[#allocation2 + $0x30] sm:$0xff] }
0x1006   :  { %6516 = vmatmul.mubr.msk.f32.vlgmr.msra.gmra.mxu0 %vm451_vm5, %v4303_v59  ;;  %6529 = vmatprep.subr.mxu0 %v7107_v27 }
0x1007   :  { %6530 = vmatpush3.msra.mxu0 %v4307_v63  ;;  %6537 = vmatprep.mubr.msk.f32.mxu0 %vm7108_vm10, %v7107_v27  ;;  %v8507_v63 = vld [vmem:[%s8926_s15 + $0x28] sm:$0xff] }
0x1008   :  { %6531 = vmatprep.subr.mxu0 %v7107_v27 }
0x1009   :  { %6532 = vmatpush3.msra.mxu0 %v4306_v52 }
0x100a   :  { %6533 = vmatprep.subr.mxu0 %v7107_v27  ;;  %v4139_v42 = vpop.f32.mrf.mxu1 }
0x100b   :  { %v4143_v7 = vadd.f32 %v4139_v42, %v8196_v34  ;;  %6534 = vmatpush3.msra.mxu0 %v4305_v21  ;;  %v5672_v34 = vld [vmem:[%s8924_s13 + $0x28] sm:$0xff] }
0x100c   :  { %6535 = vmatprep.subr.mxu0 %v7107_v27  ;;  %v6484_v56 = vpop.f32.mrf.mxu1 }
0x100d   :  { %6839 = vtanh.f32 %v4143_v7  ;;  %6536 = vmatpush3.msra.mxu0 %v4304_v6 }
0x100e   :  { %6538 = vmatmul.mubr.msk.f32.vlgmr.msra.gmra.mxu0 %vm451_vm5, %v4524_v11  ;;  %6587 = vmatprep.subr.mxu0 %v5674_v9 }
0x100f   :  { %6588 = vmatpush3.msra.mxu0 %v5674_v9  ;;  %6540 = vmatprep.mubr.msk.f32.mxu0 %vm7108_vm10, %v7107_v27 }
0x1010   :  { %6589 = vmatprep.subr.mxu0 %v5673_v50 }
0x1011   :  { %6590 = vmatpush3.msra.mxu0 %v5673_v50 }
0x1012   :  { %6541 = vmatmul.mubr.msk.f32.gmra.mxu0 %vm451_vm5, %v4525_v23  ;;  %6591 = vmatprep.subr.mxu0 %v5672_v34 }
0x1013   :  { %6543 = vmatprep.mubr.msk.f32.mxu0 %vm7108_vm10, %v7107_v27  ;;  %6592 = vmatpush3.msra.mxu0 %v5672_v34 }
0x1014   :  { %6593 = vmatprep.subr.mxu0 %v5671_v14 }
0x1015   :  { %6594 = vmatpush3.msra.mxu0 %v5671_v14 }
0x1016   :  { %6544 = vmatmul.mubr.msk.f32.gmra.mxu0 %vm451_vm5, %v4526_v54  ;;  %6609 = vmatprep.subr.mxu0 %v7107_v27 }
0x1017   :  { %6546 = vmatprep.mubr.msk.f32.mxu0 %vm7108_vm10, %v7107_v27 }
0x101a   :  { %v6840_v33 = vpop.eup %6839  ;;  %6547 = vmatmul.mubr.msk.f32.gmra.mxu0 %vm451_vm5, %v4527_v31 }
0x101b   :  { %4146 = vst.msk [vmem:[#allocation3 + $0x8] sm:$0xff] %vm451_vm5, %v6840_v33  ;;  %6505 = vmatmul.mubr.msk.f32.vlgmr.msra.gmra.mxu1 %vm451_vm5, %v6840_v33  ;;  %6549 = vmatprep.mubr.msk.f32.mxu0 %vm7108_vm10, %v7107_v27 }
0x101c   :  { %6519 = vmatpush3.msra.mxu1 %v4401_v51 }
0x101d   :  { %6520 = vmatprep.subr.mxu1 %v4400_v18 }
0x101e   :  { %6550 = vmatmul.mubr.msk.f32.gmra.mxu0 %vm451_vm5, %v4528_v38  ;;  %6521 = vmatpush3.msra.mxu1 %v4400_v18  ;;  %v5675_v38 = vld [vmem:[#allocation14 + $0x1] ss:$0 sm:$0xff] }
0x101f   :  { %6552 = vmatprep.mubr.msk.f32.mxu0 %vm7108_vm10, %v7107_v27  ;;  %6522 = vmatprep.subr.mxu1 %v4399_v35 }
0x1020   :  { %6523 = vmatpush3.msra.mxu1 %v4399_v35 }
0x1021   :  { %6524 = vmatprep.subr.mxu1 %v4398_v28 }
0x1022   :  { %6553 = vmatmul.mubr.msk.f32.gmra.mxu0 %vm451_vm5, %v4529_v25  ;;  %v5137_v41 = vld [vmem:[#allocation3 + $0x8] sm:$0xff]  ;;  %6525 = vmatpush3.msra.mxu1 %v4398_v28 }
0x1023   :  { %6555 = vmatprep.mubr.msk.f32.mxu0 %vm7108_vm10, %v7107_v27  ;;  %6558 = vmatprep.subr.mxu1 %v7107_v27 }
0x1026   :  { %6556 = vmatmul.mubr.msk.f32.gmra.mxu0 %vm451_vm5, %v4530_v36 }
0x1027   :  { %6595 = vmatprep.mubr.msk.f32.mxu0 %vm451_vm5, %v5669_v47 }
0x102a   :  { %6596 = vmatmul.mubr.msk.f32.vlgmr.msra.gmra.mxu0 %vm451_vm5, %v5670_v17 }
0x102b   :  { %6610 = vmatpush3.msra.mxu0 %v5674_v9  ;;  %6617 = vmatprep.mubr.msk.f32.mxu0 %vm7108_vm10, %v7107_v27 }
0x102c   :  { %6611 = vmatprep.subr.mxu0 %v7107_v27 }
0x102d   :  { %6612 = vmatpush3.msra.mxu0 %v5673_v50 }
0x102e   :  { %6613 = vmatprep.subr.mxu0 %v7107_v27 }
0x102f   :  { %6614 = vmatpush3.msra.mxu0 %v5672_v34 }
0x1030   :  { %6615 = vmatprep.subr.mxu0 %v7107_v27 }
0x1031   :  { %6616 = vmatpush3.msra.mxu0 %v5671_v14 }
0x1032   :  { %6618 = vmatmul.mubr.msk.f32.vlgmr.msra.gmra.mxu0 %vm451_vm5, %v5137_v41 }
0x1033   :  { %6620 = vmatprep.mubr.msk.f32.mxu0 %vm7108_vm10, %v7107_v27 }
0x1036   :  { %6621 = vmatmul.mubr.msk.f32.gmra.mxu0 %vm451_vm5, %v5138_v37 }
0x1037   :  { %6623 = vmatprep.mubr.msk.f32.mxu0 %vm7108_vm10, %v7107_v27 }
0x103a   :  { %6624 = vmatmul.mubr.msk.f32.gmra.mxu0 %vm451_vm5, %v5139_v16 }
0x103b   :  { %6626 = vmatprep.mubr.msk.f32.mxu0 %vm7108_vm10, %v7107_v27 }
0x103e   :  { %6627 = vmatmul.mubr.msk.f32.gmra.mxu0 %vm451_vm5, %v5140_v32 }
0x103f   :  { %6629 = vmatprep.mubr.msk.f32.mxu0 %vm7108_vm10, %v7107_v27 }
0x1042   :  { %6630 = vmatmul.mubr.msk.f32.gmra.mxu0 %vm451_vm5, %v5141_v55 }
0x1043   :  { %6632 = vmatprep.mubr.msk.f32.mxu0 %vm7108_vm10, %v7107_v27 }
0x1046   :  { %6633 = vmatmul.mubr.msk.f32.gmra.mxu0 %vm451_vm5, %v5142_v20 }
0x1047   :  { %6635 = vmatprep.mubr.msk.f32.mxu0 %vm7108_vm10, %v7107_v27 }
0x104a   :  { %6636 = vmatmul.mubr.msk.f32.gmra.mxu0 %vm451_vm5, %v5143_v44 }
0x10be   :  { %v4216_v2 = vpop.f32.mrf.mxu0 }
0x10bf   :  { %v4220_v46 = vadd.f32 %v4216_v2, %v2935_v22 }
0x10c0   :  { %v6495_v62 = vpop.f32.mrf.mxu0 }
0x10c1   :  { %6841 = vtanh.f32 %v4220_v46 }
0x10c6   :  { %v6517_v40 = vpop.f32.mrf.mxu0 }
0x10c7   :  { %v4393_v61 = vadd.f32 %v6517_v40, %v8475_v12 }
0x10c8   :  { %v4387_v4 = vpop.f32.mrf.mxu0 }
0x10c9   :  { %v4388_v1 = vadd.f32 %v8475_v12, %v4387_v4  ;;  %v4397_v3 = vmax.f32 %v4393_v61, 0.0 }
0x10cb   :  { %v4396_v58 = vmax.f32 %v4388_v1, 0.0 }
0x10cd   :  { %6526 = vmatprep.mubr.msk.f32.mxu1 %vm451_vm5, %v4396_v58 }
0x10ce   :  { %v6842_v45 = vpop.eup %6841  ;;  %6527 = vmatmul.mubr.msk.f32.vlgmr.msra.gmra.mxu1 %vm451_vm5, %v4397_v3  ;;  %v4629_v19 = vpop.f32.mrf.mxu0 }
0x10cf   :  { %4297 = vst.msk [vmem:[#allocation2 + $0x38] sm:$0xff] %vm451_vm5, %v6842_v45  ;;  %6559 = vmatpush3.msra.mxu1 %v4401_v51  ;;  %6566 = vmatprep.mubr.msk.f32.mxu1 %vm7108_vm10, %v7107_v27  ;;  %v4630_v49 = vadd.f32 %v8475_v12, %v4629_v19 }
0x10d0   :  { %6560 = vmatprep.subr.mxu1 %v7107_v27  ;;  %v6539_v39 = vpop.f32.mrf.mxu0 }
0x10d1   :  { %6561 = vmatpush3.msra.mxu1 %v4400_v18  ;;  %v4663_v43 = vmax.f32 %v4630_v49, 0.0 }
0x10d2   :  { %6562 = vmatprep.subr.mxu1 %v7107_v27  ;;  %v4634_v30 = vpop.f32.mrf.mxu0 }
0x10d3   :  { %6563 = vmatpush3.msra.mxu1 %v4399_v35  ;;  %v4635_v48 = vadd.f32 %v8475_v12, %v4634_v30 }
0x10d4   :  { %6564 = vmatprep.subr.mxu1 %v7107_v27  ;;  %v6542_v13 = vpop.f32.mrf.mxu0 }
0x10d5   :  { %6565 = vmatpush3.msra.mxu1 %v4398_v28  ;;  %v4664_v0 = vmax.f32 %v4635_v48, 0.0 }
0x10d6   :  { %6567 = vmatmul.mubr.msk.f32.vlgmr.msra.gmra.mxu1 %vm451_vm5, %v4663_v43  ;;  %v4639_v26 = vpop.f32.mrf.mxu0  ;;  %6598 = vmatprep.subr.mxu1 %v8490_v60 }
0x10d7   :  { %6599 = vmatpush3.msra.mxu1 %v8490_v60  ;;  %6569 = vmatprep.mubr.msk.f32.mxu1 %vm7108_vm10, %v7107_v27  ;;  %v4640_v5 = vadd.f32 %v8475_v12, %v4639_v26  ;;  %v8569_v26 = vld [vmem:[#allocation15] ss:$0 sm:$0xff] }
0x10d8   :  { %v6545_v8 = vpop.f32.mrf.mxu0  ;;  %6600 = vmatprep.subr.mxu1 %v8497_v53 }
0x10d9   :  { %6601 = vmatpush3.msra.mxu1 %v8497_v53  ;;  %v4665_v52 = vmax.f32 %v4640_v5, 0.0 }
0x10da   :  { %6570 = vmatmul.mubr.msk.f32.gmra.mxu1 %vm451_vm5, %v4664_v0  ;;  %v4644_v24 = vpop.f32.mrf.mxu0  ;;  %6602 = vmatprep.subr.mxu1 %v8507_v63 }
0x10db   :  { %v4291_v29 = vpop.f32.mrf.mxu1  ;;  %6572 = vmatprep.mubr.msk.f32.mxu1 %vm7108_vm10, %v7107_v27  ;;  %6603 = vmatpush3.msra.mxu1 %v8507_v63  ;;  %v4645_v21 = vadd.f32 %v8475_v12, %v4644_v24 }
0x10dc   :  { %v4295_v6 = vadd.f32 %v4291_v29, %v8198_v15  ;;  %v6548_v59 = vpop.f32.mrf.mxu0  ;;  %6604 = vmatprep.subr.mxu1 %v5678_v57 }
0x10dd   :  { %v6506_v42 = vpop.f32.mrf.mxu1  ;;  %6605 = vmatpush3.msra.mxu1 %v5678_v57  ;;  %v4666_v9 = vmax.f32 %v4645_v21, 0.0 }
0x10de   :  { %6843 = vtanh.f32 %v4295_v6  ;;  %6573 = vmatmul.mubr.msk.f32.gmra.mxu1 %vm451_vm5, %v4665_v52  ;;  %v4649_v7 = vpop.f32.mrf.mxu0  ;;  %6638 = vmatprep.subr.mxu1 %v7107_v27 }
0x10df   :  { %6575 = vmatprep.mubr.msk.f32.mxu1 %vm7108_vm10, %v7107_v27  ;;  %v4650_v56 = vadd.f32 %v8475_v12, %v4649_v7 }
0x10e0   :  { %v6551_v11 = vpop.f32.mrf.mxu0 }
0x10e1   :  { %v4667_v50 = vmax.f32 %v4650_v56, 0.0 }
0x10e2   :  { %6576 = vmatmul.mubr.msk.f32.gmra.mxu1 %vm451_vm5, %v4666_v9  ;;  %v4654_v15 = vpop.f32.mrf.mxu0 }
0x10e3   :  { %6578 = vmatprep.mubr.msk.f32.mxu1 %vm7108_vm10, %v7107_v27  ;;  %v4655_v34 = vadd.f32 %v8475_v12, %v4654_v15 }
0x10e4   :  { %v6554_v23 = vpop.f32.mrf.mxu0 }
0x10e5   :  { %v4668_v54 = vmax.f32 %v4655_v34, 0.0 }
0x10e6   :  { %6579 = vmatmul.mubr.msk.f32.gmra.mxu1 %vm451_vm5, %v4667_v50  ;;  %v4659_v14 = vpop.f32.mrf.mxu0 }
0x10e7   :  { %6581 = vmatprep.mubr.msk.f32.mxu1 %vm7108_vm10, %v7107_v27  ;;  %v4660_v31 = vadd.f32 %v8475_v12, %v4659_v14 }
0x10e8   :  { %v6557_v33 = vpop.f32.mrf.mxu0 }
0x10e9   :  { %v4669_v36 = vmax.f32 %v4660_v31, 0.0 }
0x10ea   :  { %6582 = vmatmul.mubr.msk.f32.gmra.mxu1 %vm451_vm5, %v4668_v54  ;;  %v6597_v25 = vpop.f32.mrf.mxu0 }
0x10eb   :  { %v6844_v47 = vpop.eup %6843  ;;  %6584 = vmatprep.mubr.msk.f32.mxu1 %vm7108_vm10, %v7107_v27  ;;  %v5008_v17 = vadd.f32 %v6597_v25, %v5675_v38 }
0x10ec   :  { %4298 = vst.msk [vmem:[#allocation3] sm:$0xff] %vm451_vm5, %v6844_v47  ;;  %v5002_v41 = vpop.f32.mrf.mxu0 }
0x10ed   :  { %v5003_v37 = vadd.f32 %v5675_v38, %v5002_v41  ;;  %v5012_v32 = vmax.f32 %v5008_v17, 0.0 }
0x10ee   :  { %6585 = vmatmul.mubr.msk.f32.gmra.mxu1 %vm451_vm5, %v4669_v36 }
0x10ef   :  { %v5011_v16 = vmax.f32 %v5003_v37, 0.0 }
0x10f1   :  { %6606 = vmatprep.mubr.msk.f32.mxu1 %vm451_vm5, %v5011_v16 }
0x10f2   :  { %v5231_v55 = vpop.f32.mrf.mxu0  ;;  %6607 = vmatmul.mubr.msk.f32.vlgmr.msra.gmra.mxu1 %vm451_vm5, %v5012_v32 }
0x10f3   :  { %6639 = vmatpush3.msra.mxu1 %v8490_v60  ;;  %6646 = vmatprep.mubr.msk.f32.mxu1 %vm7108_vm10, %v7107_v27  ;;  %v5232_v20 = vadd.f32 %v5675_v38, %v5231_v55 }
0x10f4   :  { %v6619_v44 = vpop.f32.mrf.mxu0  ;;  %6640 = vmatprep.subr.mxu1 %v7107_v27 }
0x10f5   :  { %6641 = vmatpush3.msra.mxu1 %v8497_v53  ;;  %v5265_v18 = vmax.f32 %v5232_v20, 0.0 }
0x10f6   :  { %v5236_v51 = vpop.f32.mrf.mxu0  ;;  %6642 = vmatprep.subr.mxu1 %v7107_v27 }
0x10f7   :  { %6643 = vmatpush3.msra.mxu1 %v8507_v63  ;;  %v5237_v35 = vadd.f32 %v5675_v38, %v5236_v51 }
0x10f8   :  { %v6622_v28 = vpop.f32.mrf.mxu0  ;;  %6644 = vmatprep.subr.mxu1 %v7107_v27 }
0x10f9   :  { %6645 = vmatpush3.msra.mxu1 %v5678_v57  ;;  %v5266_v2 = vmax.f32 %v5237_v35, 0.0 }
0x10fa   :  { %v5241_v22 = vpop.f32.mrf.mxu0  ;;  %6647 = vmatmul.mubr.msk.f32.vlgmr.msra.gmra.mxu1 %vm451_vm5, %v5265_v18 }
0x10fb   :  { %6649 = vmatprep.mubr.msk.f32.mxu1 %vm7108_vm10, %v7107_v27  ;;  %v5242_v46 = vadd.f32 %v5675_v38, %v5241_v22 }
0x10fc   :  { %v6625_v62 = vpop.f32.mrf.mxu0 }
0x10fd   :  { %v5267_v40 = vmax.f32 %v5242_v46, 0.0  ;;  %v8606_v46 = vand.u32 127, %v176_v10  ;;  %v8615_v10 = vld [vmem:[#allocation15 + $0x1] ss:$0 sm:$0xff] }
0x10fe   :  { %v5246_v12 = vpop.f32.mrf.mxu0  ;;  %6650 = vmatmul.mubr.msk.f32.gmra.mxu1 %vm451_vm5, %v5266_v2 }
0x10ff   :  { %6652 = vmatprep.mubr.msk.f32.mxu1 %vm7108_vm10, %v7107_v27  ;;  %v5247_v61 = vadd.f32 %v5675_v38, %v5246_v12  ;;  %vm4301_vm11 = vcmp.ge.s32.totalorder %v8606_v46, 4 }
0x1100   :  { %v6628_v4 = vpop.f32.mrf.mxu0 }
0x1101   :  { %v5268_v58 = vmax.f32 %v5247_v61, 0.0 }
0x1102   :  { %v5251_v1 = vpop.f32.mrf.mxu0  ;;  %6653 = vmatmul.mubr.msk.f32.gmra.mxu1 %vm451_vm5, %v5267_v40 }
0x1103   :  { %6655 = vmatprep.mubr.msk.f32.mxu1 %vm7108_vm10, %v7107_v27  ;;  %v5252_v3 = vadd.f32 %v5675_v38, %v5251_v1 }
0x1104   :  { %v6631_v45 = vpop.f32.mrf.mxu0 }
0x1105   :  { %v5269_v49 = vmax.f32 %v5252_v3, 0.0 }
0x1106   :  { %v5256_v19 = vpop.f32.mrf.mxu0  ;;  %6656 = vmatmul.mubr.msk.f32.gmra.mxu1 %vm451_vm5, %v5268_v58 }
0x1107   :  { %6658 = vmatprep.mubr.msk.f32.mxu1 %vm7108_vm10, %v7107_v27  ;;  %v5257_v39 = vadd.f32 %v5675_v38, %v5256_v19 }
0x1108   :  { %v6634_v30 = vpop.f32.mrf.mxu0 }
0x1109   :  { %v5270_v43 = vmax.f32 %v5257_v39, 0.0 }
0x110a   :  { %v5261_v60 = vpop.f32.mrf.mxu0  ;;  %6659 = vmatmul.mubr.msk.f32.gmra.mxu1 %vm451_vm5, %v5269_v49 }
0x110b   :  { %6661 = vmatprep.mubr.msk.f32.mxu1 %vm7108_vm10, %v7107_v27  ;;  %v5262_v48 = vadd.f32 %v5675_v38, %v5261_v60 }
0x110c   :  { %v6637_v13 = vpop.f32.mrf.mxu0 }
0x110d   :  { %v5271_v53 = vmax.f32 %v5262_v48, 0.0 }
0x110e   :  { %6662 = vmatmul.mubr.msk.f32.gmra.mxu1 %vm451_vm5, %v5270_v43 }
0x110f   :  { %6664 = vmatprep.mubr.msk.f32.mxu1 %vm7108_vm10, %v7107_v27 }
0x1112   :  { %6665 = vmatmul.mubr.msk.f32.gmra.mxu1 %vm451_vm5, %v5271_v53 }
0x118e   :  { %v6528_v63 = vpop.f32.mrf.mxu1 }
0x118f   :  { %v8572_v0 = vadd.f32 %v6528_v63, %v8569_v26 }
0x1190   :  { %v4481_v5 = vpop.f32.mrf.mxu1 }
0x1191   :  { %v4493_v8 = vmin.f32 %v8572_v0, 20.0  ;;  %v8576_v57 = vadd.f32 %v8569_v26, %v4481_v5  ;;  %vm4491_vm12 = vcmp.gt.f32.partialorder %v8572_v0, 20.0 }
0x1193   :  { %v4496_v24 = vmul.f32 1.442695, %v4493_v8  ;;  %v4492_v29 = vmin.f32 %v8576_v57, 20.0  ;;  %vm4490_vm14 = vcmp.gt.f32.partialorder %v8576_v57, 20.0 }
0x1195   :  { %6845 = vpow2.f32 %v4496_v24  ;;  %v4494_v27 = vmul.f32 1.442695, %v4492_v29 }
0x1196   :  { %v4768_v52 = vpop.f32.mrf.mxu1 }
0x1197   :  { %6847 = vpow2.f32 %v4494_v27  ;;  %v8580_v21 = vadd.f32 %v8569_v26, %v4768_v52 }
0x1198   :  { %v6568_v6 = vpop.f32.mrf.mxu1 }
0x1199   :  { %v4809_v59 = vmin.f32 %v8580_v21, 20.0  ;;  %vm4802_vm2 = vcmp.gt.f32.partialorder %v8580_v21, 20.0 }
0x119a   :  { %v4773_v42 = vpop.f32.mrf.mxu1 }
0x119b   :  { %v4816_v7 = vmul.f32 1.442695, %v4809_v59  ;;  %v8584_v9 = vadd.f32 %v8569_v26, %v4773_v42 }
0x119c   :  { %v6571_v56 = vpop.f32.mrf.mxu1 }
0x119d   :  { %6849 = vpow2.f32 %v4816_v7  ;;  %v4810_v11 = vmin.f32 %v8584_v9, 20.0  ;;  %vm4803_vm3 = vcmp.gt.f32.partialorder %v8584_v9, 20.0 }
0x119e   :  { %v4778_v15 = vpop.f32.mrf.mxu1 }
0x119f   :  { %v4818_v50 = vmul.f32 1.442695, %v4810_v11  ;;  %v8588_v34 = vadd.f32 %v8569_v26, %v4778_v15 }
0x11a0   :  { %v6574_v23 = vpop.f32.mrf.mxu1 }
0x11a1   :  { %6851 = vpow2.f32 %v4818_v50  ;;  %v4811_v14 = vmin.f32 %v8588_v34, 20.0  ;;  %vm4804_vm5 = vcmp.gt.f32.partialorder %v8588_v34, 20.0 }
0x11a2   :  { %v6846_v54 = vpop.eup %6845  ;;  %v4783_v31 = vpop.f32.mrf.mxu1 }
0x11a3   :  { %v4507_v33 = vadd.f32 1.0, %v6846_v54  ;;  %v4820_v38 = vmul.f32 1.442695, %v4811_v14  ;;  %v8592_v47 = vadd.f32 %v8569_v26, %v4783_v31  ;;  %v4510_v18 = vmul.f32 -0.5, %v6846_v54 }
0x11a4   :  { %v6848_v25 = vpop.eup %6847  ;;  %v6577_v36 = vpop.f32.mrf.mxu1  ;;  %v4513_v1 = vand.u32 2147483647, %v6846_v54 }
0x11a5   :  { %6853 = vlog2.f32 %v4507_v33  ;;  %v4498_v17 = vadd.f32 1.0, %v6848_v25  ;;  %v4812_v37 = vmin.f32 %v8592_v47, 20.0  ;;  %v4501_v62 = vmul.f32 -0.5, %v6848_v25 }
0x11a6   :  { %6855 = vpow2.f32 %v4820_v38  ;;  %v4788_v41 = vpop.f32.mrf.mxu1  ;;  %v4511_v4 = vadd.f32 1.0, %v4510_v18  ;;  %v4504_v3 = vand.u32 2147483647, %v6848_v25  ;;  %vm4514_vm13 = vcmp.lt.f32.partialorder %v4513_v1, 0.0004427343 }
0x11a7   :  { %6857 = vlog2.f32 %v4498_v17  ;;  %v8596_v16 = vadd.f32 %v8569_v26, %v4788_v41  ;;  %v4822_v55 = vmul.f32 1.442695, %v4812_v37  ;;  %v4502_v39 = vadd.f32 1.0, %v4501_v62 }
0x11a8   :  { %v6580_v32 = vpop.f32.mrf.mxu1  ;;  %vm8627_vm15 = vcmp.lt.f32.partialorder %v4504_v3, 0.0004427343  ;;  %vm4805_vm7 = vcmp.gt.f32.partialorder %v8592_v47, 20.0 }
0x11a9   :  { %v4813_v20 = vmin.f32 %v8596_v16, 20.0  ;;  %6859 = vpow2.f32 %v4822_v55  ;;  %v4503_v6 = vmul.f32 %v6848_v25, %v4502_v39  ;;  %vm4806_vm10 = vcmp.gt.f32.partialorder %v8596_v16, 20.0 }
0x11aa   :  { %v8599_v44 = vpop.eup %6849  ;;  %v4793_v51 = vpop.f32.mrf.mxu1 }
0x11ab   :  { %v4830_v35 = vadd.f32 1.0, %v8599_v44  ;;  %v4824_v28 = vmul.f32 1.442695, %v4813_v20  ;;  %v8603_v22 = vadd.f32 %v8569_v26, %v4793_v51  ;;  %v4833_v60 = vmul.f32 -0.5, %v8599_v44 }
0x11ac   :  { %v6583_v2 = vpop.f32.mrf.mxu1  ;;  %v4836_v11 = vand.u32 2147483647, %v8599_v44 }
0x11ad   :  { %6861 = vlog2.f32 %v4830_v35  ;;  %v4814_v40 = vmin.f32 %v8603_v22, 20.0  ;;  %v4834_v56 = vadd.f32 1.0, %v4833_v60 }
0x11ae   :  { %v8608_v12 = vpop.eup %6851  ;;  %6863 = vpow2.f32 %v4824_v28  ;;  %v4798_v61 = vpop.f32.mrf.mxu1  ;;  %vm8657_vm1 = vcmp.lt.f32.partialorder %v4836_v11, 0.0004427343 }
0x11af   :  { %v4839_v58 = vadd.f32 1.0, %v8608_v12  ;;  %v4826_v45 = vmul.f32 1.442695, %v4814_v40  ;;  %v8613_v19 = vadd.f32 %v8569_v26, %v4798_v61  ;;  %v4512_v26 = vmul.f32 %v6846_v54, %v4511_v4 }
0x11b0   :  { %v6586_v49 = vpop.f32.mrf.mxu1  ;;  %v4842_v50 = vmul.f32 -0.5, %v8608_v12  ;;  %v4845_v51 = vand.u32 2147483647, %v8608_v12 }
0x11b1   :  { %6865 = vlog2.f32 %v4839_v58  ;;  %v4815_v43 = vmin.f32 %v8613_v19, 20.0 }
0x11b2   :  { %v6854_v30 = vpop.eup %6853  ;;  %6867 = vpow2.f32 %v4826_v45  ;;  %v6608_v48 = vpop.f32.mrf.mxu1  ;;  %v4843_v20 = vadd.f32 1.0, %v4842_v50  ;;  %vm4846_vm4 = vcmp.lt.f32.partialorder %v4845_v51, 0.0004427343 }
0x11b3   :  { %v8621_v13 = vpop.eup %6855  ;;  %v4509_v53 = vmul.f32 0.6931472, %v6854_v30  ;;  %v8624_v63 = vadd.f32 %v6608_v48, %v8615_v10  ;;  %v4828_v29 = vmul.f32 1.442695, %v4815_v43 }
0x11b4   :  { %v6858_v5 = vpop.eup %6857  ;;  %v4848_v24 = vadd.f32 1.0, %v8621_v13  ;;  %v5098_v42 = vpop.f32.mrf.mxu1  ;;  %v4851_v18 = vmul.f32 -0.5, %v8621_v13  ;;  %v4844_v45 = vmul.f32 %v8608_v12, %v4843_v20  ;;  %v4854_v39 = vand.u32 2147483647, %v8621_v13 }
0x11b5   :  { %v4515_v27 = vsel %vm4514_vm13, %v4512_v26, %v4509_v53  ;;  %v4500_v52 = vmul.f32 0.6931472, %v6858_v5  ;;  %v5110_v59 = vmin.f32 %v8624_v63, 20.0  ;;  %v8646_v31 = vadd.f32 %v8615_v10, %v5098_v42 }
0x11b6   :  { %v4517_v7 = vsel %vm4491_vm12, %v8572_v0, %v4515_v27  ;;  %6869 = vlog2.f32 %v4848_v24  ;;  %v8640_v14 = vpop.eup %6859  ;;  %v4852_v49 = vadd.f32 1.0, %v4851_v18  ;;  %vm4855_vm6 = vcmp.lt.f32.partialorder %v4854_v39, 0.0004427343 }
0x11b7   :  { %v4506_v15 = vsel %vm8627_vm15, %v4503_v6, %v4500_v52  ;;  %6871 = vpow2.f32 %v4828_v29  ;;  %v5113_v23 = vmul.f32 1.442695, %v5110_v59  ;;  %v4521_v33 = vsel %vm4301_vm11, %v4517_v7, %v8572_v0 }
0x11b8   :  { %v4516_v54 = vsel %vm4490_vm14, %v8576_v57, %v4506_v15  ;;  %v4857_v25 = vadd.f32 1.0, %v8640_v14  ;;  %v5109_v37 = vmin.f32 %v8646_v31, 20.0  ;;  %v4860_v48 = vmul.f32 -0.5, %v8640_v14 }
0x11b9   :  { %v4520_v38 = vsel %vm4301_vm11, %v4516_v54, %v8576_v57  ;;  %6873 = vpow2.f32 %v5113_v23  ;;  %v4835_v57 = vmul.f32 %v8599_v44, %v4834_v56  ;;  %v4853_v6 = vmul.f32 %v8621_v13, %v4852_v49 }
0x11ba   :  { %v6862_v36 = vpop.eup %6861  ;;  %v4522_v17 = vsel %vm4301_vm11, %v4521_v33, %v4520_v38  ;;  %v5359_v32 = vpop.f32.mrf.mxu1  ;;  %6875 = vlog2.f32 %v4857_v25  ;;  %v5111_v28 = vmul.f32 1.442695, %v5109_v37  ;;  %v4861_v7 = vadd.f32 1.0, %v4860_v48 }
0x11bb   :  { %v8662_v55 = vpop.eup %6863  ;;  %4523 = vst.msk [vmem:[%s8929_s18] sm:$0xff] %vm313_vm0, %v4522_v17  ;;  %v4832_v0 = vmul.f32 0.6931472, %v6862_v36  ;;  %v8676_v40 = vadd.f32 %v8615_v10, %v5359_v32  ;;  %v4863_v15 = vand.u32 2147483647, %v8640_v14  ;;  %vm4807_vm13 = vcmp.gt.f32.partialorder %v8603_v22, 20.0 }
0x11bc   :  { %v4866_v35 = vadd.f32 1.0, %v8662_v55  ;;  %v6648_v2 = vpop.f32.mrf.mxu1  ;;  %v4869_v59 = vmul.f32 -0.5, %v8662_v55  ;;  %v4872_v41 = vand.u32 2147483647, %v8662_v55  ;;  %vm4808_vm15 = vcmp.gt.f32.partialorder %v8613_v19, 20.0 }
0x11bd   :  { %v4838_v62 = vsel %vm8657_vm1, %v4835_v57, %v4832_v0  ;;  %v4862_v57 = vmul.f32 %v8640_v14, %v4861_v7  ;;  %vm4864_vm8 = vcmp.lt.f32.partialorder %v4863_v15, 0.0004427343 }
0x11be   :  { %v6866_v61 = vpop.eup %6865  ;;  %v4893_v44 = vsel %vm4802_vm2, %v8580_v21, %v4838_v62  ;;  %6877 = vlog2.f32 %v4866_v35  ;;  %v5364_v4 = vpop.f32.mrf.mxu1  ;;  %v4870_v17 = vadd.f32 1.0, %v4869_v59  ;;  %vm4873_vm9 = vcmp.lt.f32.partialorder %v4872_v41, 0.0004427343 }
0x11bf   :  { %v8680_v1 = vpop.eup %6867  ;;  %v4900_v58 = vsel %vm4301_vm11, %v4893_v44, %v8580_v21  ;;  %v4841_v3 = vmul.f32 0.6931472, %v6866_v61  ;;  %6879 = vpow2.f32 %v5111_v28  ;;  %v5400_v21 = vmin.f32 %v8676_v40, 20.0 }
0x11c0   :  { %4907 = vst.msk [vmem:[%s8929_s18 + $0x8] sm:$0xff] %vm313_vm0, %v4900_v58  ;;  %v4875_v30 = vadd.f32 1.0, %v8680_v1  ;;  %v6651_v60 = vpop.f32.mrf.mxu1  ;;  %v8695_v12 = vadd.f32 %v8615_v10, %v5364_v4  ;;  %v4878_v38 = vmul.f32 -0.5, %v8680_v1  ;;  %v4871_v44 = vmul.f32 %v8662_v55, %v4870_v17 }
0x11c1   :  { %v4847_v43 = vsel %vm4846_vm4, %v4844_v45, %v4841_v3  ;;  %v5407_v24 = vmul.f32 1.442695, %v5400_v21  ;;  %v4881_v3 = vand.u32 2147483647, %v8680_v1  ;;  %vm5108_vm2 = vcmp.gt.f32.partialorder %v8624_v63, 20.0 }
0x11c2   :  { %v4894_v53 = vsel %vm4803_vm3, %v8584_v9, %v4847_v43  ;;  %6881 = vlog2.f32 %v4875_v30  ;;  %v5369_v26 = vpop.f32.mrf.mxu1  ;;  %v5401_v29 = vmin.f32 %v8695_v12, 20.0  ;;  %v4879_v28 = vadd.f32 1.0, %v4878_v38 }
0x11c3   :  { %v6870_v5 = vpop.eup %6869  ;;  %v4901_v8 = vsel %vm4301_vm11, %v4894_v53, %v8584_v9  ;;  %v8714_v42 = vadd.f32 %v8615_v10, %v5369_v26  ;;  %6883 = vpow2.f32 %v5407_v24  ;;  %vm4882_vm12 = vcmp.lt.f32.partialorder %v4881_v3, 0.0004427343 }
0x11c4   :  { %v8705_v27 = vpop.eup %6871  ;;  %4908 = vst.msk [vmem:[%s8929_s18 + $0x10] sm:$0xff] %vm313_vm0, %v4901_v8  ;;  %v4850_v52 = vmul.f32 0.6931472, %v6870_v5  ;;  %v6654_v9 = vpop.f32.mrf.mxu1  ;;  %v5409_v50 = vmul.f32 1.442695, %v5401_v29  ;;  %v4880_v48 = vmul.f32 %v8680_v1, %v4879_v28  ;;  %vm5107_vm4 = vcmp.gt.f32.partialorder %v8646_v31, 20.0 }
0x11c5   :  { %v4884_v56 = vadd.f32 1.0, %v8705_v27  ;;  %v5402_v23 = vmin.f32 %v8714_v42, 20.0  ;;  %v4887_v45 = vmul.f32 -0.5, %v8705_v27 }
0x11c6   :  { %v4856_v11 = vsel %vm4855_vm6, %v4853_v6, %v4850_v52  ;;  %v5374_v54 = vpop.f32.mrf.mxu1  ;;  %v8719_v33 = vpop.eup %6873  ;;  %vm5393_vm6 = vcmp.gt.f32.partialorder %v8676_v40, 20.0 }
0x11c7   :  { %v4895_v13 = vsel %vm4804_vm5, %v8588_v34, %v4856_v11  ;;  %6885 = vlog2.f32 %v4884_v56  ;;  %v6876_v25 = vpop.eup %6875  ;;  %v5124_v37 = vadd.f32 1.0, %v8719_v33  ;;  %v5411_v20 = vmul.f32 1.442695, %v5402_v23 }
0x11c8   :  { %v4902_v36 = vsel %vm4301_vm11, %v4895_v13, %v8588_v34  ;;  %v6657_v32 = vpop.f32.mrf.mxu1  ;;  %v4859_v0 = vmul.f32 0.6931472, %v6876_v25  ;;  %6887 = vpow2.f32 %v5409_v50  ;;  %v8737_v34 = vadd.f32 %v8615_v10, %v5374_v54 }
0x11c9   :  { %4909 = vst.msk [vmem:[%s8929_s18 + $0x18] sm:$0xff] %vm313_vm0, %v4902_v36  ;;  %6889 = vlog2.f32 %v5124_v37  ;;  %v5127_v21 = vmul.f32 -0.5, %v8719_v33  ;;  %v4888_v29 = vadd.f32 1.0, %v4887_v45 }
0x11ca   :  { %v5379_v51 = vpop.f32.mrf.mxu1  ;;  %v4865_v35 = vsel %vm4864_vm8, %v4862_v57, %v4859_v0  ;;  %6891 = vpow2.f32 %v5411_v20  ;;  %v5403_v39 = vmin.f32 %v8737_v34, 20.0  ;;  %vm5394_vm8 = vcmp.gt.f32.partialorder %v8695_v12, 20.0 }
0x11cb   :  { %v6878_v18 = vpop.eup %6877  ;;  %v8740_v2 = vadd.f32 %v8615_v10, %v5379_v51  ;;  %v4896_v14 = vsel %vm4805_vm7, %v8592_v47, %v4865_v35  ;;  %v5128_v7 = vadd.f32 1.0, %v5127_v21  ;;  %v4889_v13 = vmul.f32 %v8705_v27, %v4888_v29 }
0x11cc   :  { %v8742_v62 = vpop.eup %6879  ;;  %v4868_v61 = vmul.f32 0.6931472, %v6878_v18  ;;  %v6660_v4 = vpop.f32.mrf.mxu1  ;;  %v4903_v58 = vsel %vm4301_vm11, %v4896_v14, %v8592_v47  ;;  %v5413_v5 = vmul.f32 1.442695, %v5403_v39 }
0x11cd   :  { %v5115_v49 = vadd.f32 1.0, %v8742_v62  ;;  %4910 = vst.msk [vmem:[%s8929_s18 + $0x20] sm:$0xff] %vm313_vm0, %v4903_v58  ;;  %v5404_v30 = vmin.f32 %v8740_v2, 20.0  ;;  %v5118_v38 = vmul.f32 -0.5, %v8742_v62  ;;  %v5129_v37 = vmul.f32 %v8719_v33, %v5128_v7 }
0x11ce   :  { %v4874_v55 = vsel %vm4873_vm9, %v4871_v44, %v4868_v61  ;;  %v5384_v60 = vpop.f32.mrf.mxu1 }
0x11cf   :  { %v6882_v47 = vpop.eup %6881  ;;  %v4897_v43 = vsel %vm4806_vm10, %v8596_v16, %v4874_v55  ;;  %6893 = vlog2.f32 %v5115_v49  ;;  %v5415_v8 = vmul.f32 1.442695, %v5404_v30  ;;  %v8770_v1 = vadd.f32 %v8615_v10, %v5384_v60 }
0x11d0   :  { %v4904_v53 = vsel %vm4301_vm11, %v4897_v43, %v8596_v16  ;;  %v4877_v26 = vmul.f32 0.6931472, %v6882_v47  ;;  %v6663_v24 = vpop.f32.mrf.mxu1  ;;  %v8772_v52 = vpop.eup %6883  ;;  %v4890_v16 = vand.u32 2147483647, %v8705_v27  ;;  %6895 = vpow2.f32 %v5413_v5 }
0x11d1   :  { %4911 = vst.msk [vmem:[%s8929_s18 + $0x28] sm:$0xff] %vm313_vm0, %v4904_v53  ;;  %v5421_v56 = vadd.f32 1.0, %v8772_v52  ;;  %6897 = vpow2.f32 %v5415_v8  ;;  %v5405_v50 = vmin.f32 %v8770_v1, 20.0  ;;  %v5119_v18 = vadd.f32 1.0, %v5118_v38 }
0x11d2   :  { %v4883_v6 = vsel %vm4882_vm12, %v4880_v48, %v4877_v26  ;;  %v5389_v59 = vpop.f32.mrf.mxu1  ;;  %vm4891_vm14 = vcmp.lt.f32.partialorder %v4890_v16, 0.0004427343  ;;  %v5427_v30 = vand.u32 2147483647, %v8772_v52  ;;  %vm5395_vm10 = vcmp.gt.f32.partialorder %v8714_v42, 20.0 }
0x11d3   :  { %v4898_v9 = vsel %vm4807_vm13, %v8603_v22, %v4883_v6  ;;  %6899 = vlog2.f32 %v5421_v56  ;;  %v5417_v36 = vmul.f32 1.442695, %v5405_v50  ;;  %v8798_v20 = vadd.f32 %v8615_v10, %v5389_v59 }
0x11d4   :  { %v6886_v11 = vpop.eup %6885  ;;  %v4905_v15 = vsel %vm4301_vm11, %v4898_v9, %v8603_v22  ;;  %v6666_v23 = vpop.f32.mrf.mxu1  ;;  %v5130_v22 = vand.u32 2147483647, %v8719_v33  ;;  %v5121_v33 = vand.u32 2147483647, %v8742_v62  ;;  %v5424_v10 = vmul.f32 -0.5, %v8772_v52 }
0x11d5   :  { %4912 = vst.msk [vmem:[%s8929_s18 + $0x30] sm:$0xff] %vm313_vm0, %v4905_v15  ;;  %v4886_v54 = vmul.f32 0.6931472, %v6886_v11  ;;  %v8788_v25 = vpop.eup %6887  ;;  %6901 = vpow2.f32 %v5417_v36  ;;  %v5406_v61 = vmin.f32 %v8798_v20, 20.0  ;;  %v5120_v44 = vmul.f32 %v8742_v62, %v5119_v18 }
0x11d6   :  { %v6890_v17 = vpop.eup %6889  ;;  %v5430_v32 = vadd.f32 1.0, %v8788_v25  ;;  %vm5131_vm1 = vcmp.lt.f32.partialorder %v5130_v22, 0.0004427343  ;;  %vm5122_vm3 = vcmp.lt.f32.partialorder %v5121_v33, 0.0004427343  ;;  %v5425_v49 = vadd.f32 1.0, %v5424_v10 }
0x11d7   :  { %v4892_v41 = vsel %vm4891_vm14, %v4889_v13, %v4886_v54  ;;  %v8794_v0 = vpop.eup %6891  ;;  %v5126_v57 = vmul.f32 0.6931472, %v6890_v17  ;;  %v5419_v58 = vmul.f32 1.442695, %v5406_v61  ;;  %v5433_v55 = vmul.f32 -0.5, %v8788_v25 }
0x11d8   :  { %v4899_v27 = vsel %vm4808_vm15, %v8613_v19, %v4892_v41  ;;  %6903 = vlog2.f32 %v5430_v32  ;;  %v5439_v35 = vadd.f32 1.0, %v8794_v0  ;;  %v5442_v48 = vmul.f32 -0.5, %v8794_v0 }
0x11d9   :  { %v4906_v51 = vsel %vm4301_vm11, %v4899_v27, %v8613_v19  ;;  %v5132_v28 = vsel %vm5131_vm1, %v5129_v37, %v5126_v57  ;;  %v5434_v5 = vadd.f32 1.0, %v5433_v55  ;;  %vm5428_vm5 = vcmp.lt.f32.partialorder %v5427_v30, 0.0004427343 }
0x11da   :  { %4913 = vst.msk [vmem:[%s8929_s18 + $0x38] sm:$0xff] %vm313_vm0, %v4906_v51  ;;  %6905 = vlog2.f32 %v5439_v35  ;;  %v5134_v4 = vsel %vm5108_vm2, %v8624_v63, %v5132_v28  ;;  %v5443_v6 = vadd.f32 1.0, %v5442_v48  ;;  %v5445_v9 = vand.u32 2147483647, %v8794_v0 }
0x11db   :  { %v5136_v62 = vsel %vm4301_vm11, %v5134_v4, %v8624_v63  ;;  %6907 = vpow2.f32 %v5419_v58  ;;  %v5426_v63 = vmul.f32 %v8772_v52, %v5425_v49  ;;  %v5435_v11 = vmul.f32 %v8788_v25, %v5434_v5 }
0x11dc   :  { %v6894_v14 = vpop.eup %6893  ;;  %v5444_v13 = vmul.f32 %v8794_v0, %v5443_v6  ;;  %vm5446_vm9 = vcmp.lt.f32.partialorder %v5445_v9, 0.0004427343  ;;  %vm5396_vm13 = vcmp.gt.f32.partialorder %v8737_v34, 20.0  ;;  %vm5397_vm15 = vcmp.gt.f32.partialorder %v8740_v2, 20.0 }
0x11dd   :  { %v5117_v19 = vmul.f32 0.6931472, %v6894_v14  ;;  %v8814_v3 = vpop.eup %6895  ;;  %vm5398_vm2 = vcmp.gt.f32.partialorder %v8770_v1, 20.0 }
0x11de   :  { %v5448_v60 = vadd.f32 1.0, %v8814_v3  ;;  %v8821_v47 = vpop.eup %6897  ;;  %v5451_v50 = vmul.f32 -0.5, %v8814_v3  ;;  %v5454_v37 = vand.u32 2147483647, %v8814_v3 }
0x11df   :  { %v5123_v45 = vsel %vm5122_vm3, %v5120_v44, %v5117_v19  ;;  %v5457_v8 = vadd.f32 1.0, %v8821_v47  ;;  %v5460_v22 = vmul.f32 -0.5, %v8821_v47  ;;  %v5463_v35 = vand.u32 2147483647, %v8821_v47 }
0x11e0   :  { %v5133_v39 = vsel %vm5107_vm4, %v8646_v31, %v5123_v45  ;;  %v6900_v21 = vpop.eup %6899  ;;  %6909 = vlog2.f32 %v5448_v60  ;;  %v5452_v17 = vadd.f32 1.0, %v5451_v50  ;;  %vm5455_vm12 = vcmp.lt.f32.partialorder %v5454_v37, 0.0004427343 }
0x11e1   :  { %v5135_v43 = vsel %vm4301_vm11, %v5133_v39, %v8646_v31  ;;  %v5423_v26 = vmul.f32 0.6931472, %v6900_v21  ;;  %v5436_v31 = vand.u32 2147483647, %v8788_v25  ;;  %6911 = vlog2.f32 %v5457_v8 }
0x11e2   :  { %v5506_v53 = vsel %vm4301_vm11, %v5136_v62, %v5135_v43  ;;  %v6902_v24 = vpop.eup %6901  ;;  %v5461_v27 = vadd.f32 1.0, %v5460_v22  ;;  %v5453_v18 = vmul.f32 %v8814_v3, %v5452_v17  ;;  %vm5464_vm14 = vcmp.lt.f32.partialorder %v5463_v35, 0.0004427343 }
0x11e3   :  { %5706 = vst.msk [vmem:[%s8929_s18 + $0x78] sm:$0xff] %vm313_vm0, %v5506_v53  ;;  %v5429_v29 = vsel %vm5428_vm5, %v5426_v63, %v5423_v26  ;;  %v5466_v7 = vadd.f32 1.0, %v6902_v24  ;;  %vm5437_vm7 = vcmp.lt.f32.partialorder %v5436_v31, 0.0004427343  ;;  %v5469_v32 = vmul.f32 -0.5, %v6902_v24 }
0x11e4   :  { %v5484_v59 = vsel %vm5393_vm6, %v8676_v40, %v5429_v29  ;;  %v5462_v61 = vmul.f32 %v8821_v47, %v5461_v27  ;;  %v5472_v19 = vand.u32 2147483647, %v6902_v24  ;;  %vm5399_vm4 = vcmp.gt.f32.partialorder %v8798_v20, 20.0 }
0x11e5   :  { %v6904_v16 = vpop.eup %6903  ;;  %v5491_v52 = vsel %vm4301_vm11, %v5484_v59, %v8676_v40  ;;  %6913 = vlog2.f32 %v5466_v7  ;;  %v5470_v28 = vadd.f32 1.0, %v5469_v32 }
0x11e6   :  { %v5432_v56 = vmul.f32 0.6931472, %v6904_v16  ;;  %5699 = vst.msk [vmem:[%s8929_s18 + $0x40] sm:$0xff] %vm313_vm0, %v5491_v52  ;;  %vm5473_vm1 = vcmp.lt.f32.partialorder %v5472_v19, 0.0004427343 }
0x11e7   :  { %v6906_v15 = vpop.eup %6905  ;;  %v5471_v49 = vmul.f32 %v6902_v24, %v5470_v28 }
0x11e8   :  { %v5438_v23 = vsel %vm5437_vm7, %v5435_v11, %v5432_v56  ;;  %v5441_v54 = vmul.f32 0.6931472, %v6906_v15 }
0x11e9   :  { %v5485_v40 = vsel %vm5394_vm8, %v8695_v12, %v5438_v23 }
0x11ea   :  { %v5492_v38 = vsel %vm4301_vm11, %v5485_v40, %v8695_v12  ;;  %v5447_v25 = vsel %vm5446_vm9, %v5444_v13, %v5441_v54  ;;  %v6908_v12 = vpop.eup %6907 }
0x11eb   :  { %5700 = vst.msk [vmem:[%s8929_s18 + $0x48] sm:$0xff] %vm313_vm0, %v5492_v38  ;;  %v5486_v36 = vsel %vm5395_vm10, %v8714_v42, %v5447_v25  ;;  %v5475_v57 = vadd.f32 1.0, %v6908_v12  ;;  %v5481_v47 = vand.u32 2147483647, %v6908_v12 }
0x11ec   :  { %v5493_v41 = vsel %vm4301_vm11, %v5486_v36, %v8714_v42 }
0x11ed   :  { %5701 = vst.msk [vmem:[%s8929_s18 + $0x50] sm:$0xff] %vm313_vm0, %v5493_v41  ;;  %v6910_v0 = vpop.eup %6909  ;;  %6915 = vlog2.f32 %v5475_v57  ;;  %vm5482_vm3 = vcmp.lt.f32.partialorder %v5481_v47, 0.0004427343 }
0x11ee   :  { %v5450_v51 = vmul.f32 0.6931472, %v6910_v0  ;;  %v6912_v42 = vpop.eup %6911 }
0x11ef   :  { %v5459_v14 = vmul.f32 0.6931472, %v6912_v42 }
0x11f0   :  { %v5456_v33 = vsel %vm5455_vm12, %v5453_v18, %v5450_v51 }
0x11f1   :  { %v5487_v10 = vsel %vm5396_vm13, %v8737_v34, %v5456_v33  ;;  %v5465_v58 = vsel %vm5464_vm14, %v5462_v61, %v5459_v14 }
0x11f2   :  { %v5494_v44 = vsel %vm4301_vm11, %v5487_v10, %v8737_v34  ;;  %v6914_v4 = vpop.eup %6913  ;;  %v5488_v3 = vsel %vm5397_vm15, %v8740_v2, %v5465_v58  ;;  %v5478_v34 = vmul.f32 -0.5, %v6908_v12 }
0x11f3   :  { %5702 = vst.msk [vmem:[%s8929_s18 + $0x58] sm:$0xff] %vm313_vm0, %v5494_v44  ;;  %v5468_v45 = vmul.f32 0.6931472, %v6914_v4  ;;  %v5495_v55 = vsel %vm4301_vm11, %v5488_v3, %v8740_v2 }
0x11f4   :  { %5703 = vst.msk [vmem:[%s8929_s18 + $0x60] sm:$0xff] %vm313_vm0, %v5495_v55  ;;  %v5479_v2 = vadd.f32 1.0, %v5478_v34 }
0x11f5   :  { %v5474_v39 = vsel %vm5473_vm1, %v5471_v49, %v5468_v45 }
0x11f6   :  { %v5489_v30 = vsel %vm5398_vm2, %v8770_v1, %v5474_v39  ;;  %v5480_v48 = vmul.f32 %v6908_v12, %v5479_v2 }
0x11f7   :  { %v5496_v60 = vsel %vm4301_vm11, %v5489_v30, %v8770_v1 }
0x11f8   :  { %5704 = vst.msk [vmem:[%s8929_s18 + $0x68] sm:$0xff] %vm313_vm0, %v5496_v60 }
0x11fa   :  { %v6916_v62 = vpop.eup %6915 }
0x11fb   :  { %v5477_v43 = vmul.f32 0.6931472, %v6916_v62 }
0x11fd   :  { %v5483_v21 = vsel %vm5482_vm3, %v5480_v48, %v5477_v43 }
0x11fe   :  { %v5490_v53 = vsel %vm5399_vm4, %v8798_v20, %v5483_v21 }
0x11ff   :  { %v5497_v1 = vsel %vm4301_vm11, %v5490_v53, %v8798_v20 }
0x1200   :  { %5705 = vst.msk [vmem:[%s8929_s18 + $0x70] sm:$0xff] %vm313_vm0, %v5497_v1 }
0x1201   :  { %5512 = vsyncpa [#allocation5], 1 }
0x1202   :  { %5513 = vsyncpa [#allocation7], 1 }
0x1203   :  { %5514 = vsyncpa [#allocation10], 1 }
0x1204   :  { %5515 = vsyncpa [#allocation13], 1 }
0x1205   :  { %5516 = vsyncpa [#allocation16], 1 }

</bundles_post_ra>
